<compile_context>
chip_gen: v6e
topology: v6e:2x2x1
jax: 0.10.0
libtpu: 0.0.40
codegen_flags: <defaults>
</compile_context>

<pallas_src>
import functools

import jax
import jax.numpy as jnp
from jax.experimental import pallas as pl
from jax.experimental.pallas import tpu as pltpu

EPS = 1e-5
NEG_SLOPE = 0.2
LANES = 128                    # lane / K padding granularity
BLOCK_M = 512                  # max M tile (fused single-pass cap & two-pass tile size)
VMEM_LIMIT = 32 * 1024 * 1024  # safe on v5e/v6e/v7x; largest working set here ~5 MiB


def _round_up(x, m):
    return (x + m - 1) // m * m


def _cdiv(a, b):
    return -(-a // b)


def _itemsize(dt):
    return 2 if dt == jnp.bfloat16 else 4


def _pick_tiling(M):
    """Return (Mp, block_m, nt). nt==1 -> fused single-pass path; else nt>=2 tiles."""
    Mp16 = _round_up(M, 16)
    if Mp16 <= BLOCK_M:
        return Mp16, Mp16, 1
    nt = _cdiv(Mp16, BLOCK_M)                 # >= 2, so both v7x TensorCores get work
    bm = _round_up(_cdiv(Mp16, nt), 16)
    return bm * nt, bm, nt


# ------------------------------ Pallas kernels ------------------------------ #
def _fused_bn_kernel(x_ref, w_ref, gb_ref, o_ref, *, m_real):
    """Single-pass conv(matmul) + train-mode BN + LeakyReLU. Whole M in one tile."""
    acc = jnp.dot(x_ref[...], w_ref[...], preferred_element_type=jnp.float32)
    ssum = jnp.sum(acc, axis=0, keepdims=True)                 # padded rows are exact 0
    ssq = jnp.sum(acc * acc, axis=0, keepdims=True)
    mean = ssum / m_real
    var = jnp.maximum(ssq / m_real - mean * mean, 0.0)         # biased var (train mode)
    scale = gb_ref[0:1, :] * jax.lax.rsqrt(var + EPS)
    shift = gb_ref[1:2, :] - mean * scale
    z = acc * scale + shift
    o_ref[...] = jnp.where(z >= 0, z, NEG_SLOPE * z).astype(o_ref.dtype)


def fused_matmul_bn_lrelu(x, w, gb, *, m_real):
    M, K = x.shape
    _, N = w.shape
    cost = pl.CostEstimate(
        flops=int(2 * M * K * N + 10 * M * N), transcendentals=int(N),
        bytes_accessed=int(M * K * 2 + K * N * 2 + 8 * N * 4 + M * N * 2))
    kernel = functools.partial(_fused_bn_kernel, m_real=float(m_real))
    return pl.pallas_call(
        kernel,
        grid=(1,),
        in_specs=[
            pl.BlockSpec((M, K), lambda i: (0, 0)),
            pl.BlockSpec((K, N), lambda i: (0, 0)),
            pl.BlockSpec((8, N), lambda i: (0, 0)),
        ],
        out_specs=pl.BlockSpec((M, N), lambda i: (0, 0)),
        out_shape=jax.ShapeDtypeStruct((M, N), jnp.bfloat16),
        compiler_params=pltpu.CompilerParams(
            dimension_semantics=("arbitrary",), vmem_limit_bytes=VMEM_LIMIT),
        cost_estimate=cost,
    )(x, w, gb)


def _mm_stats_kernel(x_ref, w_ref, y_ref, stats_ref):
    """BN pass 1: y = x @ w (bf16 out) + per-tile per-channel sum / sumsq (f32)."""
    acc = jnp.dot(x_ref[...], w_ref[...], preferred_element_type=jnp.float32)
    y_ref[...] = acc.astype(y_ref.dtype)
    ssum = jnp.sum(acc, axis=0, keepdims=True)        # (1, N)
    ssq = jnp.sum(acc * acc, axis=0, keepdims=True)   # (1, N)
    row = jax.lax.broadcasted_iota(jnp.int32, stats_ref.shape, 0)
    stats_ref[...] = jnp.where(row == 0, ssum, jnp.where(row == 1, ssq, 0.0))


def matmul_with_stats(x, w, *, block_m):
    """x:(Mp,K) bf16, w:(K,N) bf16 -> (y:(Mp,N) bf16, stats:(nt*8,N) f32)."""
    M, K = x.shape
    _, N = w.shape
    nt = M // block_m
    cost = pl.CostEstimate(
        flops=int(2 * M * K * N + 4 * M * N), transcendentals=0,
        bytes_accessed=int(M * K * 2 + K * N * 2 + M * N * 2 + nt * 8 * N * 4))
    return pl.pallas_call(
        _mm_stats_kernel,
        grid=(nt,),
        in_specs=[
            pl.BlockSpec((block_m, K), lambda i: (i, 0)),
            pl.BlockSpec((K, N), lambda i: (0, 0)),       # weight stays resident
        ],
        out_specs=[
            pl.BlockSpec((block_m, N), lambda i: (i, 0)),
            pl.BlockSpec((8, N), lambda i: (i, 0)),       # per-tile partial stats
        ],
        out_shape=[
            jax.ShapeDtypeStruct((M, N), jnp.bfloat16),
            jax.ShapeDtypeStruct((nt * 8, N), jnp.float32),
        ],
        compiler_params=pltpu.CompilerParams(
            dimension_semantics=("parallel",), vmem_limit_bytes=VMEM_LIMIT),
        cost_estimate=cost,
    )(x, w)


def _bn_apply_kernel(y_ref, stats_ref, gb_ref, o_ref, *, m_real):
    """BN pass 2: fold partial stats in-kernel, then leaky_relu(scale*y + shift)."""
    st = stats_ref[...]                                        # (nt*8, N) f32
    row = jax.lax.broadcasted_iota(jnp.int32, st.shape, 0) % 8
    ssum = jnp.sum(jnp.where(row == 0, st, 0.0), axis=0, keepdims=True)
    ssq = jnp.sum(jnp.where(row == 1, st, 0.0), axis=0, keepdims=True)
    mean = ssum / m_real
    var = jnp.maximum(ssq / m_real - mean * mean, 0.0)
    scale = gb_ref[0:1, :] * jax.lax.rsqrt(var + EPS)
    shift = gb_ref[1:2, :] - mean * scale
    z = y_ref[...].astype(jnp.float32) * scale + shift
    o_ref[...] = jnp.where(z >= 0, z, NEG_SLOPE * z).astype(o_ref.dtype)


def bn_apply_lrelu(y, stats, gb, *, m_real, block_m):
    M, N = y.shape
    nt = M // block_m
    S = stats.shape[0]
    kernel = functools.partial(_bn_apply_kernel, m_real=float(m_real))
    cost = pl.CostEstimate(
        flops=int(6 * M * N + 4 * S * N), transcendentals=int(N),
        bytes_accessed=int(M * N * 2 * 2 + S * N * 4 + 8 * N * 4))
    return pl.pallas_call(
        kernel,
        grid=(nt,),
        in_specs=[
            pl.BlockSpec((block_m, N), lambda i: (i, 0)),
            pl.BlockSpec((S, N), lambda i: (0, 0)),
            pl.BlockSpec((8, N), lambda i: (0, 0)),
        ],
        out_specs=pl.BlockSpec((block_m, N), lambda i: (i, 0)),
        out_shape=jax.ShapeDtypeStruct((M, N), jnp.bfloat16),
        compiler_params=pltpu.CompilerParams(
            dimension_semantics=("parallel",), vmem_limit_bytes=VMEM_LIMIT),
        cost_estimate=cost,
    )(y, stats, gb)


def _mm_bias_act_kernel(x_ref, w_ref, b_ref, o_ref, *, act):
    acc = jnp.dot(x_ref[...], w_ref[...], preferred_element_type=jnp.float32)
    acc = acc + b_ref[0:1, :]
    if act == "lrelu":
        acc = jnp.where(acc >= 0, acc, NEG_SLOPE * acc)
    elif act == "sigmoid":
        acc = jax.nn.sigmoid(acc)
    o_ref[...] = acc.astype(o_ref.dtype)


def matmul_bias_act(x, w, b8, *, act, out_dtype, block_m):
    """out = act(x @ w + b); x:(Mp,K) bf16, w:(K,N) bf16, b8:(8,N) f32 (row 0 = bias)."""
    M, K = x.shape
    _, N = w.shape
    nt = M // block_m
    cost = pl.CostEstimate(
        flops=int(2 * M * K * N + 2 * M * N),
        transcendentals=int(M * N) if act == "sigmoid" else 0,
        bytes_accessed=int(M * K * 2 + K * N * 2 + 8 * N * 4
                           + M * N * _itemsize(out_dtype)))
    kernel = functools.partial(_mm_bias_act_kernel, act=act)
    return pl.pallas_call(
        kernel,
        grid=(nt,),
        in_specs=[
            pl.BlockSpec((block_m, K), lambda i: (i, 0)),
            pl.BlockSpec((K, N), lambda i: (0, 0)),
            pl.BlockSpec((8, N), lambda i: (0, 0)),
        ],
        out_specs=pl.BlockSpec((block_m, N), lambda i: (i, 0)),
        out_shape=jax.ShapeDtypeStruct((M, N), out_dtype),
        compiler_params=pltpu.CompilerParams(
            dimension_semantics=("parallel",), vmem_limit_bytes=VMEM_LIMIT),
        cost_estimate=cost,
    )(x, w, b8)


# --------------------------------- JAX glue --------------------------------- #
def _im2col_nhwc(x, k, stride, pad):
    """(B,H,W,C) -> (B*Hout*Wout, k*k*C) patches, columns in (kh, kw, c) order."""
    B, H, W, C = x.shape
    Hout = (H + 2 * pad - k) // stride + 1
    Wout = (W + 2 * pad - k) // stride + 1
    xp = jnp.pad(x, ((0, 0), (pad, pad), (pad, pad), (0, 0)))
    cols = []
    for i in range(k):
        for j in range(k):
            cols.append(xp[:, i:i + (Hout - 1) * stride + 1:stride,
                           j:j + (Wout - 1) * stride + 1:stride, :])
    p = jnp.concatenate(cols, axis=-1).reshape(B * Hout * Wout, k * k * C)
    return p, Hout, Wout


def _prep_conv_operands(x_nhwc, w):
    """bf16 im2col at the real channel count + weight repack; K/Cout padded to 128."""
    Cout, Cin, KH, KW = w.shape
    B, H, W, Cc = x_nhwc.shape
    assert Cc == Cin, (Cc, Cin)
    patches, Hout, Wout = _im2col_nhwc(x_nhwc.astype(jnp.bfloat16), KH, 2, 2)
    M, K = patches.shape                  # K = KH*KW*Cin (real channels only)
    Kp = _round_up(K, LANES)
    Np = _round_up(Cout, LANES)
    Mp, bm, nt = _pick_tiling(M)
    patches = jnp.pad(patches, ((0, Mp - M), (0, Kp - K)))
    w2 = w.transpose(2, 3, 1, 0).reshape(K, Cout)                     # (kh,kw,cin) rows
    w2 = jnp.pad(w2, ((0, Kp - K), (0, Np - Cout))).astype(jnp.bfloat16)
    return patches, w2, (B, Hout, Wout, M, Cout, Np, bm, nt)


def conv_bn_lrelu(x_nhwc, w, gamma, beta):
    """Conv2d(5,s2,p2) + train-mode BatchNorm2d + LeakyReLU(0.2), NHWC in/out (bf16).

    The conv bias cancels exactly under train-mode BN, so it is not applied here."""
    patches, w2, (B, Hout, Wout, M, Cout, Np, bm, nt) = _prep_conv_operands(x_nhwc, w)
    gb = (jnp.zeros((8, Np), jnp.float32)
          .at[0, :Cout].set(gamma)
          .at[1, :Cout].set(beta))
    if nt == 1:
        # Fully fused single pass: matmul + mean/var + scale/shift + LeakyReLU.
        y_act = fused_matmul_bn_lrelu(patches, w2, gb, m_real=M)
    else:
        # Two-pass: tiled matmul with per-tile stats, then in-kernel stats fold + apply.
        y, stats = matmul_with_stats(patches, w2, block_m=bm)
        y_act = bn_apply_lrelu(y, stats, gb, m_real=M, block_m=bm)
    # Slice back to real rows and real channels so the next layer's K stays small.
    return y_act[:M, :Cout].reshape(B, Hout, Wout, Cout)


def conv_bias_lrelu(x_nhwc, w, b):
    """Conv2d(5,s2,p2) + bias + LeakyReLU(0.2) (no BN), NHWC in/out (bf16)."""
    patches, w2, (B, Hout, Wout, M, Cout, Np, bm, nt) = _prep_conv_operands(x_nhwc, w)
    b8 = jnp.zeros((8, Np), jnp.float32).at[0, :Cout].set(b)
    y = matmul_bias_act(patches, w2, b8, act="lrelu",
                        out_dtype=jnp.bfloat16, block_m=bm)
    return y[:M, :Cout].reshape(B, Hout, Wout, Cout)


def linear_sigmoid(feat_nhwc, wl, bl):
    """Flatten + Linear(512, 1) + Sigmoid; N=1 padded to 128 lanes, sliced outside."""
    B, Hf, Wf, Cf = feat_nhwc.shape
    K = Hf * Wf * Cf
    assert K == wl.shape[1], (K, wl.shape)
    feat = feat_nhwc.reshape(B, K)                        # (h, w, c)-major flatten
    Kp = _round_up(K, LANES)
    bm = _round_up(B, 16)
    featp = jnp.pad(feat, ((0, bm - B), (0, Kp - K))).astype(jnp.bfloat16)
    # torch's Flatten is (c, h, w)-major; permute the Linear weight to our order instead.
    wl2 = wl.reshape(1, Cf, Hf, Wf).transpose(0, 2, 3, 1).reshape(1, K).T      # (K, 1)
    wl2 = jnp.pad(wl2, ((0, Kp - K), (0, LANES - 1))).astype(jnp.bfloat16)
    b8 = jnp.zeros((8, LANES), jnp.float32).at[0, :1].set(bl)
    out = matmul_bias_act(featp, wl2, b8, act="sigmoid",
                          out_dtype=jnp.float32, block_m=bm)
    return out[:B, :1]


# -------------------------------- parameters -------------------------------- #
def init_params(key):
    conv_shapes = [(16, 1, 5, 5), (32, 16, 5, 5), (64, 32, 5, 5), (128, 64, 5, 5)]
    keys = jax.random.split(key, 2 * len(conv_shapes) + 2)
    params = {}
    for idx, shp in enumerate(conv_shapes):
        # normal_(mean=0, std=0.02) as in the PyTorch __init__
        params[f"w{idx}"] = 0.02 * jax.random.normal(keys[2 * idx], shp, jnp.float32)
        fan_in = shp[1] * shp[2] * shp[3]
        bound = 1.0 / float(fan_in) ** 0.5
        params[f"b{idx}"] = jax.random.uniform(
            keys[2 * idx + 1], (shp[0],), jnp.float32, -bound, bound)
    for idx, c in enumerate([16, 32, 64]):                # BatchNorm2d default affine
        params[f"gamma{idx}"] = jnp.ones((c,), jnp.float32)
        params[f"beta{idx}"] = jnp.zeros((c,), jnp.float32)
    bound = 1.0 / 512.0 ** 0.5
    params["wl"] = 0.02 * jax.random.normal(keys[-2], (1, 512), jnp.float32)
    params["bl"] = jax.random.uniform(keys[-1], (1,), jnp.float32, -bound, bound)
    return params


# ---------------------------------- forward ---------------------------------- #
@jax.jit
def discriminator_forward(params, x):
    # x: (B, 1, 28, 28) NCHW -> NHWC once; activations then stay NHWC (real channels).
    y = jnp.transpose(x, (0, 2, 3, 1))
    y = conv_bn_lrelu(y, params["w0"], params["gamma0"], params["beta0"])
    y = conv_bn_lrelu(y, params["w1"], params["gamma1"], params["beta1"])
    y = conv_bn_lrelu(y, params["w2"], params["gamma2"], params["beta2"])
    y = conv_bias_lrelu(y, params["w3"], params["b3"])     # layer 4: no BN
    return linear_sigmoid(y, params["wl"], params["bl"])   # (B, 1)


# ----------------------- pure-JAX reference (f32, XLA) ----------------------- #
def _reference_forward(params, x):
    def conv(z, w, b):
        y = jax.lax.conv_general_dilated(
            z, w, window_strides=(2, 2), padding=((2, 2), (2, 2)),
            dimension_numbers=("NCHW", "OIHW", "NCHW"))
        return y + b.reshape(1, -1, 1, 1)

    def bn(y, g, b):
        mean = jnp.mean(y, axis=(0, 2, 3), keepdims=True)
        var = jnp.mean((y - mean) ** 2, axis=(0, 2, 3), keepdims=True)
        return (y - mean) * jax.lax.rsqrt(var + EPS) * g.reshape(1, -1, 1, 1) \
            + b.reshape(1, -1, 1, 1)

    def lrelu(y):
        return jnp.where(y >= 0, y, NEG_SLOPE * y)

    y = lrelu(bn(conv(x, params["w0"], params["b0"]), params["gamma0"], params["beta0"]))
    y = lrelu(bn(conv(y, params["w1"], params["b1"]), params["gamma1"], params["beta1"]))
    y = lrelu(bn(conv(y, params["w2"], params["b2"]), params["gamma2"], params["beta2"]))
    y = lrelu(conv(y, params["w3"], params["b3"]))
    flat = y.reshape(y.shape[0], -1)                       # torch (c,h,w)-major flatten
    return jax.nn.sigmoid(flat @ params["wl"].T + params["bl"])


if __name__ == "__main__":
    key = jax.random.PRNGKey(0)
    pkey, xkey = jax.random.split(key)
    params = init_params(pkey)
    # Linear(512, 1) after four stride-2 convs from 1 channel implies a 28x28 input.
    x = jax.random.normal(xkey, (2, 1, 28, 28), jnp.float32)
    out = jax.block_until_ready(discriminator_forward(params, x))
    assert out.shape == (2, 1)
    assert bool(jnp.all((out >= 0.0) & (out <= 1.0)))
    ref = jax.block_until_ready(_reference_forward(params, x))
    assert bool(jnp.max(jnp.abs(out - ref)) < 5e-2)        # bf16 matmuls vs f32 reference
    print("KERNEL_OK")
</pallas_src>

<mosaic_0001>
module attributes {stable_mosaic.version = 11 : i64} {
  func.func @_fused_bn_kernel(%arg0: i32, %arg1: memref<400x128xbf16, #tpu.memory_space<vmem>>, %arg2: memref<128x128xbf16, #tpu.memory_space<vmem>>, %arg3: memref<8x128xf32, #tpu.memory_space<vmem>>, %arg4: memref<400x128xbf16, #tpu.memory_space<vmem>>) attributes {dimension_semantics = [#tpu.dimension_semantics<arbitrary>], iteration_bounds = array<i64: 1>, scalar_prefetch = 0 : i64, scratch_operands = 0 : i64, tpu.core_type = #tpu.core_type<tc>, window_params = [{pipeline_mode = #tpu.pipeline_mode<synchronous>, transform_indices = @transform_0, window_bounds = array<i64: 400, 128>}, {pipeline_mode = #tpu.pipeline_mode<synchronous>, transform_indices = @transform_1, window_bounds = array<i64: 128, 128>}, {pipeline_mode = #tpu.pipeline_mode<synchronous>, transform_indices = @transform_2, window_bounds = array<i64: 8, 128>}, {pipeline_mode = #tpu.pipeline_mode<synchronous>, transform_indices = @transform_3, window_bounds = array<i64: 400, 128>}]} {
    %c0 = arith.constant 0 : index
    %c0_0 = arith.constant 0 : index
    %0 = vector.load %arg1[%c0, %c0_0] : memref<400x128xbf16, #tpu.memory_space<vmem>>, vector<400x128xbf16>
    %c0_1 = arith.constant 0 : index
    %c0_2 = arith.constant 0 : index
    %1 = vector.load %arg2[%c0_1, %c0_2] : memref<128x128xbf16, #tpu.memory_space<vmem>>, vector<128x128xbf16>
    %cst = arith.constant dense<0.000000e+00> : vector<400x128xf32>
    %2 = tpu.matmul %0, %1, %cst {dimension_numbers = #tpu.dot_dimension_numbers<[1], [0], [0], [1], [0, 0, 1, 1], [], []>} : vector<400x128xbf16>, vector<128x128xbf16>, vector<400x128xf32> -> vector<400x128xf32>
    %cst_3 = arith.constant dense<0.000000e+00> : vector<128xf32>
    %3 = vector.multi_reduction <add>, %2, %cst_3 [0] : vector<400x128xf32> to vector<128xf32>
    %4 = vector.shape_cast %3 : vector<128xf32> to vector<1x128xf32>
    %5 = arith.mulf %2, %2 : vector<400x128xf32>
    %cst_4 = arith.constant dense<0.000000e+00> : vector<128xf32>
    %6 = vector.multi_reduction <add>, %5, %cst_4 [0] : vector<400x128xf32> to vector<128xf32>
    %7 = vector.shape_cast %6 : vector<128xf32> to vector<1x128xf32>
    %cst_5 = arith.constant 3.920000e+02 : f32
    %8 = vector.broadcast %cst_5 : f32 to vector<1x128xf32>
    %9 = arith.divf %4, %8 : vector<1x128xf32>
    %cst_6 = arith.constant 3.920000e+02 : f32
    %10 = vector.broadcast %cst_6 : f32 to vector<1x128xf32>
    %11 = arith.divf %7, %10 : vector<1x128xf32>
    %12 = arith.mulf %9, %9 : vector<1x128xf32>
    %13 = arith.subf %11, %12 : vector<1x128xf32>
    %cst_7 = arith.constant 0.000000e+00 : f32
    %14 = vector.broadcast %cst_7 : f32 to vector<1x128xf32>
    %15 = arith.maximumf %13, %14 : vector<1x128xf32>
    %c0_8 = arith.constant 0 : index
    %c0_9 = arith.constant 0 : index
    %16 = vector.load %arg3[%c0_8, %c0_9] : memref<8x128xf32, #tpu.memory_space<vmem>>, vector<1x128xf32>
    %cst_10 = arith.constant 9.99999974E-6 : f32
    %17 = vector.broadcast %cst_10 : f32 to vector<1x128xf32>
    %18 = arith.addf %15, %17 : vector<1x128xf32>
    %19 = math.rsqrt %18 : vector<1x128xf32>
    %20 = arith.mulf %16, %19 : vector<1x128xf32>
    %c1 = arith.constant 1 : index
    %c0_11 = arith.constant 0 : index
    %21 = vector.load %arg3[%c1, %c0_11] : memref<8x128xf32, #tpu.memory_space<vmem>>, vector<1x128xf32>
    %22 = arith.mulf %9, %20 : vector<1x128xf32>
    %23 = arith.subf %21, %22 : vector<1x128xf32>
    %24 = vector.broadcast %20 : vector<1x128xf32> to vector<400x128xf32>
    %25 = arith.mulf %2, %24 : vector<400x128xf32>
    %26 = vector.broadcast %23 : vector<1x128xf32> to vector<400x128xf32>
    %27 = arith.addf %25, %26 : vector<400x128xf32>
    %cst_12 = arith.constant 0.000000e+00 : f32
    %28 = vector.broadcast %cst_12 : f32 to vector<400x128xf32>
    %29 = arith.cmpf oge, %27, %28 : vector<400x128xf32>
    %cst_13 = arith.constant 2.000000e-01 : f32
    %30 = vector.broadcast %cst_13 : f32 to vector<400x128xf32>
    %31 = arith.mulf %30, %27 : vector<400x128xf32>
    %32 = arith.select %29, %27, %31 : vector<400x128xi1>, vector<400x128xf32>
    %33 = arith.truncf %32 : vector<400x128xf32> to vector<400x128xbf16>
    %c0_14 = arith.constant 0 : index
    %c0_15 = arith.constant 0 : index
    %34 = vector.load %arg4[%c0_14, %c0_15] : memref<400x128xbf16, #tpu.memory_space<vmem>>, vector<400x128xbf16>
    tpu.vector_store %arg4[%c0_14, %c0_15], %33 {strides = array<i32>} : memref<400x128xbf16, #tpu.memory_space<vmem>>, vector<400x128xbf16>,
    return
  }
  func.func @transform_0(%arg0: i32) -> (i32, i32) {
    %c0_i32 = arith.constant 0 : i32
    %c0_i32_0 = arith.constant 0 : i32
    %c0_i32_1 = arith.constant 0 : i32
    return %c0_i32, %c0_i32_0 : i32, i32
  }
  func.func @transform_1(%arg0: i32) -> (i32, i32) {
    %c0_i32 = arith.constant 0 : i32
    %c0_i32_0 = arith.constant 0 : i32
    %c0_i32_1 = arith.constant 0 : i32
    return %c0_i32, %c0_i32_0 : i32, i32
  }
  func.func @transform_2(%arg0: i32) -> (i32, i32) {
    %c0_i32 = arith.constant 0 : i32
    %c0_i32_0 = arith.constant 0 : i32
    %c0_i32_1 = arith.constant 0 : i32
    return %c0_i32, %c0_i32_0 : i32, i32
  }
  func.func @transform_3(%arg0: i32) -> (i32, i32) {
    %c0_i32 = arith.constant 0 : i32
    %c0_i32_0 = arith.constant 0 : i32
    %c0_i32_1 = arith.constant 0 : i32
    return %c0_i32, %c0_i32_0 : i32, i32
  }
}

module attributes {stable_mosaic.version = 11 : i64} {
  func.func @_fused_bn_kernel(%arg0: i32, %arg1: memref<112x512xbf16, #tpu.memory_space<vmem>>, %arg2: memref<512x128xbf16, #tpu.memory_space<vmem>>, %arg3: memref<8x128xf32, #tpu.memory_space<vmem>>, %arg4: memref<112x128xbf16, #tpu.memory_space<vmem>>) attributes {dimension_semantics = [#tpu.dimension_semantics<arbitrary>], iteration_bounds = array<i64: 1>, scalar_prefetch = 0 : i64, scratch_operands = 0 : i64, tpu.core_type = #tpu.core_type<tc>, window_params = [{pipeline_mode = #tpu.pipeline_mode<synchronous>, transform_indices = @transform_0, window_bounds = array<i64: 112, 512>}, {pipeline_mode = #tpu.pipeline_mode<synchronous>, transform_indices = @transform_1, window_bounds = array<i64: 512, 128>}, {pipeline_mode = #tpu.pipeline_mode<synchronous>, transform_indices = @transform_2, window_bounds = array<i64: 8, 128>}, {pipeline_mode = #tpu.pipeline_mode<synchronous>, transform_indices = @transform_3, window_bounds = array<i64: 112, 128>}]} {
    %c0 = arith.constant 0 : index
    %c0_0 = arith.constant 0 : index
    %0 = vector.load %arg1[%c0, %c0_0] : memref<112x512xbf16, #tpu.memory_space<vmem>>, vector<112x512xbf16>
    %c0_1 = arith.constant 0 : index
    %c0_2 = arith.constant 0 : index
    %1 = vector.load %arg2[%c0_1, %c0_2] : memref<512x128xbf16, #tpu.memory_space<vmem>>, vector<512x128xbf16>
    %cst = arith.constant dense<0.000000e+00> : vector<112x128xf32>
    %2 = tpu.matmul %0, %1, %cst {dimension_numbers = #tpu.dot_dimension_numbers<[1], [0], [0], [1], [0, 0, 1, 1], [], []>} : vector<112x512xbf16>, vector<512x128xbf16>, vector<112x128xf32> -> vector<112x128xf32>
    %cst_3 = arith.constant dense<0.000000e+00> : vector<128xf32>
    %3 = vector.multi_reduction <add>, %2, %cst_3 [0] : vector<112x128xf32> to vector<128xf32>
    %4 = vector.shape_cast %3 : vector<128xf32> to vector<1x128xf32>
    %5 = arith.mulf %2, %2 : vector<112x128xf32>
    %cst_4 = arith.constant dense<0.000000e+00> : vector<128xf32>
    %6 = vector.multi_reduction <add>, %5, %cst_4 [0] : vector<112x128xf32> to vector<128xf32>
    %7 = vector.shape_cast %6 : vector<128xf32> to vector<1x128xf32>
    %cst_5 = arith.constant 9.800000e+01 : f32
    %8 = vector.broadcast %cst_5 : f32 to vector<1x128xf32>
    %9 = arith.divf %4, %8 : vector<1x128xf32>
    %cst_6 = arith.constant 9.800000e+01 : f32
    %10 = vector.broadcast %cst_6 : f32 to vector<1x128xf32>
    %11 = arith.divf %7, %10 : vector<1x128xf32>
    %12 = arith.mulf %9, %9 : vector<1x128xf32>
    %13 = arith.subf %11, %12 : vector<1x128xf32>
    %cst_7 = arith.constant 0.000000e+00 : f32
    %14 = vector.broadcast %cst_7 : f32 to vector<1x128xf32>
    %15 = arith.maximumf %13, %14 : vector<1x128xf32>
    %c0_8 = arith.constant 0 : index
    %c0_9 = arith.constant 0 : index
    %16 = vector.load %arg3[%c0_8, %c0_9] : memref<8x128xf32, #tpu.memory_space<vmem>>, vector<1x128xf32>
    %cst_10 = arith.constant 9.99999974E-6 : f32
    %17 = vector.broadcast %cst_10 : f32 to vector<1x128xf32>
    %18 = arith.addf %15, %17 : vector<1x128xf32>
    %19 = math.rsqrt %18 : vector<1x128xf32>
    %20 = arith.mulf %16, %19 : vector<1x128xf32>
    %c1 = arith.constant 1 : index
    %c0_11 = arith.constant 0 : index
    %21 = vector.load %arg3[%c1, %c0_11] : memref<8x128xf32, #tpu.memory_space<vmem>>, vector<1x128xf32>
    %22 = arith.mulf %9, %20 : vector<1x128xf32>
    %23 = arith.subf %21, %22 : vector<1x128xf32>
    %24 = vector.broadcast %20 : vector<1x128xf32> to vector<112x128xf32>
    %25 = arith.mulf %2, %24 : vector<112x128xf32>
    %26 = vector.broadcast %23 : vector<1x128xf32> to vector<112x128xf32>
    %27 = arith.addf %25, %26 : vector<112x128xf32>
    %cst_12 = arith.constant 0.000000e+00 : f32
    %28 = vector.broadcast %cst_12 : f32 to vector<112x128xf32>
    %29 = arith.cmpf oge, %27, %28 : vector<112x128xf32>
    %cst_13 = arith.constant 2.000000e-01 : f32
    %30 = vector.broadcast %cst_13 : f32 to vector<112x128xf32>
    %31 = arith.mulf %30, %27 : vector<112x128xf32>
    %32 = arith.select %29, %27, %31 : vector<112x128xi1>, vector<112x128xf32>
    %33 = arith.truncf %32 : vector<112x128xf32> to vector<112x128xbf16>
    %c0_14 = arith.constant 0 : index
    %c0_15 = arith.constant 0 : index
    %34 = vector.load %arg4[%c0_14, %c0_15] : memref<112x128xbf16, #tpu.memory_space<vmem>>, vector<112x128xbf16>
    tpu.vector_store %arg4[%c0_14, %c0_15], %33 {strides = array<i32>} : memref<112x128xbf16, #tpu.memory_space<vmem>>, vector<112x128xbf16>,
    return
  }
  func.func @transform_0(%arg0: i32) -> (i32, i32) {
    %c0_i32 = arith.constant 0 : i32
    %c0_i32_0 = arith.constant 0 : i32
    %c0_i32_1 = arith.constant 0 : i32
    return %c0_i32, %c0_i32_0 : i32, i32
  }
  func.func @transform_1(%arg0: i32) -> (i32, i32) {
    %c0_i32 = arith.constant 0 : i32
    %c0_i32_0 = arith.constant 0 : i32
    %c0_i32_1 = arith.constant 0 : i32
    return %c0_i32, %c0_i32_0 : i32, i32
  }
  func.func @transform_2(%arg0: i32) -> (i32, i32) {
    %c0_i32 = arith.constant 0 : i32
    %c0_i32_0 = arith.constant 0 : i32
    %c0_i32_1 = arith.constant 0 : i32
    return %c0_i32, %c0_i32_0 : i32, i32
  }
  func.func @transform_3(%arg0: i32) -> (i32, i32) {
    %c0_i32 = arith.constant 0 : i32
    %c0_i32_0 = arith.constant 0 : i32
    %c0_i32_1 = arith.constant 0 : i32
    return %c0_i32, %c0_i32_0 : i32, i32
  }
}

module attributes {stable_mosaic.version = 11 : i64} {
  func.func @_fused_bn_kernel(%arg0: i32, %arg1: memref<32x896xbf16, #tpu.memory_space<vmem>>, %arg2: memref<896x128xbf16, #tpu.memory_space<vmem>>, %arg3: memref<8x128xf32, #tpu.memory_space<vmem>>, %arg4: memref<32x128xbf16, #tpu.memory_space<vmem>>) attributes {dimension_semantics = [#tpu.dimension_semantics<arbitrary>], iteration_bounds = array<i64: 1>, scalar_prefetch = 0 : i64, scratch_operands = 0 : i64, tpu.core_type = #tpu.core_type<tc>, window_params = [{pipeline_mode = #tpu.pipeline_mode<synchronous>, transform_indices = @transform_0, window_bounds = array<i64: 32, 896>}, {pipeline_mode = #tpu.pipeline_mode<synchronous>, transform_indices = @transform_1, window_bounds = array<i64: 896, 128>}, {pipeline_mode = #tpu.pipeline_mode<synchronous>, transform_indices = @transform_2, window_bounds = array<i64: 8, 128>}, {pipeline_mode = #tpu.pipeline_mode<synchronous>, transform_indices = @transform_3, window_bounds = array<i64: 32, 128>}]} {
    %c0 = arith.constant 0 : index
    %c0_0 = arith.constant 0 : index
    %0 = vector.load %arg1[%c0, %c0_0] : memref<32x896xbf16, #tpu.memory_space<vmem>>, vector<32x896xbf16>
    %c0_1 = arith.constant 0 : index
    %c0_2 = arith.constant 0 : index
    %1 = vector.load %arg2[%c0_1, %c0_2] : memref<896x128xbf16, #tpu.memory_space<vmem>>, vector<896x128xbf16>
    %cst = arith.constant dense<0.000000e+00> : vector<32x128xf32>
    %2 = tpu.matmul %0, %1, %cst {dimension_numbers = #tpu.dot_dimension_numbers<[1], [0], [0], [1], [0, 0, 1, 1], [], []>} : vector<32x896xbf16>, vector<896x128xbf16>, vector<32x128xf32> -> vector<32x128xf32>
    %cst_3 = arith.constant dense<0.000000e+00> : vector<128xf32>
    %3 = vector.multi_reduction <add>, %2, %cst_3 [0] : vector<32x128xf32> to vector<128xf32>
    %4 = vector.shape_cast %3 : vector<128xf32> to vector<1x128xf32>
    %5 = arith.mulf %2, %2 : vector<32x128xf32>
    %cst_4 = arith.constant dense<0.000000e+00> : vector<128xf32>
    %6 = vector.multi_reduction <add>, %5, %cst_4 [0] : vector<32x128xf32> to vector<128xf32>
    %7 = vector.shape_cast %6 : vector<128xf32> to vector<1x128xf32>
    %cst_5 = arith.constant 3.200000e+01 : f32
    %8 = vector.broadcast %cst_5 : f32 to vector<1x128xf32>
    %9 = arith.divf %4, %8 : vector<1x128xf32>
    %cst_6 = arith.constant 3.200000e+01 : f32
    %10 = vector.broadcast %cst_6 : f32 to vector<1x128xf32>
    %11 = arith.divf %7, %10 : vector<1x128xf32>
    %12 = arith.mulf %9, %9 : vector<1x128xf32>
    %13 = arith.subf %11, %12 : vector<1x128xf32>
    %cst_7 = arith.constant 0.000000e+00 : f32
    %14 = vector.broadcast %cst_7 : f32 to vector<1x128xf32>
    %15 = arith.maximumf %13, %14 : vector<1x128xf32>
    %c0_8 = arith.constant 0 : index
    %c0_9 = arith.constant 0 : index
    %16 = vector.load %arg3[%c0_8, %c0_9] : memref<8x128xf32, #tpu.memory_space<vmem>>, vector<1x128xf32>
    %cst_10 = arith.constant 9.99999974E-6 : f32
    %17 = vector.broadcast %cst_10 : f32 to vector<1x128xf32>
    %18 = arith.addf %15, %17 : vector<1x128xf32>
    %19 = math.rsqrt %18 : vector<1x128xf32>
    %20 = arith.mulf %16, %19 : vector<1x128xf32>
    %c1 = arith.constant 1 : index
    %c0_11 = arith.constant 0 : index
    %21 = vector.load %arg3[%c1, %c0_11] : memref<8x128xf32, #tpu.memory_space<vmem>>, vector<1x128xf32>
    %22 = arith.mulf %9, %20 : vector<1x128xf32>
    %23 = arith.subf %21, %22 : vector<1x128xf32>
    %24 = vector.broadcast %20 : vector<1x128xf32> to vector<32x128xf32>
    %25 = arith.mulf %2, %24 : vector<32x128xf32>
    %26 = vector.broadcast %23 : vector<1x128xf32> to vector<32x128xf32>
    %27 = arith.addf %25, %26 : vector<32x128xf32>
    %cst_12 = arith.constant 0.000000e+00 : f32
    %28 = vector.broadcast %cst_12 : f32 to vector<32x128xf32>
    %29 = arith.cmpf oge, %27, %28 : vector<32x128xf32>
    %cst_13 = arith.constant 2.000000e-01 : f32
    %30 = vector.broadcast %cst_13 : f32 to vector<32x128xf32>
    %31 = arith.mulf %30, %27 : vector<32x128xf32>
    %32 = arith.select %29, %27, %31 : vector<32x128xi1>, vector<32x128xf32>
    %33 = arith.truncf %32 : vector<32x128xf32> to vector<32x128xbf16>
    %c0_14 = arith.constant 0 : index
    %c0_15 = arith.constant 0 : index
    %34 = vector.load %arg4[%c0_14, %c0_15] : memref<32x128xbf16, #tpu.memory_space<vmem>>, vector<32x128xbf16>
    tpu.vector_store %arg4[%c0_14, %c0_15], %33 {strides = array<i32>} : memref<32x128xbf16, #tpu.memory_space<vmem>>, vector<32x128xbf16>,
    return
  }
  func.func @transform_0(%arg0: i32) -> (i32, i32) {
    %c0_i32 = arith.constant 0 : i32
    %c0_i32_0 = arith.constant 0 : i32
    %c0_i32_1 = arith.constant 0 : i32
    return %c0_i32, %c0_i32_0 : i32, i32
  }
  func.func @transform_1(%arg0: i32) -> (i32, i32) {
    %c0_i32 = arith.constant 0 : i32
    %c0_i32_0 = arith.constant 0 : i32
    %c0_i32_1 = arith.constant 0 : i32
    return %c0_i32, %c0_i32_0 : i32, i32
  }
  func.func @transform_2(%arg0: i32) -> (i32, i32) {
    %c0_i32 = arith.constant 0 : i32
    %c0_i32_0 = arith.constant 0 : i32
    %c0_i32_1 = arith.constant 0 : i32
    return %c0_i32, %c0_i32_0 : i32, i32
  }
  func.func @transform_3(%arg0: i32) -> (i32, i32) {
    %c0_i32 = arith.constant 0 : i32
    %c0_i32_0 = arith.constant 0 : i32
    %c0_i32_1 = arith.constant 0 : i32
    return %c0_i32, %c0_i32_0 : i32, i32
  }
}

module attributes {stable_mosaic.version = 11 : i64} {
  func.func @_mm_bias_act_kernel(%arg0: i32, %arg1: memref<16x1664xbf16, #tpu.memory_space<vmem>>, %arg2: memref<1664x128xbf16, #tpu.memory_space<vmem>>, %arg3: memref<8x128xf32, #tpu.memory_space<vmem>>, %arg4: memref<16x128xbf16, #tpu.memory_space<vmem>>) attributes {dimension_semantics = [#tpu.dimension_semantics<parallel>], iteration_bounds = array<i64: 1>, scalar_prefetch = 0 : i64, scratch_operands = 0 : i64, tpu.core_type = #tpu.core_type<tc>, window_params = [{transform_indices = @transform_0, window_bounds = array<i64: 16, 1664>}, {pipeline_mode = #tpu.pipeline_mode<synchronous>, transform_indices = @transform_1, window_bounds = array<i64: 1664, 128>}, {pipeline_mode = #tpu.pipeline_mode<synchronous>, transform_indices = @transform_2, window_bounds = array<i64: 8, 128>}, {transform_indices = @transform_3, window_bounds = array<i64: 16, 128>}]} {
    %c0 = arith.constant 0 : index
    %c0_0 = arith.constant 0 : index
    %0 = vector.load %arg1[%c0, %c0_0] : memref<16x1664xbf16, #tpu.memory_space<vmem>>, vector<16x1664xbf16>
    %c0_1 = arith.constant 0 : index
    %c0_2 = arith.constant 0 : index
    %1 = vector.load %arg2[%c0_1, %c0_2] : memref<1664x128xbf16, #tpu.memory_space<vmem>>, vector<1664x128xbf16>
    %cst = arith.constant dense<0.000000e+00> : vector<16x128xf32>
    %2 = tpu.matmul %0, %1, %cst {dimension_numbers = #tpu.dot_dimension_numbers<[1], [0], [0], [1], [0, 0, 1, 1], [], []>} : vector<16x1664xbf16>, vector<1664x128xbf16>, vector<16x128xf32> -> vector<16x128xf32>
    %c0_3 = arith.constant 0 : index
    %c0_4 = arith.constant 0 : index
    %3 = vector.load %arg3[%c0_3, %c0_4] : memref<8x128xf32, #tpu.memory_space<vmem>>, vector<1x128xf32>
    %4 = vector.broadcast %3 : vector<1x128xf32> to vector<16x128xf32>
    %5 = arith.addf %2, %4 : vector<16x128xf32>
    %cst_5 = arith.constant 0.000000e+00 : f32
    %6 = vector.broadcast %cst_5 : f32 to vector<16x128xf32>
    %7 = arith.cmpf oge, %5, %6 : vector<16x128xf32>
    %cst_6 = arith.constant 2.000000e-01 : f32
    %8 = vector.broadcast %cst_6 : f32 to vector<16x128xf32>
    %9 = arith.mulf %8, %5 : vector<16x128xf32>
    %10 = arith.select %7, %5, %9 : vector<16x128xi1>, vector<16x128xf32>
    %11 = arith.truncf %10 : vector<16x128xf32> to vector<16x128xbf16>
    %c0_7 = arith.constant 0 : index
    %c0_8 = arith.constant 0 : index
    %12 = vector.load %arg4[%c0_7, %c0_8] : memref<16x128xbf16, #tpu.memory_space<vmem>>, vector<16x128xbf16>
    tpu.vector_store %arg4[%c0_7, %c0_8], %11 {strides = array<i32>} : memref<16x128xbf16, #tpu.memory_space<vmem>>, vector<16x128xbf16>,
    return
  }
  func.func @transform_0(%arg0: i32) -> (i32, i32) {
    %c0_i32 = arith.constant 0 : i32
    %c0_i32_0 = arith.constant 0 : i32
    return %arg0, %c0_i32 : i32, i32
  }
  func.func @transform_1(%arg0: i32) -> (i32, i32) {
    %c0_i32 = arith.constant 0 : i32
    %c0_i32_0 = arith.constant 0 : i32
    %c0_i32_1 = arith.constant 0 : i32
    return %c0_i32, %c0_i32_0 : i32, i32
  }
  func.func @transform_2(%arg0: i32) -> (i32, i32) {
    %c0_i32 = arith.constant 0 : i32
    %c0_i32_0 = arith.constant 0 : i32
    %c0_i32_1 = arith.constant 0 : i32
    return %c0_i32, %c0_i32_0 : i32, i32
  }
  func.func @transform_3(%arg0: i32) -> (i32, i32) {
    %c0_i32 = arith.constant 0 : i32
    %c0_i32_0 = arith.constant 0 : i32
    return %arg0, %c0_i32 : i32, i32
  }
}

module attributes {stable_mosaic.version = 11 : i64} {
  func.func @_mm_bias_act_kernel(%arg0: i32, %arg1: memref<16x512xbf16, #tpu.memory_space<vmem>>, %arg2: memref<512x128xbf16, #tpu.memory_space<vmem>>, %arg3: memref<8x128xf32, #tpu.memory_space<vmem>>, %arg4: memref<16x128xf32, #tpu.memory_space<vmem>>) attributes {dimension_semantics = [#tpu.dimension_semantics<parallel>], iteration_bounds = array<i64: 1>, scalar_prefetch = 0 : i64, scratch_operands = 0 : i64, tpu.core_type = #tpu.core_type<tc>, window_params = [{transform_indices = @transform_0, window_bounds = array<i64: 16, 512>}, {pipeline_mode = #tpu.pipeline_mode<synchronous>, transform_indices = @transform_1, window_bounds = array<i64: 512, 128>}, {pipeline_mode = #tpu.pipeline_mode<synchronous>, transform_indices = @transform_2, window_bounds = array<i64: 8, 128>}, {transform_indices = @transform_3, window_bounds = array<i64: 16, 128>}]} {
    %c0 = arith.constant 0 : index
    %c0_0 = arith.constant 0 : index
    %0 = vector.load %arg1[%c0, %c0_0] : memref<16x512xbf16, #tpu.memory_space<vmem>>, vector<16x512xbf16>
    %c0_1 = arith.constant 0 : index
    %c0_2 = arith.constant 0 : index
    %1 = vector.load %arg2[%c0_1, %c0_2] : memref<512x128xbf16, #tpu.memory_space<vmem>>, vector<512x128xbf16>
    %cst = arith.constant dense<0.000000e+00> : vector<16x128xf32>
    %2 = tpu.matmul %0, %1, %cst {dimension_numbers = #tpu.dot_dimension_numbers<[1], [0], [0], [1], [0, 0, 1, 1], [], []>} : vector<16x512xbf16>, vector<512x128xbf16>, vector<16x128xf32> -> vector<16x128xf32>
    %c0_3 = arith.constant 0 : index
    %c0_4 = arith.constant 0 : index
    %3 = vector.load %arg3[%c0_3, %c0_4] : memref<8x128xf32, #tpu.memory_space<vmem>>, vector<1x128xf32>
    %4 = vector.broadcast %3 : vector<1x128xf32> to vector<16x128xf32>
    %5 = arith.addf %2, %4 : vector<16x128xf32>
    %6 = arith.negf %5 : vector<16x128xf32>
    %7 = math.exp %6 : vector<16x128xf32>
    %cst_5 = arith.constant 1.000000e+00 : f32
    %8 = vector.broadcast %cst_5 : f32 to vector<16x128xf32>
    %9 = arith.addf %8, %7 : vector<16x128xf32>
    %10 = arith.divf %8, %9 : vector<16x128xf32>
    %c0_6 = arith.constant 0 : index
    %c0_7 = arith.constant 0 : index
    %11 = vector.load %arg4[%c0_6, %c0_7] : memref<16x128xf32, #tpu.memory_space<vmem>>, vector<16x128xf32>
    tpu.vector_store %arg4[%c0_6, %c0_7], %10 {strides = array<i32>} : memref<16x128xf32, #tpu.memory_space<vmem>>, vector<16x128xf32>,
    return
  }
  func.func @transform_0(%arg0: i32) -> (i32, i32) {
    %c0_i32 = arith.constant 0 : i32
    %c0_i32_0 = arith.constant 0 : i32
    return %arg0, %c0_i32 : i32, i32
  }
  func.func @transform_1(%arg0: i32) -> (i32, i32) {
    %c0_i32 = arith.constant 0 : i32
    %c0_i32_0 = arith.constant 0 : i32
    %c0_i32_1 = arith.constant 0 : i32
    return %c0_i32, %c0_i32_0 : i32, i32
  }
  func.func @transform_2(%arg0: i32) -> (i32, i32) {
    %c0_i32 = arith.constant 0 : i32
    %c0_i32_0 = arith.constant 0 : i32
    %c0_i32_1 = arith.constant 0 : i32
    return %c0_i32, %c0_i32_0 : i32, i32
  }
  func.func @transform_3(%arg0: i32) -> (i32, i32) {
    %c0_i32 = arith.constant 0 : i32
    %c0_i32_0 = arith.constant 0 : i32
    return %arg0, %c0_i32 : i32, i32
  }
}

</mosaic_0001>

<bundles_post_ra>
// kernel: discriminator_forward.5
= control target key start
LH: loop header
LB: loop body
LE: loop exit
PB: predicated region body
PF: predicated region fallthrough
CT: control target
= control target key end

     0   :  { %v1681_v0 = vmov 0.0   ;;  %vm1682_vm0 = vmmov 0   ;;  %s2747_s1 = inlined_call_operand.vmem [shape: bf16[128,128], index: 1, kind: input, shape index: {}]   ;;  %s2748_s0 = inlined_call_operand.vmem [shape: bf16[400,128], index: 0, kind: input, shape index: {}]   ;;  %s2749_s2 = inlined_call_operand.vmem [shape: f32[8,128], index: 2, kind: input, shape index: {}]   ;;  %s2750_s3 = inlined_call_operand.vmem [shape: bf16[400,128], index: 3, kind: output, shape index: {}]  }
   0x1   :  { %1512 = vmatprep.subr.bf16.mxu0 %v1681_v0  ;;  %v1646_v1 = vld [vmem:[%s2747_s1 + $0x38] sm:$0xff]   ;;  %1528 = vmatprep.mubr.msk.bf16.mxu0 %vm1682_vm0, %v1681_v0  ;;  %v1647_v2 = vld [vmem:[%s2747_s1 + $0x30] sm:$0xff]   ;;  %v1648_v3 = vld [vmem:[%s2747_s1 + $0x28] sm:$0xff]  }
   0x2   :  { %1628 = vmatprep.subr.bf16.mxu1 %v1681_v0  ;;  %1580 = vmatprep.mubr.msk.bf16.mxu1 %vm1682_vm0, %v1681_v0  ;;  %v1649_v4 = vld [vmem:[%s2747_s1 + $0x20] sm:$0xff]   ;;  %v1650_v5 = vld [vmem:[%s2747_s1 + $0x18] sm:$0xff]   ;;  %v1651_v6 = vld [vmem:[%s2747_s1 + $0x10] sm:$0xff]  }
   0x3   :  { %1513 = vmatpush3.bf16.msra.mxu0 %v1646_v1  ;;  %1636 = vmatpush3.bf16.msra.mxu1 %v1646_v1  ;;  %v1652_v7 = vld [vmem:[%s2747_s1 + $0x8] sm:$0xff]   ;;  %v1653_v8 = vld [vmem:[%s2747_s1] sm:$0xff]   ;;  %v1663_v12 = vld [vmem:[%s2748_s0 + $0x70] sm:$0xff]  }
   0x4   :  { %1514 = vmatprep.subr.bf16.mxu0 %v1681_v0  ;;  %1629 = vmatprep.subr.bf16.mxu1 %v1681_v0  ;;  %v1654_v9 = vld [vmem:[%s2748_s0] sm:$0xff]   ;;  %v1661_v10 = vld [vmem:[%s2748_s0 + $0x68] sm:$0xff]   ;;  %v1656_v13 = vld [vmem:[%s2748_s0 + $0x10] sm:$0xff]  }
   0x5   :  { %v1655_v11 = vld [vmem:[%s2748_s0 + $0x8] sm:$0xff]   ;;  %v1665_v14 = vld [vmem:[%s2748_s0 + $0x78] sm:$0xff]   ;;  %v1667_v16 = vld [vmem:[%s2748_s0 + $0x80] sm:$0xff]  }
   0x6   :  { %v1657_v15 = vld [vmem:[%s2748_s0 + $0x18] sm:$0xff]   ;;  %v1658_v17 = vld [vmem:[%s2748_s0 + $0x20] sm:$0xff]   ;;  %v1669_v18 = vld [vmem:[%s2748_s0 + $0x88] sm:$0xff]  }
   0x7   :  { %1515 = vmatpush3.bf16.msra.mxu0 %v1647_v2  ;;  %1637 = vmatpush3.bf16.msra.mxu1 %v1647_v2  ;;  %v1659_v19 = vld [vmem:[%s2748_s0 + $0x28] sm:$0xff]   ;;  %v1671_v20 = vld [vmem:[%s2748_s0 + $0x90] sm:$0xff]   ;;  %v1673_v22 = vld [vmem:[%s2748_s0 + $0x98] sm:$0xff]  }
   0x8   :  { %1516 = vmatprep.subr.bf16.mxu0 %v1681_v0  ;;  %1630 = vmatprep.subr.bf16.mxu1 %v1681_v0  ;;  %v1660_v21 = vld [vmem:[%s2748_s0 + $0x30] sm:$0xff]   ;;  %v1662_v23 = vld [vmem:[%s2748_s0 + $0x38] sm:$0xff]   ;;  %v1674_v24 = vld [vmem:[%s2748_s0 + $0xa0] sm:$0xff]  }
   0x9   :  { %v1664_v25 = vld [vmem:[%s2748_s0 + $0x40] sm:$0xff]   ;;  %v1675_v26 = vld [vmem:[%s2748_s0 + $0xa8] sm:$0xff]   ;;  %v1676_v28 = vld [vmem:[%s2748_s0 + $0xb0] sm:$0xff]  }
   0xa   :  { %v1666_v27 = vld [vmem:[%s2748_s0 + $0x48] sm:$0xff]   ;;  %v1668_v29 = vld [vmem:[%s2748_s0 + $0x50] sm:$0xff]   ;;  %v1677_v30 = vld [vmem:[%s2748_s0 + $0xb8] sm:$0xff]  }
   0xb   :  { %1517 = vmatpush3.bf16.msra.mxu0 %v1648_v3  ;;  %1638 = vmatpush3.bf16.msra.mxu1 %v1648_v3  ;;  %v1670_v31 = vld [vmem:[%s2748_s0 + $0x58] sm:$0xff]   ;;  %v1678_v32 = vld [vmem:[%s2748_s0 + $0xc0] sm:$0xff]  }
   0xc   :  { %1518 = vmatprep.subr.bf16.mxu0 %v1681_v0  ;;  %1631 = vmatprep.subr.bf16.mxu1 %v1681_v0  ;;  %v1672_v33 = vld [vmem:[%s2748_s0 + $0x60] sm:$0xff]  }
   0xf   :  { %1519 = vmatpush3.bf16.msra.mxu0 %v1649_v4  ;;  %1639 = vmatpush3.bf16.msra.mxu1 %v1649_v4 }
  0x10   :  { %1520 = vmatprep.subr.bf16.mxu0 %v1681_v0  ;;  %1632 = vmatprep.subr.bf16.mxu1 %v1681_v0 }
  0x13   :  { %1521 = vmatpush3.bf16.msra.mxu0 %v1650_v5  ;;  %1640 = vmatpush3.bf16.msra.mxu1 %v1650_v5 }
  0x14   :  { %1522 = vmatprep.subr.bf16.mxu0 %v1681_v0  ;;  %1633 = vmatprep.subr.bf16.mxu1 %v1681_v0 }
  0x17   :  { %1523 = vmatpush3.bf16.msra.mxu0 %v1651_v6  ;;  %1641 = vmatpush3.bf16.msra.mxu1 %v1651_v6 }
  0x18   :  { %1524 = vmatprep.subr.bf16.mxu0 %v1681_v0  ;;  %1634 = vmatprep.subr.bf16.mxu1 %v1681_v0 }
  0x1b   :  { %1525 = vmatpush3.bf16.msra.mxu0 %v1652_v7  ;;  %1642 = vmatpush3.bf16.msra.mxu1 %v1652_v7 }
  0x1c   :  { %1526 = vmatprep.subr.bf16.mxu0 %v1681_v0  ;;  %1635 = vmatprep.subr.bf16.mxu1 %v1681_v0 }
  0x1f   :  { %1527 = vmatpush3.bf16.msra.mxu0 %v1653_v8  ;;  %1643 = vmatpush3.bf16.msra.mxu1 %v1653_v8 }
  0x22   :  { %1529 = vmatmul.mubr.bf16.vlgmr.msra.gmra.mxu0 %v1654_v9  ;;  %1581 = vmatmul.mubr.bf16.vlgmr.msra.gmra.mxu1 %v1661_v10 }
  0x23   :  { %1532 = vmatprep.mubr.msk.bf16.mxu0 %vm1682_vm0, %v1681_v0  ;;  %1584 = vmatprep.mubr.msk.bf16.mxu1 %vm1682_vm0, %v1681_v0 }
  0x2a   :  { %1533 = vmatmul.mubr.bf16.gmra.mxu0 %v1655_v11  ;;  %1585 = vmatmul.mubr.bf16.gmra.mxu1 %v1663_v12 }
  0x2b   :  { %1536 = vmatprep.mubr.msk.bf16.mxu0 %vm1682_vm0, %v1681_v0  ;;  %1588 = vmatprep.mubr.msk.bf16.mxu1 %vm1682_vm0, %v1681_v0 }
  0x32   :  { %1537 = vmatmul.mubr.bf16.gmra.mxu0 %v1656_v13  ;;  %1589 = vmatmul.mubr.bf16.gmra.mxu1 %v1665_v14 }
  0x33   :  { %1540 = vmatprep.mubr.msk.bf16.mxu0 %vm1682_vm0, %v1681_v0  ;;  %1592 = vmatprep.mubr.msk.bf16.mxu1 %vm1682_vm0, %v1681_v0 }
  0x3a   :  { %1541 = vmatmul.mubr.bf16.gmra.mxu0 %v1657_v15  ;;  %1593 = vmatmul.mubr.bf16.gmra.mxu1 %v1667_v16 }
  0x3b   :  { %1544 = vmatprep.mubr.msk.bf16.mxu0 %vm1682_vm0, %v1681_v0  ;;  %1596 = vmatprep.mubr.msk.bf16.mxu1 %vm1682_vm0, %v1681_v0 }
  0x42   :  { %1545 = vmatmul.mubr.bf16.gmra.mxu0 %v1658_v17  ;;  %1597 = vmatmul.mubr.bf16.gmra.mxu1 %v1669_v18 }
  0x43   :  { %1548 = vmatprep.mubr.msk.bf16.mxu0 %vm1682_vm0, %v1681_v0  ;;  %1600 = vmatprep.mubr.msk.bf16.mxu1 %vm1682_vm0, %v1681_v0 }
  0x4a   :  { %1549 = vmatmul.mubr.bf16.gmra.mxu0 %v1659_v19  ;;  %1601 = vmatmul.mubr.bf16.gmra.mxu1 %v1671_v20 }
  0x4b   :  { %1552 = vmatprep.mubr.msk.bf16.mxu0 %vm1682_vm0, %v1681_v0  ;;  %1604 = vmatprep.mubr.msk.bf16.mxu1 %vm1682_vm0, %v1681_v0 }
  0x52   :  { %1553 = vmatmul.mubr.bf16.gmra.mxu0 %v1660_v21  ;;  %1605 = vmatmul.mubr.bf16.gmra.mxu1 %v1673_v22 }
  0x53   :  { %1556 = vmatprep.mubr.msk.bf16.mxu0 %vm1682_vm0, %v1681_v0  ;;  %1608 = vmatprep.mubr.msk.bf16.mxu1 %vm1682_vm0, %v1681_v0 }
  0x5a   :  { %1557 = vmatmul.mubr.bf16.gmra.mxu0 %v1662_v23  ;;  %1609 = vmatmul.mubr.bf16.gmra.mxu1 %v1674_v24 }
  0x5b   :  { %1560 = vmatprep.mubr.msk.bf16.mxu0 %vm1682_vm0, %v1681_v0  ;;  %1612 = vmatprep.mubr.msk.bf16.mxu1 %vm1682_vm0, %v1681_v0 }
  0x62   :  { %1561 = vmatmul.mubr.bf16.gmra.mxu0 %v1664_v25  ;;  %1613 = vmatmul.mubr.bf16.gmra.mxu1 %v1675_v26 }
  0x63   :  { %1564 = vmatprep.mubr.msk.bf16.mxu0 %vm1682_vm0, %v1681_v0  ;;  %1616 = vmatprep.mubr.msk.bf16.mxu1 %vm1682_vm0, %v1681_v0 }
  0x6a   :  { %1565 = vmatmul.mubr.bf16.gmra.mxu0 %v1666_v27  ;;  %1617 = vmatmul.mubr.bf16.gmra.mxu1 %v1676_v28 }
  0x6b   :  { %1568 = vmatprep.mubr.msk.bf16.mxu0 %vm1682_vm0, %v1681_v0  ;;  %1620 = vmatprep.mubr.msk.bf16.mxu1 %vm1682_vm0, %v1681_v0 }
  0x72   :  { %1569 = vmatmul.mubr.bf16.gmra.mxu0 %v1668_v29  ;;  %1621 = vmatmul.mubr.bf16.gmra.mxu1 %v1677_v30 }
  0x73   :  { %1572 = vmatprep.mubr.msk.bf16.mxu0 %vm1682_vm0, %v1681_v0  ;;  %1624 = vmatprep.mubr.msk.bf16.mxu1 %vm1682_vm0, %v1681_v0 }
  0x7a   :  { %1573 = vmatmul.mubr.bf16.gmra.mxu0 %v1670_v31  ;;  %1625 = vmatmul.mubr.bf16.gmra.mxu1 %v1678_v32 }
  0x7b   :  { %1576 = vmatprep.mubr.msk.bf16.mxu0 %vm1682_vm0, %v1681_v0 }
  0x82   :  { %1577 = vmatmul.mubr.bf16.gmra.mxu0 %v1672_v33 }
  0xe2   :  { %v1868_v34 = vpop.f32.mrf.mxu0  ;;  %v1870_v35 = vpop.f32.mrf.mxu1 }
  0xe3   :  { %v567_v25 = vmul.f32 %v1868_v34, %v1868_v34 }
  0xe4   :  { %v1530_v36 = vpop.f32.mrf.mxu0  ;;  %v1582_v37 = vpop.f32.mrf.mxu1 }
  0xe6   :  { %v1872_v38 = vpop.f32.mrf.mxu0  ;;  %v1874_v39 = vpop.f32.mrf.mxu1 }
  0xe7   :  { %v568_v22 = vmul.f32 %v1872_v38, %v1872_v38  ;;  %v512_v26 = vadd.f32 %v1872_v38, %v1868_v34 }
  0xe8   :  { %v1531_v40 = vpop.f32.mrf.mxu0  ;;  %v1583_v41 = vpop.f32.mrf.mxu1 }
  0xe9   :  { %v617_v30 = vadd.f32 %v568_v22, %v567_v25 }
  0xea   :  { %v1876_v42 = vpop.f32.mrf.mxu0  ;;  %v1878_v43 = vpop.f32.mrf.mxu1 }
  0xeb   :  { %v569_v27 = vmul.f32 %v1876_v42, %v1876_v42  ;;  %v513_v31 = vadd.f32 %v512_v26, %v1876_v42 }
  0xec   :  { %v1534_v44 = vpop.f32.mrf.mxu0  ;;  %v1586_v45 = vpop.f32.mrf.mxu1 }
  0xed   :  { %v618_v37 = vadd.f32 %v617_v30, %v569_v27 }
  0xee   :  { %v1880_v46 = vpop.f32.mrf.mxu0  ;;  %v1882_v47 = vpop.f32.mrf.mxu1 }
  0xef   :  { %v570_v32 = vmul.f32 %v1880_v46, %v1880_v46  ;;  %v514_v40 = vadd.f32 %v513_v31, %v1880_v46 }
  0xf0   :  { %v1535_v48 = vpop.f32.mrf.mxu0  ;;  %v1587_v49 = vpop.f32.mrf.mxu1 }
  0xf1   :  { %v619_v48 = vadd.f32 %v618_v37, %v570_v32 }
  0xf2   :  { %v1884_v50 = vpop.f32.mrf.mxu0  ;;  %v1886_v51 = vpop.f32.mrf.mxu1 }
  0xf3   :  { %v571_v41 = vmul.f32 %v1884_v50, %v1884_v50  ;;  %v515_v49 = vadd.f32 %v514_v40, %v1884_v50 }
  0xf4   :  { %v1538_v52 = vpop.f32.mrf.mxu0  ;;  %v1590_v53 = vpop.f32.mrf.mxu1 }
  0xf6   :  { %v1888_v54 = vpop.f32.mrf.mxu0  ;;  %v1890_v55 = vpop.f32.mrf.mxu1 }
  0xf7   :  { %v572_v52 = vmul.f32 %v1888_v54, %v1888_v54 }
  0xf8   :  { %v1539_v56 = vpop.f32.mrf.mxu0  ;;  %v1591_v57 = vpop.f32.mrf.mxu1 }
  0xf9   :  { %v620_v57 = vadd.f32 %v619_v48, %v571_v41 }
  0xfa   :  { %v1892_v58 = vpop.f32.mrf.mxu0  ;;  %v1894_v59 = vpop.f32.mrf.mxu1 }
  0xfc   :  { %v1542_v60 = vpop.f32.mrf.mxu0  ;;  %v1594_v61 = vpop.f32.mrf.mxu1 }
  0xfd   :  { %v516_v60 = vadd.f32 %v515_v49, %v1888_v54  ;;  %v573_v61 = vmul.f32 %v1892_v58, %v1892_v58 }
  0xfe   :  { %v1896_v62 = vpop.f32.mrf.mxu0  ;;  %v1898_v63 = vpop.f32.mrf.mxu1 }
 0x100   :  { %v1543_v0 = vpop.f32.mrf.mxu0  ;;  %v1595_v1 = vpop.f32.mrf.mxu1 }
 0x102   :  { %v1900_v2 = vpop.f32.mrf.mxu0  ;;  %v1902_v3 = vpop.f32.mrf.mxu1 }
 0x104   :  { %v1546_v4 = vpop.f32.mrf.mxu0  ;;  %v1598_v5 = vpop.f32.mrf.mxu1 }
 0x105   :  { %v621_v4 = vadd.f32 %v620_v57, %v572_v52  ;;  %v517_v5 = vadd.f32 %v516_v60, %v1892_v58 }
 0x106   :  { %v1904_v6 = vpop.f32.mrf.mxu0  ;;  %v1906_v7 = vpop.f32.mrf.mxu1 }
 0x107   :  { %v576_v26 = vmul.f32 %v1904_v6, %v1904_v6 }
 0x108   :  { %v1547_v8 = vpop.f32.mrf.mxu0  ;;  %v1599_v9 = vpop.f32.mrf.mxu1 }
 0x109   :  { %v574_v8 = vmul.f32 %v1896_v62, %v1896_v62 }
 0x10a   :  { %v1908_v10 = vpop.f32.mrf.mxu0  ;;  %v1910_v11 = vpop.f32.mrf.mxu1 }
 0x10b   :  { %v577_v31 = vmul.f32 %v1908_v10, %v1908_v10 }
 0x10c   :  { %v1550_v12 = vpop.f32.mrf.mxu0  ;;  %v1602_v13 = vpop.f32.mrf.mxu1 }
 0x10d   :  { %v622_v13 = vadd.f32 %v621_v4, %v573_v61 }
 0x10e   :  { %v1912_v14 = vpop.f32.mrf.mxu0  ;;  %v1914_v15 = vpop.f32.mrf.mxu1 }
 0x10f   :  { %v623_v22 = vadd.f32 %v622_v13, %v574_v8 }
 0x110   :  { %v1551_v16 = vpop.f32.mrf.mxu0  ;;  %v1603_v17 = vpop.f32.mrf.mxu1 }
 0x111   :  { %v518_v16 = vadd.f32 %v517_v5, %v1896_v62  ;;  %v575_v17 = vmul.f32 %v1900_v2, %v1900_v2 }
 0x112   :  { %v1916_v18 = vpop.f32.mrf.mxu0  ;;  %v1918_v19 = vpop.f32.mrf.mxu1 }
 0x113   :  { %v519_v25 = vadd.f32 %v518_v16, %v1900_v2  ;;  %v579_v57 = vmul.f32 %v1916_v18, %v1916_v18 }
 0x114   :  { %v1554_v20 = vpop.f32.mrf.mxu0  ;;  %v1606_v21 = vpop.f32.mrf.mxu1 }
 0x115   :  { %v520_v30 = vadd.f32 %v519_v25, %v1904_v6 }
 0x116   :  { %v1922_v23 = vpop.f32.mrf.mxu0  ;;  %v1924_v24 = vpop.f32.mrf.mxu1 }
 0x117   :  { %v521_v41 = vadd.f32 %v520_v30, %v1908_v10  ;;  %v580_v4 = vmul.f32 %v1922_v23, %v1922_v23 }
 0x118   :  { %v1555_v28 = vpop.f32.mrf.mxu0  ;;  %v1607_v29 = vpop.f32.mrf.mxu1 }
 0x119   :  { %v624_v29 = vadd.f32 %v623_v22, %v575_v17  ;;  %v522_v52 = vadd.f32 %v521_v41, %v1912_v14 }
 0x11a   :  { %v1935_v33 = vpop.f32.mrf.mxu0  ;;  %v1937_v36 = vpop.f32.mrf.mxu1 }
 0x11b   :  { %v625_v40 = vadd.f32 %v624_v29, %v576_v26  ;;  %v581_v17 = vmul.f32 %v1935_v33, %v1935_v33 }
 0x11c   :  { %v1558_v44 = vpop.f32.mrf.mxu0  ;;  %v1610_v45 = vpop.f32.mrf.mxu1 }
 0x11d   :  { %v578_v44 = vmul.f32 %v1912_v14, %v1912_v14  ;;  %v626_v49 = vadd.f32 %v625_v40, %v577_v31 }
 0x11e   :  { %v1945_v53 = vpop.f32.mrf.mxu0  ;;  %v1947_v56 = vpop.f32.mrf.mxu1 }
 0x11f   :  { %v582_v26 = vmul.f32 %v1945_v53, %v1945_v53 }
 0x120   :  { %v1559_v0 = vpop.f32.mrf.mxu0  ;;  %v1611_v1 = vpop.f32.mrf.mxu1 }
 0x121   :  { %v627_v0 = vadd.f32 %v626_v49, %v578_v44  ;;  %v523_v1 = vadd.f32 %v522_v52, %v1916_v18 }
 0x122   :  { %v1955_v9 = vpop.f32.mrf.mxu0  ;;  %v1957_v12 = vpop.f32.mrf.mxu1 }
 0x123   :  { %2785 = vst [vmem:[#allocation2_spill] sm:$0xff] %v1957_v12  ;;  %v628_v13 = vadd.f32 %v627_v0, %v579_v57  ;;  %v524_v16 = vadd.f32 %v523_v1, %v1922_v23 }
 0x124   :  { %v1562_v20 = vpop.f32.mrf.mxu0  ;;  %v1614_v21 = vpop.f32.mrf.mxu1 }
 0x125   :  { %v629_v22 = vadd.f32 %v628_v13, %v580_v4  ;;  %v525_v25 = vadd.f32 %v524_v16, %v1935_v33 }
 0x126   :  { %v1965_v27 = vpop.f32.mrf.mxu0  ;;  %v1967_v28 = vpop.f32.mrf.mxu1 }
 0x127   :  { %2786 = vst [vmem:[#allocation3_spill] sm:$0xff] %v1967_v28  ;;  %v630_v31 = vadd.f32 %v629_v22, %v581_v17  ;;  %v584_v52 = vmul.f32 %v1965_v27, %v1965_v27 }
 0x128   :  { %v1563_v32 = vpop.f32.mrf.mxu0  ;;  %v1615_v37 = vpop.f32.mrf.mxu1 }
 0x129   :  { %v526_v32 = vadd.f32 %v525_v25, %v1945_v53  ;;  %v583_v37 = vmul.f32 %v1955_v9, %v1955_v9  ;;  %v631_v44 = vadd.f32 %v630_v31, %v582_v26 }
 0x12a   :  { %v1975_v45 = vpop.f32.mrf.mxu0  ;;  %v1977_v48 = vpop.f32.mrf.mxu1 }
 0x12b   :  { %2787 = vst [vmem:[#allocation4_spill] sm:$0xff] %v1977_v48  ;;  %v527_v49 = vadd.f32 %v526_v32, %v1955_v9  ;;  %v585_v1 = vmul.f32 %v1975_v45, %v1975_v45 }
 0x12c   :  { %v1566_v60 = vpop.f32.mrf.mxu0  ;;  %v1618_v61 = vpop.f32.mrf.mxu1 }
 0x12d   :  { %v632_v61 = vadd.f32 %v631_v44, %v583_v37  ;;  %v528_v0 = vadd.f32 %v527_v49, %v1965_v27 }
 0x12e   :  { %v1985_v5 = vpop.f32.mrf.mxu0  ;;  %v1987_v8 = vpop.f32.mrf.mxu1 }
 0x12f   :  { %2788 = vst [vmem:[#allocation5_spill] sm:$0xff] %v1987_v8  ;;  %v633_v16 = vadd.f32 %v632_v61, %v584_v52  ;;  %v529_v17 = vadd.f32 %v528_v0, %v1975_v45 }
 0x130   :  { %v1567_v20 = vpop.f32.mrf.mxu0  ;;  %v1619_v21 = vpop.f32.mrf.mxu1 }
 0x131   :  { %v586_v20 = vmul.f32 %v1985_v5, %v1985_v5  ;;  %v634_v25 = vadd.f32 %v633_v16, %v585_v1  ;;  %v530_v26 = vadd.f32 %v529_v17, %v1985_v5 }
 0x132   :  { %v1995_v29 = vpop.f32.mrf.mxu0  ;;  %v1997_v30 = vpop.f32.mrf.mxu1 }
 0x133   :  { %2789 = vst [vmem:[#allocation6_spill] sm:$0xff] %v1997_v30  ;;  %v587_v31 = vmul.f32 %v1995_v29, %v1995_v29 }
 0x134   :  { %v1570_v40 = vpop.f32.mrf.mxu0  ;;  %v1622_v41 = vpop.f32.mrf.mxu1 }
 0x135   :  { %v635_v40 = vadd.f32 %v634_v25, %v586_v20  ;;  %v531_v41 = vadd.f32 %v530_v26, %v1995_v29 }
 0x136   :  { %v2005_v57 = vpop.f32.mrf.mxu0  ;;  %v2007_v60 = vpop.f32.mrf.mxu1 }
 0x137   :  { %2790 = vst [vmem:[#allocation7_spill] sm:$0xff] %v2007_v60  ;;  %v588_v44 = vmul.f32 %v2005_v57, %v2005_v57  ;;  %v636_v61 = vadd.f32 %v635_v40, %v587_v31  ;;  %v532_v0 = vadd.f32 %v531_v41, %v2005_v57 }
 0x138   :  { %v1571_v4 = vpop.f32.mrf.mxu0  ;;  %v1623_v13 = vpop.f32.mrf.mxu1 }
 0x139   :  { %v637_v16 = vadd.f32 %v636_v61, %v588_v44 }
 0x13a   :  { %v2015_v21 = vpop.f32.mrf.mxu0  ;;  %v2017_v22 = vpop.f32.mrf.mxu1 }
 0x13b   :  { %2791 = vst [vmem:[#allocation8_spill] sm:$0xff] %v2017_v22  ;;  %v589_v1 = vmul.f32 %v2015_v21, %v2015_v21  ;;  %v533_v17 = vadd.f32 %v532_v0, %v2015_v21 }
 0x13c   :  { %v1574_v32 = vpop.f32.mrf.mxu0  ;;  %v1626_v37 = vpop.f32.mrf.mxu1 }
 0x13d   :  { %v638_v26 = vadd.f32 %v637_v16, %v589_v1  ;;  %v593_v1 = vmul.f32 %v1870_v35, %v1870_v35 }
 0x13e   :  { %v2025_v49 = vpop.f32.mrf.mxu0  ;;  %v2027_v52 = vpop.f32.mrf.mxu1 }
 0x13f   :  { %2792 = vst [vmem:[#allocation9_spill] sm:$0xff] %v2027_v52  ;;  %v590_v20 = vmul.f32 %v2025_v49, %v2025_v49  ;;  %v534_v32 = vadd.f32 %v533_v17, %v2025_v49 }
 0x140   :  { %v1575_v4 = vpop.f32.mrf.mxu0  ;;  %v1627_v13 = vpop.f32.mrf.mxu1 }
 0x141   :  { %v639_v40 = vadd.f32 %v638_v26, %v590_v20  ;;  %v594_v20 = vmul.f32 %v1874_v39, %v1874_v39 }
 0x142   :  { %v2035_v25 = vpop.f32.mrf.mxu0 }
 0x143   :  { %v591_v31 = vmul.f32 %v2035_v25, %v2035_v25  ;;  %v535_v41 = vadd.f32 %v534_v32, %v2035_v25 }
 0x144   :  { %v1578_v37 = vpop.f32.mrf.mxu0 }
 0x145   :  { %v640_v44 = vadd.f32 %v639_v40, %v591_v31  ;;  %v595_v31 = vmul.f32 %v1878_v43, %v1878_v43 }
 0x146   :  { %v2041_v4 = vpop.f32.mrf.mxu0 }
 0x147   :  { %2793 = vst [vmem:[#allocation10_spill] sm:$0xff] %v2041_v4  ;;  %v536_v61 = vadd.f32 %v535_v41, %v2041_v4  ;;  %v592_v0 = vmul.f32 %v2041_v4, %v2041_v4  ;;  %v596_v41 = vmul.f32 %v1882_v47, %v1882_v47 }
 0x148   :  { %v1579_v13 = vpop.f32.mrf.mxu0 }
 0x149   :  { %v537_v16 = vadd.f32 %v536_v61, %v1870_v35  ;;  %v641_v17 = vadd.f32 %v640_v44, %v592_v0  ;;  %v597_v44 = vmul.f32 %v1886_v51, %v1886_v51 }
 0x14b   :  { %v538_v26 = vadd.f32 %v537_v16, %v1874_v39  ;;  %v642_v32 = vadd.f32 %v641_v17, %v593_v1  ;;  %v598_v1 = vmul.f32 %v1890_v55, %v1890_v55 }
 0x14d   :  { %v539_v37 = vadd.f32 %v538_v26, %v1878_v43  ;;  %v643_v40 = vadd.f32 %v642_v32, %v594_v20  ;;  %v599_v20 = vmul.f32 %v1894_v59, %v1894_v59 }
 0x14f   :  { %v540_v13 = vadd.f32 %v539_v37, %v1882_v47  ;;  %v644_v4 = vadd.f32 %v643_v40, %v595_v31  ;;  %v600_v31 = vmul.f32 %v1898_v63, %v1898_v63 }
 0x151   :  { %v541_v61 = vadd.f32 %v540_v13, %v1886_v51  ;;  %v645_v0 = vadd.f32 %v644_v4, %v596_v41  ;;  %v601_v4 = vmul.f32 %v1902_v3, %v1902_v3 }
 0x153   :  { %v542_v16 = vadd.f32 %v541_v61, %v1890_v55  ;;  %v646_v17 = vadd.f32 %v645_v0, %v597_v44  ;;  %v602_v44 = vmul.f32 %v1906_v7, %v1906_v7 }
 0x155   :  { %v647_v26 = vadd.f32 %v646_v17, %v598_v1  ;;  %v543_v32 = vadd.f32 %v542_v16, %v1894_v59  ;;  %v603_v1 = vmul.f32 %v1910_v11, %v1910_v11 }
 0x157   :  { %v544_v37 = vadd.f32 %v543_v32, %v1898_v63  ;;  %v648_v40 = vadd.f32 %v647_v26, %v599_v20  ;;  %v604_v20 = vmul.f32 %v1914_v15, %v1914_v15 }
 0x159   :  { %v545_v41 = vadd.f32 %v544_v37, %v1902_v3  ;;  %v649_v13 = vadd.f32 %v648_v40, %v600_v31  ;;  %v605_v31 = vmul.f32 %v1918_v19, %v1918_v19 }
 0x15b   :  { %v546_v61 = vadd.f32 %v545_v41, %v1906_v7  ;;  %v650_v0 = vadd.f32 %v649_v13, %v601_v4  ;;  %v606_v41 = vmul.f32 %v1924_v24, %v1924_v24 }
 0x15d   :  { %v547_v16 = vadd.f32 %v546_v61, %v1910_v11  ;;  %v651_v17 = vadd.f32 %v650_v0, %v602_v44  ;;  %v607_v0 = vmul.f32 %v1937_v36, %v1937_v36 }
 0x15f   :  { %v548_v26 = vadd.f32 %v547_v16, %v1914_v15  ;;  %v652_v32 = vadd.f32 %v651_v17, %v603_v1  ;;  %v608_v17 = vmul.f32 %v1947_v56, %v1947_v56 }
 0x161   :  { %v549_v37 = vadd.f32 %v548_v26, %v1918_v19  ;;  %v653_v40 = vadd.f32 %v652_v32, %v604_v20  ;;  %v609_v32 = vmul.f32 %v1957_v12, %v1957_v12 }
 0x163   :  { %v550_v4 = vadd.f32 %v549_v37, %v1924_v24  ;;  %v654_v13 = vadd.f32 %v653_v40, %v605_v31  ;;  %v610_v40 = vmul.f32 %v1967_v28, %v1967_v28 }
 0x165   :  { %v655_v61 = vadd.f32 %v654_v13, %v606_v41  ;;  %v551_v44 = vadd.f32 %v550_v4, %v1937_v36  ;;  %v611_v13 = vmul.f32 %v1977_v48, %v1977_v48 }
 0x167   :  { %v656_v16 = vadd.f32 %v655_v61, %v607_v0  ;;  %v552_v1 = vadd.f32 %v551_v44, %v1947_v56  ;;  %v612_v0 = vmul.f32 %v1987_v8, %v1987_v8 }
 0x169   :  { %v657_v26 = vadd.f32 %v656_v16, %v608_v17  ;;  %v553_v20 = vadd.f32 %v552_v1, %v1957_v12  ;;  %v613_v17 = vmul.f32 %v1997_v30, %v1997_v30 }
 0x16b   :  { %v658_v37 = vadd.f32 %v657_v26, %v609_v32  ;;  %v554_v31 = vadd.f32 %v553_v20, %v1967_v28  ;;  %v614_v32 = vmul.f32 %v2007_v60, %v2007_v60 }
 0x16d   :  { %v659_v4 = vadd.f32 %v658_v37, %v610_v40  ;;  %v555_v41 = vadd.f32 %v554_v31, %v1977_v48  ;;  %v615_v40 = vmul.f32 %v2017_v22, %v2017_v22 }
 0x16f   :  { %v660_v61 = vadd.f32 %v659_v4, %v611_v13  ;;  %v556_v44 = vadd.f32 %v555_v41, %v1987_v8  ;;  %v616_v13 = vmul.f32 %v2027_v52, %v2027_v52 }
 0x171   :  { %v661_v16 = vadd.f32 %v660_v61, %v612_v0  ;;  %v557_v1 = vadd.f32 %v556_v44, %v1997_v30 }
 0x173   :  { %v662_v26 = vadd.f32 %v661_v16, %v613_v17  ;;  %v558_v20 = vadd.f32 %v557_v1, %v2007_v60 }
 0x175   :  { %v663_v37 = vadd.f32 %v662_v26, %v614_v32  ;;  %v559_v31 = vadd.f32 %v558_v20, %v2017_v22 }
 0x177   :  { %v664_v4 = vadd.f32 %v663_v37, %v615_v40  ;;  %v560_v41 = vadd.f32 %v559_v31, %v2027_v52  ;;  %v685_v52 = vlaneseq }
 0x179   :  { %v561_v61 = vrot.slane %v560_v41, 4  ;;  %v665_v44 = vadd.f32 %v664_v4, %v616_v13  ;;  %v686_v13 = vshrl.u32 %v685_v52, 7 }
 0x17b   :  { %v562_v0 = vadd.f32 %v561_v61, %v560_v41  ;;  %v666_v16 = vrot.slane %v665_v44, 4  ;;  %v678_v41 = vld [vmem:[%s2749_s2] sm:$0x1] }
 0x17d   :  { %v563_v1 = vrot.slane %v562_v0, 2  ;;  %v667_v17 = vadd.f32 %v666_v16, %v665_v44  ;;  %v687_v44 = vsub.s32 0, %v686_v13  ;;  %v2798_v13 = vld [vmem:[#allocation5_spill] sm:$0xff] }
 0x17f   :  { %v564_v30 = vadd.f32 %v563_v1, %v562_v0  ;;  %v668_v60 = vrot.slane %v667_v17, 2 }
 0x181   :  { %v565_v26 = vrot.slane %v564_v30, 1  ;;  %v669_v32 = vadd.f32 %v668_v60, %v667_v17 }
 0x183   :  { %v566_v20 = vadd.f32 %v565_v26, %v564_v30  ;;  %v670_v8 = vrot.slane %v669_v32, 1 }
 0x185   :  { %v671_v48 = vadd.f32 %v670_v8, %v669_v32  ;;  %v673_v22 = vmul.f32 0.0025510204, %v566_v20  ;;  %v682_v8 = vld [vmem:[%s2749_s2 + $0x1] sm:$0x1] }
 0x186   :  { %v2794_v20 = vld [vmem:[#allocation10_spill] sm:$0xff] }
 0x187   :  { %v674_v37 = vmul.f32 0.0025510204, %v671_v48  ;;  %v675_v40 = vmul.f32 %v673_v22, %v673_v22 }
 0x189   :  { %v676_v31 = vsub.f32 %v674_v37, %v675_v40  ;;  %v2795_v40 = vld [vmem:[#allocation2_spill] sm:$0xff] }
 0x18b   :  { %v677_v28 = vmax.f32 %v676_v31, 0.0  ;;  %v2796_v31 = vld [vmem:[#allocation3_spill] sm:$0xff] }
 0x18d   :  { %v679_v12 = vadd.f32 1e-05, %v677_v28 }
 0x18f   :  { %1679 = vrsqrt.f32 %v679_v12 }
 0x19c   :  { %v1680_v4 = vpop.eup %1679 }
 0x19d   :  { %v681_v61 = vmul.f32 %v1680_v4, %v678_v41  ;;  %v2797_v4 = vld [vmem:[#allocation4_spill] sm:$0xff] }
 0x19f   :  { %v683_v60 = vmul.f32 %v681_v61, %v673_v22  ;;  %v688_v48 = vrot.slane %v681_v61, %v687_v44  ;;  %v2799_v61 = vld [vmem:[#allocation6_spill] sm:$0xff] }
 0x1a1   :  { %v684_v30 = vsub.f32 %v682_v8, %v683_v60  ;;  %v689_v0 = vmul.f32 %v688_v48, %v1868_v34  ;;  %v690_v12 = vmul.f32 %v688_v48, %v1872_v38  ;;  %v691_v28 = vmul.f32 %v688_v48, %v1876_v42  ;;  %v2801_v60 = vld [vmem:[#allocation8_spill] sm:$0xff]  ;;  %v2802_v8 = vld [vmem:[#allocation9_spill] sm:$0xff] }
 0x1a2   :  { %v692_v16 = vmul.f32 %v688_v48, %v1880_v46  ;;  %v693_v1 = vmul.f32 %v688_v48, %v1884_v50  ;;  %v694_v52 = vmul.f32 %v688_v48, %v1888_v54  ;;  %v695_v22 = vmul.f32 %v688_v48, %v1892_v58 }
 0x1a3   :  { %v696_v17 = vmul.f32 %v688_v48, %v1896_v62  ;;  %v697_v26 = vmul.f32 %v688_v48, %v1900_v2  ;;  %v698_v32 = vmul.f32 %v688_v48, %v1904_v6  ;;  %v699_v34 = vmul.f32 %v688_v48, %v1908_v10 }
 0x1a4   :  { %v700_v38 = vmul.f32 %v688_v48, %v1912_v14  ;;  %v701_v42 = vmul.f32 %v688_v48, %v1916_v18  ;;  %v702_v46 = vmul.f32 %v688_v48, %v1922_v23  ;;  %v703_v50 = vmul.f32 %v688_v48, %v1935_v33 }
 0x1a5   :  { %v704_v54 = vmul.f32 %v688_v48, %v1945_v53  ;;  %v705_v58 = vmul.f32 %v688_v48, %v1955_v9  ;;  %v706_v62 = vmul.f32 %v688_v48, %v1965_v27  ;;  %v707_v2 = vmul.f32 %v688_v48, %v1975_v45 }
 0x1a6   :  { %v708_v6 = vmul.f32 %v688_v48, %v1985_v5  ;;  %v709_v10 = vmul.f32 %v688_v48, %v1995_v29  ;;  %v710_v14 = vmul.f32 %v688_v48, %v2005_v57  ;;  %v711_v18 = vmul.f32 %v688_v48, %v2015_v21 }
 0x1a7   :  { %v712_v23 = vmul.f32 %v688_v48, %v2025_v49  ;;  %v713_v33 = vmul.f32 %v688_v48, %v2035_v25  ;;  %v714_v53 = vmul.f32 %v688_v48, %v2794_v20  ;;  %v715_v9 = vmul.f32 %v688_v48, %v1870_v35 }
 0x1a8   :  { %v716_v27 = vmul.f32 %v688_v48, %v1874_v39  ;;  %v717_v45 = vmul.f32 %v688_v48, %v1878_v43  ;;  %v718_v5 = vmul.f32 %v688_v48, %v1882_v47  ;;  %v719_v29 = vmul.f32 %v688_v48, %v1886_v51 }
 0x1a9   :  { %v720_v57 = vmul.f32 %v688_v48, %v1890_v55  ;;  %v721_v21 = vmul.f32 %v688_v48, %v1894_v59  ;;  %v722_v49 = vmul.f32 %v688_v48, %v1898_v63  ;;  %v723_v25 = vmul.f32 %v688_v48, %v1902_v3 }
 0x1aa   :  { %v2159_v37 = vrot.slane %v684_v30, %v687_v44  ;;  %v724_v35 = vmul.f32 %v688_v48, %v1906_v7  ;;  %v725_v39 = vmul.f32 %v688_v48, %v1910_v11  ;;  %v726_v43 = vmul.f32 %v688_v48, %v1914_v15  ;;  %v2800_v44 = vld [vmem:[#allocation7_spill] sm:$0xff] }
 0x1ab   :  { %v727_v47 = vmul.f32 %v688_v48, %v1918_v19  ;;  %v728_v51 = vmul.f32 %v688_v48, %v1924_v24  ;;  %v729_v55 = vmul.f32 %v688_v48, %v1937_v36  ;;  %v730_v59 = vmul.f32 %v688_v48, %v1947_v56 }
 0x1ac   :  { %v731_v63 = vmul.f32 %v688_v48, %v2795_v40  ;;  %v732_v3 = vmul.f32 %v688_v48, %v2796_v31  ;;  %v733_v41 = vmul.f32 %v688_v48, %v2797_v4  ;;  %v734_v7 = vmul.f32 %v688_v48, %v2798_v13 }
 0x1ad   :  { %v735_v11 = vmul.f32 %v688_v48, %v2799_v61  ;;  %v736_v15 = vmul.f32 %v688_v48, %v2800_v44  ;;  %v737_v19 = vmul.f32 %v688_v48, %v2801_v60  ;;  %v2176_v24 = vmul.f32 %v688_v48, %v2802_v8 }
 0x1ae   :  { %v2179_v36 = vadd.f32 %v2159_v37, %v689_v0  ;;  %v2182_v56 = vadd.f32 %v2159_v37, %v690_v12  ;;  %v2185_v30 = vadd.f32 %v2159_v37, %v691_v28  ;;  %v2188_v20 = vadd.f32 %v2159_v37, %v692_v16 }
 0x1af   :  { %v2191_v40 = vadd.f32 %v2159_v37, %v693_v1  ;;  %v2194_v31 = vadd.f32 %v2159_v37, %v694_v52  ;;  %v2197_v48 = vadd.f32 %v2159_v37, %v695_v22  ;;  %v2200_v0 = vadd.f32 %v2159_v37, %v696_v17 }
 0x1b0   :  { %v2203_v12 = vadd.f32 %v2159_v37, %v697_v26  ;;  %v2206_v28 = vadd.f32 %v2159_v37, %v698_v32  ;;  %v2209_v16 = vadd.f32 %v2159_v37, %v699_v34  ;;  %v2212_v1 = vadd.f32 %v2159_v37, %v700_v38 }
 0x1b1   :  { %v2215_v52 = vadd.f32 %v2159_v37, %v701_v42  ;;  %v2218_v22 = vadd.f32 %v2159_v37, %v702_v46  ;;  %v2221_v17 = vadd.f32 %v2159_v37, %v703_v50  ;;  %v2224_v26 = vadd.f32 %v2159_v37, %v704_v54 }
 0x1b2   :  { %v2227_v32 = vadd.f32 %v2159_v37, %v705_v58  ;;  %v2230_v34 = vadd.f32 %v2159_v37, %v706_v62  ;;  %v2233_v38 = vadd.f32 %v2159_v37, %v707_v2  ;;  %v2236_v42 = vadd.f32 %v2159_v37, %v708_v6 }
 0x1b3   :  { %v2239_v46 = vadd.f32 %v2159_v37, %v709_v10  ;;  %v2242_v50 = vadd.f32 %v2159_v37, %v710_v14  ;;  %v2245_v54 = vadd.f32 %v2159_v37, %v711_v18  ;;  %v2248_v58 = vadd.f32 %v2159_v37, %v712_v23 }
 0x1b4   :  { %v2251_v62 = vadd.f32 %v2159_v37, %v713_v33  ;;  %v2254_v2 = vadd.f32 %v2159_v37, %v714_v53  ;;  %v2257_v6 = vadd.f32 %v2159_v37, %v715_v9  ;;  %v2260_v10 = vadd.f32 %v2159_v37, %v716_v27 }
 0x1b5   :  { %2803 = vst [vmem:[#allocation10_spill] sm:$0xff] %v2248_v58  ;;  %v2263_v14 = vadd.f32 %v2159_v37, %v717_v45  ;;  %v2266_v18 = vadd.f32 %v2159_v37, %v718_v5  ;;  %v2269_v23 = vadd.f32 %v2159_v37, %v719_v29  ;;  %v2272_v33 = vadd.f32 %v2159_v37, %v720_v57 }
 0x1b6   :  { %2804 = vst [vmem:[#allocation2_spill] sm:$0xff] %v2257_v6  ;;  %v2275_v53 = vadd.f32 %v2159_v37, %v721_v21  ;;  %v2278_v9 = vadd.f32 %v2159_v37, %v722_v49  ;;  %v2281_v27 = vadd.f32 %v2159_v37, %v723_v25  ;;  %v2284_v45 = vadd.f32 %v2159_v37, %v724_v35 }
 0x1b7   :  { %2805 = vst [vmem:[#allocation3_spill] sm:$0xff] %v2266_v18  ;;  %v2287_v5 = vadd.f32 %v2159_v37, %v725_v39  ;;  %v2290_v29 = vadd.f32 %v2159_v37, %v726_v43  ;;  %v2293_v57 = vadd.f32 %v2159_v37, %v727_v47  ;;  %v2296_v21 = vadd.f32 %v2159_v37, %v728_v51 }
 0x1b8   :  { %2806 = vst [vmem:[#allocation4_spill] sm:$0xff] %v2284_v45  ;;  %v2299_v49 = vadd.f32 %v2159_v37, %v729_v55  ;;  %v2302_v25 = vadd.f32 %v2159_v37, %v730_v59  ;;  %v2305_v35 = vadd.f32 %v2159_v37, %v731_v63  ;;  %v2308_v39 = vadd.f32 %v2159_v37, %v732_v3 }
 0x1b9   :  { %2807 = vst [vmem:[#allocation5_spill] sm:$0xff] %v2290_v29  ;;  %2808 = vst [vmem:[#allocation6_spill] sm:$0xff] %v2293_v57  ;;  %v2311_v43 = vadd.f32 %v2159_v37, %v733_v41  ;;  %v2314_v47 = vadd.f32 %v2159_v37, %v734_v7  ;;  %v2317_v51 = vadd.f32 %v2159_v37, %v735_v11  ;;  %vm793_vm1 = vcmp.ge.f32.partialorder %v2179_v36, 0.0 }
 0x1ba   :  { %2809 = vst [vmem:[#allocation7_spill] sm:$0xff] %v2296_v21  ;;  %2810 = vst [vmem:[#allocation8_spill] sm:$0xff] %v2299_v49  ;;  %v2320_v55 = vadd.f32 %v2159_v37, %v736_v15  ;;  %vm794_vm2 = vcmp.ge.f32.partialorder %v2182_v56, 0.0  ;;  %vm795_vm3 = vcmp.ge.f32.partialorder %v2185_v30, 0.0  ;;  %vm796_vm4 = vcmp.ge.f32.partialorder %v2188_v20, 0.0 }
 0x1bb   :  { %2811 = vst [vmem:[#allocation9_spill] sm:$0xff] %v2302_v25  ;;  %2812 = vst [vmem:[#allocation11_spill] sm:$0xff] %v2305_v35  ;;  %vm797_vm5 = vcmp.ge.f32.partialorder %v2191_v40, 0.0  ;;  %vm798_vm6 = vcmp.ge.f32.partialorder %v2194_v31, 0.0  ;;  %vm799_vm7 = vcmp.ge.f32.partialorder %v2197_v48, 0.0  ;;  %vm800_vm8 = vcmp.ge.f32.partialorder %v2200_v0, 0.0 }
 0x1bc   :  { %2813 = vst [vmem:[#allocation12_spill] sm:$0xff] %v2308_v39  ;;  %2814 = vst [vmem:[#allocation13_spill] sm:$0xff] %v2311_v43  ;;  %vm801_vm9 = vcmp.ge.f32.partialorder %v2203_v12, 0.0  ;;  %v2332_v59 = vadd.f32 %v2159_v37, %v737_v19  ;;  %vm802_vm10 = vcmp.ge.f32.partialorder %v2206_v28, 0.0  ;;  %v843_v63 = vmul.f32 0.2, %v2179_v36 }
 0x1bd   :  { %v844_v3 = vmul.f32 0.2, %v2182_v56  ;;  %v845_v4 = vmul.f32 0.2, %v2185_v30  ;;  %v2340_v41 = vadd.f32 %v2159_v37, %v2176_v24  ;;  %vm803_vm11 = vcmp.ge.f32.partialorder %v2209_v16, 0.0 }
 0x1be   :  { %v846_v13 = vmul.f32 0.2, %v2188_v20  ;;  %v847_v7 = vmul.f32 0.2, %v2191_v40  ;;  %v848_v61 = vmul.f32 0.2, %v2194_v31  ;;  %v2353_v37 = vsel %vm793_vm1, %v2179_v36, %v843_v63 }
 0x1bf   :  { %2815 = vst [vmem:[#allocation14_spill] sm:$0xff] %v2340_v41  ;;  %vm804_vm12 = vcmp.ge.f32.partialorder %v2212_v1, 0.0  ;;  %v849_v11 = vmul.f32 0.2, %v2197_v48  ;;  %v850_v44 = vmul.f32 0.2, %v2200_v0  ;;  %v2368_v24 = vsel %vm794_vm2, %v2182_v56, %v844_v3 }
 0x1c0   :  { %v851_v15 = vmul.f32 0.2, %v2203_v12  ;;  %2816 = vst [vmem:[#allocation15_spill] sm:$0xff] %v2353_v37  ;;  %vm805_vm13 = vcmp.ge.f32.partialorder %v2215_v52, 0.0  ;;  %v2357_v60 = vmul.f32 0.2, %v2206_v28  ;;  %v2383_v41 = vsel %vm795_vm3, %v2185_v30, %v845_v4 }
 0x1c1   :  { %v2360_v19 = vmul.f32 0.2, %v2209_v16  ;;  %v2363_v8 = vmul.f32 0.2, %v2212_v1  ;;  %2817 = vst [vmem:[#allocation16_spill] sm:$0xff] %v2368_v24  ;;  %vm806_vm14 = vcmp.ge.f32.partialorder %v2218_v22, 0.0 }
 0x1c2   :  { %v2372_v36 = vmul.f32 0.2, %v2215_v52  ;;  %v2375_v63 = vmul.f32 0.2, %v2218_v22  ;;  %v2378_v37 = vmul.f32 0.2, %v2221_v17 }
 0x1c3   :  { %2819 = vst [vmem:[#allocation18_spill] sm:$0xff] %v2383_v41  ;;  %vm807_vm15 = vcmp.ge.f32.partialorder %v2221_v17, 0.0  ;;  %v2388_v56 = vmul.f32 0.2, %v2224_v26  ;;  %v2391_v3 = vmul.f32 0.2, %v2227_v32 }
 0x1c4   :  { %2818 = vst [vmem:[#allocation17_spill] sm:$0xff] %v2378_v37  ;;  %v2394_v24 = vmul.f32 0.2, %v2230_v34  ;;  %v2399_v37 = vsel %vm796_vm4, %v2188_v20, %v846_v13  ;;  %vm809_vm1 = vcmp.ge.f32.partialorder %v2227_v32, 0.0  ;;  %v2406_v30 = vmul.f32 0.2, %v2233_v38 }
 0x1c5   :  { %2820 = vst [vmem:[#allocation19_spill] sm:$0xff] %v2399_v37  ;;  %v2409_v4 = vmul.f32 0.2, %v2236_v42  ;;  %v2412_v41 = vmul.f32 0.2, %v2239_v46  ;;  %v2417_v20 = vsel %vm797_vm5, %v2191_v40, %v847_v7  ;;  %vm813_vm4 = vcmp.ge.f32.partialorder %v2239_v46, 0.0 }
 0x1c6   :  { %2822 = vst [vmem:[#allocation21_spill] sm:$0xff] %v2417_v20  ;;  %v2424_v13 = vmul.f32 0.2, %v2242_v50  ;;  %v2427_v37 = vmul.f32 0.2, %v2245_v54  ;;  %v2435_v40 = vsel %vm798_vm6, %v2194_v31, %v848_v61  ;;  %vm817_vm5 = vcmp.ge.f32.partialorder %v2251_v62, 0.0 }
 0x1c7   :  { %2821 = vst [vmem:[#allocation20_spill] sm:$0xff] %v2412_v41  ;;  %v2430_v41 = vmul.f32 0.2, %v2248_v58  ;;  %2823 = vst [vmem:[#allocation22_spill] sm:$0xff] %v2435_v40  ;;  %v2442_v7 = vmul.f32 0.2, %v2251_v62  ;;  %v2453_v31 = vsel %vm799_vm7, %v2197_v48, %v849_v11 }
 0x1c8   :  { %v2445_v20 = vmul.f32 0.2, %v2254_v2  ;;  %v2448_v58 = vmul.f32 0.2, %v2257_v6  ;;  %2825 = vst [vmem:[#allocation24_spill] sm:$0xff] %v2453_v31  ;;  %vm824_vm0 = vcmp.ge.f32.partialorder %v2272_v33, 0.0 }
 0x1c9   :  { %v870_v61 = vmul.f32 0.2, %v2260_v10  ;;  %v871_v40 = vmul.f32 0.2, %v2263_v14  ;;  %v872_v6 = vmul.f32 0.2, %v2266_v18  ;;  %v2477_v18 = vsel %vm801_vm9, %v2203_v12, %v851_v15 }
 0x1ca   :  { %2824 = vst [vmem:[#allocation23_spill] sm:$0xff] %v2448_v58  ;;  %v2465_v58 = vsel %vm800_vm8, %v2200_v0, %v850_v44  ;;  %vm828_vm3 = vcmp.ge.f32.partialorder %v2284_v45, 0.0  ;;  %v873_v48 = vmul.f32 0.2, %v2269_v23  ;;  %v874_v11 = vmul.f32 0.2, %v2272_v33 }
 0x1cb   :  { %2826 = vst [vmem:[#allocation25_spill] sm:$0xff] %v2465_v58  ;;  %v875_v31 = vmul.f32 0.2, %v2275_v53  ;;  %2827 = vst [vmem:[#allocation26_spill] sm:$0xff] %v2477_v18  ;;  %vm829_vm8 = vcmp.ge.f32.partialorder %v2287_v5, 0.0  ;;  %v2490_v12 = vsel %vm802_vm10, %v2206_v28, %v2357_v60  ;;  %vm833_vm9 = vcmp.ge.f32.partialorder %v2299_v49, 0.0 }
 0x1cc   :  { %v876_v0 = vmul.f32 0.2, %v2278_v9  ;;  %v877_v44 = vmul.f32 0.2, %v2281_v27  ;;  %v878_v58 = vmul.f32 0.2, %v2284_v45  ;;  %v2503_v28 = vsel %vm803_vm11, %v2209_v16, %v2360_v19 }
 0x1cd   :  { %2828 = vst [vmem:[#allocation27_spill] sm:$0xff] %v2490_v12  ;;  %v879_v15 = vmul.f32 0.2, %v2287_v5  ;;  %v880_v18 = vmul.f32 0.2, %v2290_v29  ;;  %2829 = vst [vmem:[#allocation28_spill] sm:$0xff] %v2503_v28  ;;  %v2516_v16 = vsel %vm804_vm12, %v2212_v1, %v2363_v8 }
 0x1ce   :  { %v881_v45 = vmul.f32 0.2, %v2293_v57  ;;  %vm837_vm10 = vcmp.ge.f32.partialorder %v2311_v43, 0.0  ;;  %vm839_vm6 = vcmp.ge.f32.partialorder %v2317_v51, 0.0  ;;  %vm840_vm2 = vcmp.ge.f32.partialorder %v2320_v55, 0.0  ;;  %2830 = vst [vmem:[#allocation29_spill] sm:$0xff] %v2516_v16 }
 0x1cf   :  { %v882_v60 = vmul.f32 0.2, %v2296_v21  ;;  %v883_v12 = vmul.f32 0.2, %v2299_v49  ;;  %v884_v57 = vmul.f32 0.2, %v2302_v25  ;;  %v2527_v25 = vsel %vm805_vm13, %v2215_v52, %v2372_v36 }
 0x1d0   :  { %vm841_vm11 = vcmp.ge.f32.partialorder %v2332_v59, 0.0  ;;  %v2831_v19 = vld [vmem:[#allocation14_spill] sm:$0xff]  ;;  %v885_v28 = vmul.f32 0.2, %v2305_v35  ;;  %v886_v29 = vmul.f32 0.2, %v2308_v39  ;;  %v906_v16 = vsel %vm806_vm14, %v2218_v22, %v2375_v63 }
 0x1d1   :  { %vm842_vm7 = vcmp.ge.f32.partialorder %v2831_v19, 0.0  ;;  %v887_v21 = vmul.f32 0.2, %v2311_v43  ;;  %2832 = vst [vmem:[#allocation14_spill] sm:$0xff] %v2527_v25  ;;  %v888_v49 = vmul.f32 0.2, %v2314_v47  ;;  %v909_v25 = vsel %vm809_vm1, %v2227_v32, %v2391_v3 }
 0x1d2   :  { %v889_v1 = vmul.f32 0.2, %v2317_v51  ;;  %v890_v8 = vmul.f32 0.2, %v2320_v55  ;;  %v891_v39 = vmul.f32 0.2, %v2332_v59 }
 0x1d3   :  { %v892_v43 = vmul.f32 0.2, %v2831_v19  ;;  %v2833_v35 = vld [vmem:[#allocation17_spill] sm:$0xff]  ;;  %vm2834_vm12 = vcmp.ge.f32.partialorder %v2224_v26, 0.0  ;;  %vm2835_vm13 = vcmp.ge.f32.partialorder %v2230_v34, 0.0  ;;  %vm2836_vm14 = vcmp.ge.f32.partialorder %v2233_v38, 0.0 }
 0x1d4   :  { %v907_v52 = vsel %vm807_vm15, %v2221_v17, %v2833_v35  ;;  %v908_v36 = vsel %vm2834_vm12, %v2224_v26, %v2388_v56  ;;  %v910_v22 = vsel %vm2835_vm13, %v2230_v34, %v2394_v24  ;;  %v911_v17 = vsel %vm2836_vm14, %v2233_v38, %v2406_v30  ;;  %v2838_v35 = vld [vmem:[#allocation20_spill] sm:$0xff]  ;;  %v2841_v24 = vld [vmem:[#allocation10_spill] sm:$0xff]  ;;  %v2844_v63 = vld [vmem:[#allocation23_spill] sm:$0xff] }
 0x1d5   :  { %vm2837_vm15 = vcmp.ge.f32.partialorder %v2236_v42, 0.0  ;;  %v913_v32 = vsel %vm813_vm4, %v2239_v46, %v2838_v35  ;;  %vm2839_vm1 = vcmp.ge.f32.partialorder %v2242_v50, 0.0  ;;  %vm2840_vm12 = vcmp.ge.f32.partialorder %v2245_v54, 0.0  ;;  %v2845_v56 = vld [vmem:[#allocation2_spill] sm:$0xff]  ;;  %v2849_v3 = vld [vmem:[#allocation3_spill] sm:$0xff] }
 0x1d6   :  { %v912_v26 = vsel %vm2837_vm15, %v2236_v42, %v2409_v4  ;;  %v914_v34 = vsel %vm2839_vm1, %v2242_v50, %v2424_v13  ;;  %v915_v38 = vsel %vm2840_vm12, %v2245_v54, %v2427_v37  ;;  %vm2842_vm13 = vcmp.ge.f32.partialorder %v2841_v24, 0.0  ;;  %v2855_v4 = vld [vmem:[#allocation4_spill] sm:$0xff]  ;;  %v2858_v13 = vld [vmem:[#allocation6_spill] sm:$0xff] }
 0x1d7   :  { %v916_v42 = vsel %vm2842_vm13, %v2841_v24, %v2430_v41  ;;  %v917_v46 = vsel %vm817_vm5, %v2251_v62, %v2442_v7  ;;  %vm2843_vm4 = vcmp.ge.f32.partialorder %v2254_v2, 0.0  ;;  %vm2846_vm14 = vcmp.ge.f32.partialorder %v2845_v56, 0.0  ;;  %v2862_v7 = vld [vmem:[#allocation8_spill] sm:$0xff]  ;;  %v2875_v24 = vld [vmem:[#allocation21_spill] sm:$0xff] }
 0x1d8   :  { %v918_v50 = vsel %vm2843_vm4, %v2254_v2, %v2445_v20  ;;  %v919_v54 = vsel %vm2846_vm14, %v2845_v56, %v2844_v63  ;;  %vm2847_vm15 = vcmp.ge.f32.partialorder %v2260_v10, 0.0  ;;  %vm2848_vm1 = vcmp.ge.f32.partialorder %v2263_v14, 0.0  ;;  %v2856_v20 = vld [vmem:[#allocation5_spill] sm:$0xff]  ;;  %v2877_v63 = vld [vmem:[#allocation24_spill] sm:$0xff] }
 0x1d9   :  { %v920_v37 = vsel %vm2847_vm15, %v2260_v10, %v870_v61  ;;  %v921_v41 = vsel %vm2848_vm1, %v2263_v14, %v871_v40  ;;  %vm2850_vm5 = vcmp.ge.f32.partialorder %v2849_v3, 0.0  ;;  %vm2851_vm12 = vcmp.ge.f32.partialorder %v2269_v23, 0.0  ;;  %v2860_v40 = vld [vmem:[#allocation7_spill] sm:$0xff]  ;;  %v2878_v56 = vld [vmem:[#allocation25_spill] sm:$0xff] }
 0x1da   :  { %v922_v62 = vsel %vm2850_vm5, %v2849_v3, %v872_v6  ;;  %v923_v2 = vsel %vm2851_vm12, %v2269_v23, %v873_v48  ;;  %v924_v30 = vsel %vm824_vm0, %v2272_v33, %v874_v11  ;;  %vm2852_vm13 = vcmp.ge.f32.partialorder %v2275_v53, 0.0  ;;  %v2865_v61 = vld [vmem:[#allocation11_spill] sm:$0xff]  ;;  %v2867_v48 = vld [vmem:[#allocation12_spill] sm:$0xff]  ;;  %v2869_v11 = vld [vmem:[#allocation13_spill] sm:$0xff] }
 0x1db   :  { %v925_v10 = vsel %vm2852_vm13, %v2275_v53, %v875_v31  ;;  %vm2853_vm4 = vcmp.ge.f32.partialorder %v2278_v9, 0.0  ;;  %vm2854_vm14 = vcmp.ge.f32.partialorder %v2281_v27, 0.0  ;;  %v928_v23 = vsel %vm828_vm3, %v2855_v4, %v878_v58  ;;  %v2863_v31 = vld [vmem:[#allocation9_spill] sm:$0xff]  ;;  %v2880_v3 = vld [vmem:[#allocation27_spill] sm:$0xff] }
 0x1dc   :  { %v926_v14 = vsel %vm2853_vm4, %v2278_v9, %v876_v0  ;;  %v927_v6 = vsel %vm2854_vm14, %v2281_v27, %v877_v44  ;;  %v929_v33 = vsel %vm829_vm8, %v2287_v5, %v879_v15  ;;  %vm2857_vm0 = vcmp.ge.f32.partialorder %v2856_v20, 0.0  ;;  %v2871_v15 = vld [vmem:[#allocation15_spill] sm:$0xff] }
 0x1dd   :  { %v930_v53 = vsel %vm2857_vm0, %v2856_v20, %v880_v18  ;;  %vm2859_vm15 = vcmp.ge.f32.partialorder %v2858_v13, 0.0  ;;  %vm2861_vm1 = vcmp.ge.f32.partialorder %v2860_v40, 0.0  ;;  %v933_v58 = vsel %vm833_vm9, %v2862_v7, %v883_v12 }
 0x1de   :  { %v931_v9 = vsel %vm2859_vm15, %v2858_v13, %v881_v45  ;;  %v932_v27 = vsel %vm2861_vm1, %v2860_v40, %v882_v60  ;;  %vm2864_vm3 = vcmp.ge.f32.partialorder %v2863_v31, 0.0  ;;  %vm2866_vm8 = vcmp.ge.f32.partialorder %v2865_v61, 0.0 }
 0x1df   :  { %v934_v5 = vsel %vm2864_vm3, %v2863_v31, %v884_v57  ;;  %v935_v18 = vsel %vm2866_vm8, %v2865_v61, %v885_v28  ;;  %vm2868_vm5 = vcmp.ge.f32.partialorder %v2867_v48, 0.0  ;;  %v937_v0 = vsel %vm837_vm10, %v2869_v11, %v887_v21  ;;  %v2872_v28 = vld [vmem:[#allocation16_spill] sm:$0xff] }
 0x1e0   :  { %v936_v45 = vsel %vm2868_vm5, %v2867_v48, %v886_v29  ;;  %vm2870_vm12 = vcmp.ge.f32.partialorder %v2314_v47, 0.0  ;;  %v939_v57 = vsel %vm839_vm6, %v2317_v51, %v889_v1  ;;  %v940_v12 = vsel %vm840_vm2, %v2320_v55, %v890_v8  ;;  %v2876_v51 = vld [vmem:[#allocation22_spill] sm:$0xff] }
 0x1e1   :  { %v938_v44 = vsel %vm2870_vm12, %v2314_v47, %v888_v49  ;;  %v941_v29 = vsel %vm841_vm11, %v2332_v59, %v891_v39  ;;  %v942_v21 = vsel %vm842_vm7, %v2831_v19, %v892_v43  ;;  %v1333_v60 = vpack.c.bf16 %v2872_v28, %v2871_v15  ;;  %v2873_v49 = vld [vmem:[#allocation18_spill] sm:$0xff]  ;;  %v2874_v47 = vld [vmem:[#allocation19_spill] sm:$0xff]  ;;  %v2881_v39 = vld [vmem:[#allocation28_spill] sm:$0xff] }
 0x1e2   :  { %v1338_v35 = vpack.c.bf16 %v2874_v47, %v2873_v49  ;;  %v1343_v1 = vpack.c.bf16 %v2876_v51, %v2875_v24  ;;  %v1348_v55 = vpack.c.bf16 %v2878_v56, %v2877_v63  ;;  %v2879_v8 = vld [vmem:[#allocation26_spill] sm:$0xff]  ;;  %v2882_v59 = vld [vmem:[#allocation29_spill] sm:$0xff]  ;;  %v1368_v13 = vpack.c.bf16 %v908_v36, %v907_v52 }
 0x1e3   :  { %v1353_v4 = vpack.c.bf16 %v2880_v3, %v2879_v8  ;;  %v1358_v20 = vpack.c.bf16 %v2882_v59, %v2881_v39  ;;  %1334 = vst [vmem:[%s2750_s3] sm:$0xff] %v1333_v60   ;;  %v2883_v43 = vld [vmem:[#allocation14_spill] sm:$0xff]  ;;  %v1373_v40 = vpack.c.bf16 %v910_v22, %v909_v25  ;;  %v1378_v7 = vpack.c.bf16 %v912_v26, %v911_v17 }
 0x1e4   :  { %1455 = vst [vmem:[%s2750_s3 + $0x8] sm:$0xff] %v1338_v35   ;;  %v1363_v19 = vpack.c.bf16 %v906_v16, %v2883_v43  ;;  %1456 = vst [vmem:[%s2750_s3 + $0x10] sm:$0xff] %v1343_v1   ;;  %v1383_v16 = vpack.c.bf16 %v914_v34, %v913_v32  ;;  %v1388_v52 = vpack.c.bf16 %v916_v42, %v915_v38 }
 0x1e5   :  { %1457 = vst [vmem:[%s2750_s3 + $0x18] sm:$0xff] %v1348_v55   ;;  %1458 = vst [vmem:[%s2750_s3 + $0x20] sm:$0xff] %v1353_v4   ;;  %v1393_v25 = vpack.c.bf16 %v918_v50, %v917_v46  ;;  %v1398_v36 = vpack.c.bf16 %v920_v37, %v919_v54  ;;  %v1403_v22 = vpack.c.bf16 %v922_v62, %v921_v41 }
 0x1e6   :  { %1459 = vst [vmem:[%s2750_s3 + $0x28] sm:$0xff] %v1358_v20   ;;  %1460 = vst [vmem:[%s2750_s3 + $0x30] sm:$0xff] %v1363_v19   ;;  %v1408_v17 = vpack.c.bf16 %v924_v30, %v923_v2  ;;  %v1413_v26 = vpack.c.bf16 %v926_v14, %v925_v10  ;;  %v1418_v32 = vpack.c.bf16 %v928_v23, %v927_v6 }
 0x1e7   :  { %1461 = vst [vmem:[%s2750_s3 + $0x38] sm:$0xff] %v1368_v13   ;;  %1462 = vst [vmem:[%s2750_s3 + $0x40] sm:$0xff] %v1373_v40   ;;  %v1423_v34 = vpack.c.bf16 %v930_v53, %v929_v33  ;;  %v1428_v38 = vpack.c.bf16 %v932_v27, %v931_v9  ;;  %v1433_v42 = vpack.c.bf16 %v934_v5, %v933_v58 }
 0x1e8   :  { %1463 = vst [vmem:[%s2750_s3 + $0x48] sm:$0xff] %v1378_v7   ;;  %1464 = vst [vmem:[%s2750_s3 + $0x50] sm:$0xff] %v1383_v16   ;;  %v1438_v46 = vpack.c.bf16 %v936_v45, %v935_v18  ;;  %v1443_v50 = vpack.c.bf16 %v938_v44, %v937_v0  ;;  %v1448_v54 = vpack.c.bf16 %v940_v12, %v939_v57 }
 0x1e9   :  { %1465 = vst [vmem:[%s2750_s3 + $0x58] sm:$0xff] %v1388_v52   ;;  %1466 = vst [vmem:[%s2750_s3 + $0x60] sm:$0xff] %v1393_v25   ;;  %v1453_v37 = vpack.c.bf16 %v942_v21, %v941_v29 }
 0x1ea   :  { %1467 = vst [vmem:[%s2750_s3 + $0x68] sm:$0xff] %v1398_v36   ;;  %1468 = vst [vmem:[%s2750_s3 + $0x70] sm:$0xff] %v1403_v22  }
 0x1eb   :  { %1469 = vst [vmem:[%s2750_s3 + $0x78] sm:$0xff] %v1408_v17   ;;  %1470 = vst [vmem:[%s2750_s3 + $0x80] sm:$0xff] %v1413_v26  }
 0x1ec   :  { %1471 = vst [vmem:[%s2750_s3 + $0x88] sm:$0xff] %v1418_v32   ;;  %1472 = vst [vmem:[%s2750_s3 + $0x90] sm:$0xff] %v1423_v34  }
 0x1ed   :  { %1473 = vst [vmem:[%s2750_s3 + $0x98] sm:$0xff] %v1428_v38   ;;  %1474 = vst [vmem:[%s2750_s3 + $0xa0] sm:$0xff] %v1433_v42  }
 0x1ee   :  { %1475 = vst [vmem:[%s2750_s3 + $0xa8] sm:$0xff] %v1438_v46   ;;  %1476 = vst [vmem:[%s2750_s3 + $0xb0] sm:$0xff] %v1443_v50  }
 0x1ef   :  { %1477 = vst [vmem:[%s2750_s3 + $0xb8] sm:$0xff] %v1448_v54   ;;  %1478 = vst [vmem:[%s2750_s3 + $0xc0] sm:$0xff] %v1453_v37  }

// kernel: discriminator_forward.6
= control target key start
LH: loop header
LB: loop body
LE: loop exit
PB: predicated region body
PF: predicated region fallthrough
CT: control target
= control target key end

     0   :  { %s1468_s1 = inlined_call_operand.vmem [shape: bf16[512,128], index: 1, kind: input, shape index: {}]   ;;  %s1469_s0 = inlined_call_operand.vmem [shape: bf16[112,512], index: 0, kind: input, shape index: {}]   ;;  %s1470_s2 = inlined_call_operand.vmem [shape: f32[8,128], index: 2, kind: input, shape index: {}]   ;;  %s1471_s3 = inlined_call_operand.vmem [shape: bf16[112,128], index: 3, kind: output, shape index: {}]  }
   0x1   :  { %v1079_v0 = vld [vmem:[%s1468_s1 + $0x78] sm:$0xff]   ;;  %v1083_v4 = vld [vmem:[%s1468_s1 + $0x70] sm:$0xff]   ;;  %v1087_v8 = vld [vmem:[%s1468_s1 + $0x68] sm:$0xff]  }
   0x2   :  { %v1080_v1 = vld [vmem:[%s1468_s1 + $0xf8] sm:$0xff]   ;;  %963 = vmatprep.subr.bf16.mxu0 %v1079_v0  ;;  %v1084_v5 = vld [vmem:[%s1468_s1 + $0xf0] sm:$0xff]   ;;  %v1088_v9 = vld [vmem:[%s1468_s1 + $0xe8] sm:$0xff]  }
   0x3   :  { %v1081_v2 = vld [vmem:[%s1468_s1 + $0x38] sm:$0xff]   ;;  %1021 = vmatprep.subr.bf16.mxu1 %v1080_v1  ;;  %v1085_v6 = vld [vmem:[%s1468_s1 + $0x30] sm:$0xff]   ;;  %v1089_v10 = vld [vmem:[%s1468_s1 + $0x28] sm:$0xff]  }
   0x4   :  { %v1082_v3 = vld [vmem:[%s1468_s1 + $0xb8] sm:$0xff]   ;;  %964 = vmatpush3.bf16.msra.mxu0 %v1081_v2  ;;  %v1086_v7 = vld [vmem:[%s1468_s1 + $0xb0] sm:$0xff]   ;;  %v1090_v11 = vld [vmem:[%s1468_s1 + $0xa8] sm:$0xff]  }
   0x5   :  { %1022 = vmatpush3.bf16.msra.mxu1 %v1082_v3  ;;  %965 = vmatprep.subr.bf16.mxu0 %v1083_v4  ;;  %v1091_v12 = vld [vmem:[%s1468_s1 + $0x60] sm:$0xff]   ;;  %v1095_v16 = vld [vmem:[%s1468_s1 + $0x58] sm:$0xff]   ;;  %v1099_v20 = vld [vmem:[%s1468_s1 + $0x50] sm:$0xff]  }
   0x6   :  { %1023 = vmatprep.subr.bf16.mxu1 %v1084_v5  ;;  %v1092_v13 = vld [vmem:[%s1468_s1 + $0xe0] sm:$0xff]   ;;  %v1096_v17 = vld [vmem:[%s1468_s1 + $0xd8] sm:$0xff]   ;;  %v1100_v21 = vld [vmem:[%s1468_s1 + $0xd0] sm:$0xff]  }
   0x7   :  { %v1093_v14 = vld [vmem:[%s1468_s1 + $0x20] sm:$0xff]   ;;  %v1097_v18 = vld [vmem:[%s1468_s1 + $0x18] sm:$0xff]   ;;  %v1101_v22 = vld [vmem:[%s1468_s1 + $0x10] sm:$0xff]  }
   0x8   :  { %966 = vmatpush3.bf16.msra.mxu0 %v1085_v6  ;;  %v1094_v15 = vld [vmem:[%s1468_s1 + $0xa0] sm:$0xff]   ;;  %v1098_v19 = vld [vmem:[%s1468_s1 + $0x98] sm:$0xff]   ;;  %v1102_v23 = vld [vmem:[%s1468_s1 + $0x90] sm:$0xff]  }
   0x9   :  { %1024 = vmatpush3.bf16.msra.mxu1 %v1086_v7  ;;  %967 = vmatprep.subr.bf16.mxu0 %v1087_v8  ;;  %v1103_v24 = vld [vmem:[%s1468_s1 + $0x48] sm:$0xff]   ;;  %v1107_v28 = vld [vmem:[%s1468_s1 + $0x40] sm:$0xff]  }
   0xa   :  { %1025 = vmatprep.subr.bf16.mxu1 %v1088_v9  ;;  %v1104_v25 = vld [vmem:[%s1468_s1 + $0xc8] sm:$0xff]   ;;  %v1108_v29 = vld [vmem:[%s1468_s1 + $0xc0] sm:$0xff]  }
   0xb   :  { %v1105_v26 = vld [vmem:[%s1468_s1 + $0x8] sm:$0xff]   ;;  %v1109_v30 = vld [vmem:[%s1468_s1] sm:$0xff]  }
   0xc   :  { %968 = vmatpush3.bf16.msra.mxu0 %v1089_v10  ;;  %v1106_v27 = vld [vmem:[%s1468_s1 + $0x88] sm:$0xff]   ;;  %v1110_v31 = vld [vmem:[%s1468_s1 + $0x80] sm:$0xff]  }
   0xd   :  { %1026 = vmatpush3.bf16.msra.mxu1 %v1090_v11  ;;  %969 = vmatprep.subr.bf16.mxu0 %v1091_v12  ;;  %v1111_v32 = vld [vmem:[%s1469_s0] ss:$16 sps:$4 sm:$0xff]   ;;  %v1113_v33 = vld [vmem:[%s1469_s0 + $0x4] ss:$16 sps:$4 sm:$0xff]   ;;  %v1114_v34 = vld [vmem:[%s1469_s0 + $0x8] ss:$16 sps:$4 sm:$0xff]  }
   0xe   :  { %1027 = vmatprep.subr.bf16.mxu1 %v1092_v13  ;;  %v1116_v35 = vld [vmem:[%s1469_s0 + $0xc] ss:$16 sps:$4 sm:$0xff]   ;;  %471 = vmatprep.mubr.bf16.mxu0 %v1113_v33  ;;  %v1117_v36 = vld [vmem:[%s1469_s0 + $0x24] ss:$16 sps:$4 sm:$0xff]   ;;  %v1121_v38 = vld [vmem:[%s1469_s0 + $0x20] ss:$16 sps:$4 sm:$0xff]  }
   0xf   :  { %560 = vmatprep.mubr.bf16.mxu1 %v1116_v35  ;;  %v1119_v37 = vld [vmem:[%s1469_s0 + $0x2c] ss:$16 sps:$4 sm:$0xff]   ;;  %v1122_v39 = vld [vmem:[%s1469_s0 + $0x28] ss:$16 sps:$4 sm:$0xff]   ;;  %v1123_v40 = vld [vmem:[%s1469_s0 + $0x44] ss:$16 sps:$4 sm:$0xff]  }
  0x10   :  { %970 = vmatpush3.bf16.msra.mxu0 %v1093_v14  ;;  %v1125_v41 = vld [vmem:[%s1469_s0 + $0x4c] ss:$16 sps:$4 sm:$0xff]   ;;  %v1127_v42 = vld [vmem:[%s1469_s0 + $0x40] ss:$16 sps:$4 sm:$0xff]   ;;  %v1128_v43 = vld [vmem:[%s1469_s0 + $0x48] ss:$16 sps:$4 sm:$0xff]  }
  0x11   :  { %1028 = vmatpush3.bf16.msra.mxu1 %v1094_v15  ;;  %971 = vmatprep.subr.bf16.mxu0 %v1095_v16  ;;  %v1129_v44 = vld [vmem:[%s1469_s0 + $0x64] ss:$16 sps:$4 sm:$0xff]   ;;  %v1131_v45 = vld [vmem:[%s1469_s0 + $0x6c] ss:$16 sps:$4 sm:$0xff]   ;;  %v1133_v46 = vld [vmem:[%s1469_s0 + $0x60] ss:$16 sps:$4 sm:$0xff]  }
  0x12   :  { %1029 = vmatprep.subr.bf16.mxu1 %v1096_v17  ;;  %v1134_v47 = vld [vmem:[%s1469_s0 + $0x68] ss:$16 sps:$4 sm:$0xff]   ;;  %v1135_v48 = vld [vmem:[%s1469_s0 + $0x84] ss:$16 sps:$4 sm:$0xff]   ;;  %v1137_v49 = vld [vmem:[%s1469_s0 + $0x8c] ss:$16 sps:$4 sm:$0xff]  }
  0x13   :  { %v1139_v50 = vld [vmem:[%s1469_s0 + $0x80] ss:$16 sps:$4 sm:$0xff]   ;;  %v1140_v51 = vld [vmem:[%s1469_s0 + $0x88] ss:$16 sps:$4 sm:$0xff]   ;;  %v1141_v52 = vld [vmem:[%s1469_s0 + $0xa4] ss:$16 sps:$4 sm:$0xff]  }
  0x14   :  { %972 = vmatpush3.bf16.msra.mxu0 %v1097_v18  ;;  %v1143_v53 = vld [vmem:[%s1469_s0 + $0xac] ss:$16 sps:$4 sm:$0xff]   ;;  %v1145_v54 = vld [vmem:[%s1469_s0 + $0xa0] ss:$16 sps:$4 sm:$0xff]   ;;  %v1146_v55 = vld [vmem:[%s1469_s0 + $0xa8] ss:$16 sps:$4 sm:$0xff]  }
  0x15   :  { %1030 = vmatpush3.bf16.msra.mxu1 %v1098_v19  ;;  %973 = vmatprep.subr.bf16.mxu0 %v1099_v20  ;;  %v1147_v56 = vld [vmem:[%s1469_s0 + $0xc4] ss:$16 sps:$4 sm:$0xff]   ;;  %v1149_v57 = vld [vmem:[%s1469_s0 + $0xcc] ss:$16 sps:$4 sm:$0xff]   ;;  %v1151_v58 = vld [vmem:[%s1469_s0 + $0xc0] ss:$16 sps:$4 sm:$0xff]  }
  0x16   :  { %1031 = vmatprep.subr.bf16.mxu1 %v1100_v21  ;;  %v1152_v59 = vld [vmem:[%s1469_s0 + $0xc8] ss:$16 sps:$4 sm:$0xff]  }
  0x18   :  { %974 = vmatpush3.bf16.msra.mxu0 %v1101_v22 }
  0x19   :  { %1032 = vmatpush3.bf16.msra.mxu1 %v1102_v23  ;;  %975 = vmatprep.subr.bf16.mxu0 %v1103_v24 }
  0x1a   :  { %1033 = vmatprep.subr.bf16.mxu1 %v1104_v25 }
  0x1c   :  { %976 = vmatpush3.bf16.msra.mxu0 %v1105_v26 }
  0x1d   :  { %1034 = vmatpush3.bf16.msra.mxu1 %v1106_v27  ;;  %977 = vmatprep.subr.bf16.mxu0 %v1107_v28 }
  0x1e   :  { %1035 = vmatprep.subr.bf16.mxu1 %v1108_v29 }
  0x20   :  { %978 = vmatpush3.bf16.msra.mxu0 %v1109_v30 }
  0x21   :  { %1036 = vmatpush3.bf16.msra.mxu1 %v1110_v31 }
  0x23   :  { %472 = vmatmul.mubr.bf16.vlgmr.msra.gmra.mxu0 %v1111_v32 }
  0x24   :  { %561 = vmatmul.mubr.bf16.vlgmr.msra.gmra.mxu1 %v1114_v34  ;;  %479 = vmatprep.mubr.bf16.mxu0 %v1117_v36 }
  0x25   :  { %568 = vmatprep.mubr.bf16.mxu1 %v1119_v37 }
  0x2b   :  { %480 = vmatmul.mubr.bf16.gmra.mxu0 %v1121_v38 }
  0x2c   :  { %569 = vmatmul.mubr.bf16.gmra.mxu1 %v1122_v39  ;;  %487 = vmatprep.mubr.bf16.mxu0 %v1123_v40 }
  0x2d   :  { %576 = vmatprep.mubr.bf16.mxu1 %v1125_v41 }
  0x33   :  { %488 = vmatmul.mubr.bf16.gmra.mxu0 %v1127_v42 }
  0x34   :  { %577 = vmatmul.mubr.bf16.gmra.mxu1 %v1128_v43  ;;  %495 = vmatprep.mubr.bf16.mxu0 %v1129_v44 }
  0x35   :  { %584 = vmatprep.mubr.bf16.mxu1 %v1131_v45 }
  0x3b   :  { %496 = vmatmul.mubr.bf16.gmra.mxu0 %v1133_v46 }
  0x3c   :  { %585 = vmatmul.mubr.bf16.gmra.mxu1 %v1134_v47  ;;  %503 = vmatprep.mubr.bf16.mxu0 %v1135_v48 }
  0x3d   :  { %592 = vmatprep.mubr.bf16.mxu1 %v1137_v49 }
  0x43   :  { %504 = vmatmul.mubr.bf16.gmra.mxu0 %v1139_v50 }
  0x44   :  { %593 = vmatmul.mubr.bf16.gmra.mxu1 %v1140_v51  ;;  %511 = vmatprep.mubr.bf16.mxu0 %v1141_v52 }
  0x45   :  { %600 = vmatprep.mubr.bf16.mxu1 %v1143_v53 }
  0x4b   :  { %512 = vmatmul.mubr.bf16.gmra.mxu0 %v1145_v54 }
  0x4c   :  { %601 = vmatmul.mubr.bf16.gmra.mxu1 %v1146_v55  ;;  %519 = vmatprep.mubr.bf16.mxu0 %v1147_v56 }
  0x4d   :  { %608 = vmatprep.mubr.bf16.mxu1 %v1149_v57 }
  0x53   :  { %520 = vmatmul.mubr.bf16.gmra.mxu0 %v1151_v58 }
  0x54   :  { %609 = vmatmul.mubr.bf16.gmra.mxu1 %v1152_v59 }
  0xe3   :  { %v979_v60 = vpop.f32.mrf.mxu0 }
  0xe4   :  { %v1037_v61 = vpop.f32.mrf.mxu1 }
  0xe5   :  { %v980_v62 = vpop.f32.mrf.mxu0 }
  0xe6   :  { %v1038_v63 = vpop.f32.mrf.mxu1  ;;  %v981_v24 = vadd.f32 %v980_v62, %v979_v60 }
  0xe7   :  { %v982_v0 = vpop.f32.mrf.mxu0  ;;  %v1039_v25 = vadd.f32 %v1038_v63, %v1037_v61 }
  0xe8   :  { %v1040_v1 = vpop.f32.mrf.mxu1 }
  0xe9   :  { %v983_v2 = vpop.f32.mrf.mxu0  ;;  %v1357_v35 = vadd.f32 %v1039_v25, %v981_v24 }
  0xea   :  { %v1041_v3 = vpop.f32.mrf.mxu1  ;;  %v984_v21 = vadd.f32 %v983_v2, %v982_v0 }
  0xeb   :  { %v985_v4 = vpop.f32.mrf.mxu0  ;;  %v1042_v22 = vadd.f32 %v1041_v3, %v1040_v1  ;;  %v636_v47 = vmul.f32 %v1357_v35, %v1357_v35 }
  0xec   :  { %v1043_v5 = vpop.f32.mrf.mxu1 }
  0xed   :  { %v986_v6 = vpop.f32.mrf.mxu0  ;;  %v1355_v31 = vadd.f32 %v1042_v22, %v984_v21 }
  0xee   :  { %v1044_v7 = vpop.f32.mrf.mxu1  ;;  %v987_v27 = vadd.f32 %v986_v6, %v985_v4 }
  0xef   :  { %v988_v8 = vpop.f32.mrf.mxu0  ;;  %v1045_v28 = vadd.f32 %v1044_v7, %v1043_v5  ;;  %v637_v42 = vmul.f32 %v1355_v31, %v1355_v31  ;;  %v617_v54 = vadd.f32 %v1355_v31, %v1357_v35 }
  0xf0   :  { %v1046_v9 = vpop.f32.mrf.mxu1 }
  0xf1   :  { %v989_v10 = vpop.f32.mrf.mxu0  ;;  %v1359_v37 = vadd.f32 %v1045_v28, %v987_v27  ;;  %v650_v56 = vadd.f32 %v637_v42, %v636_v47 }
  0xf2   :  { %v1047_v11 = vpop.f32.mrf.mxu1  ;;  %v990_v32 = vadd.f32 %v989_v10, %v988_v8 }
  0xf3   :  { %v991_v12 = vpop.f32.mrf.mxu0  ;;  %v1048_v33 = vadd.f32 %v1047_v11, %v1046_v9  ;;  %v638_v49 = vmul.f32 %v1359_v37, %v1359_v37  ;;  %v618_v60 = vadd.f32 %v617_v54, %v1359_v37 }
  0xf4   :  { %v1049_v13 = vpop.f32.mrf.mxu1 }
  0xf5   :  { %v992_v14 = vpop.f32.mrf.mxu0  ;;  %v1363_v43 = vadd.f32 %v1048_v33, %v990_v32  ;;  %v651_v0 = vadd.f32 %v650_v56, %v638_v49 }
  0xf6   :  { %v1050_v15 = vpop.f32.mrf.mxu1  ;;  %v993_v38 = vadd.f32 %v992_v14, %v991_v12 }
  0xf7   :  { %v994_v16 = vpop.f32.mrf.mxu0  ;;  %v1051_v39 = vadd.f32 %v1050_v15, %v1049_v13  ;;  %v639_v57 = vmul.f32 %v1363_v43, %v1363_v43  ;;  %v619_v4 = vadd.f32 %v618_v60, %v1363_v43 }
  0xf8   :  { %v1052_v17 = vpop.f32.mrf.mxu1 }
  0xf9   :  { %v995_v18 = vpop.f32.mrf.mxu0  ;;  %v1369_v50 = vadd.f32 %v1051_v39, %v993_v38  ;;  %v652_v8 = vadd.f32 %v651_v0, %v639_v57 }
  0xfa   :  { %v1053_v19 = vpop.f32.mrf.mxu1  ;;  %v996_v44 = vadd.f32 %v995_v18, %v994_v16 }
  0xfb   :  { %v997_v20 = vpop.f32.mrf.mxu0  ;;  %v1054_v45 = vadd.f32 %v1053_v19, %v1052_v17  ;;  %v640_v1 = vmul.f32 %v1369_v50, %v1369_v50  ;;  %v620_v11 = vadd.f32 %v619_v4, %v1369_v50 }
  0xfc   :  { %v1055_v23 = vpop.f32.mrf.mxu1 }
  0xfd   :  { %v998_v26 = vpop.f32.mrf.mxu0  ;;  %v1375_v58 = vadd.f32 %v1054_v45, %v996_v44  ;;  %v653_v16 = vadd.f32 %v652_v8, %v640_v1 }
  0xfe   :  { %v1056_v29 = vpop.f32.mrf.mxu1  ;;  %v999_v51 = vadd.f32 %v998_v26, %v997_v20 }
  0xff   :  { %v1000_v30 = vpop.f32.mrf.mxu0  ;;  %v1057_v52 = vadd.f32 %v1056_v29, %v1055_v23  ;;  %v641_v9 = vmul.f32 %v1375_v58, %v1375_v58  ;;  %v621_v19 = vadd.f32 %v620_v11, %v1375_v58 }
 0x100   :  { %v1058_v34 = vpop.f32.mrf.mxu1 }
 0x101   :  { %v1001_v36 = vpop.f32.mrf.mxu0  ;;  %v1380_v2 = vadd.f32 %v1057_v52, %v999_v51  ;;  %v654_v24 = vadd.f32 %v653_v16, %v641_v9 }
 0x102   :  { %v1059_v40 = vpop.f32.mrf.mxu1  ;;  %v1002_v61 = vadd.f32 %v1001_v36, %v1000_v30 }
 0x103   :  { %v1003_v41 = vpop.f32.mrf.mxu0  ;;  %v1060_v62 = vadd.f32 %v1059_v40, %v1058_v34  ;;  %v642_v17 = vmul.f32 %v1380_v2, %v1380_v2  ;;  %v622_v26 = vadd.f32 %v621_v19, %v1380_v2 }
 0x104   :  { %v1061_v46 = vpop.f32.mrf.mxu1 }
 0x105   :  { %v1004_v48 = vpop.f32.mrf.mxu0  ;;  %v1386_v12 = vadd.f32 %v1060_v62, %v1002_v61  ;;  %v655_v30 = vadd.f32 %v654_v24, %v642_v17 }
 0x106   :  { %v1062_v53 = vpop.f32.mrf.mxu1  ;;  %v1005_v5 = vadd.f32 %v1004_v48, %v1003_v41 }
 0x107   :  { %v1006_v55 = vpop.f32.mrf.mxu0  ;;  %v1063_v6 = vadd.f32 %v1062_v53, %v1061_v46  ;;  %v643_v27 = vmul.f32 %v1386_v12, %v1386_v12  ;;  %v623_v34 = vadd.f32 %v622_v26, %v1386_v12 }
 0x108   :  { %v1064_v59 = vpop.f32.mrf.mxu1 }
 0x109   :  { %v1007_v63 = vpop.f32.mrf.mxu0  ;;  %v1391_v20 = vadd.f32 %v1063_v6, %v1005_v5  ;;  %v656_v42 = vadd.f32 %v655_v30, %v643_v27 }
 0x10a   :  { %v1065_v3 = vpop.f32.mrf.mxu1  ;;  %v1008_v13 = vadd.f32 %v1007_v63, %v1006_v55 }
 0x10b   :  { %v1009_v7 = vpop.f32.mrf.mxu0  ;;  %v1066_v14 = vadd.f32 %v1065_v3, %v1064_v59  ;;  %v644_v36 = vmul.f32 %v1391_v20, %v1391_v20  ;;  %v624_v44 = vadd.f32 %v623_v34, %v1391_v20 }
 0x10c   :  { %v1067_v10 = vpop.f32.mrf.mxu1 }
 0x10d   :  { %v1010_v15 = vpop.f32.mrf.mxu0  ;;  %v1396_v28 = vadd.f32 %v1066_v14, %v1008_v13  ;;  %v657_v51 = vadd.f32 %v656_v42, %v644_v36  ;;  %v682_v36 = vlaneseq }
 0x10e   :  { %v1068_v18 = vpop.f32.mrf.mxu1  ;;  %v1011_v21 = vadd.f32 %v1010_v15, %v1009_v7 }
 0x10f   :  { %v1069_v22 = vadd.f32 %v1068_v18, %v1067_v10  ;;  %v1012_v23 = vpop.f32.mrf.mxu0  ;;  %v645_v45 = vmul.f32 %v1396_v28, %v1396_v28  ;;  %v625_v52 = vadd.f32 %v624_v44, %v1396_v28 }
 0x110   :  { %v1070_v25 = vpop.f32.mrf.mxu1 }
 0x111   :  { %v1013_v29 = vpop.f32.mrf.mxu0  ;;  %v1401_v38 = vadd.f32 %v1069_v22, %v1011_v21  ;;  %v658_v57 = vadd.f32 %v657_v51, %v645_v45  ;;  %v679_v45 = vld [vmem:[%s1470_s2 + $0x1] sm:$0x1] }
 0x112   :  { %v1014_v32 = vadd.f32 %v1013_v29, %v1012_v23  ;;  %v1071_v33 = vpop.f32.mrf.mxu1 }
 0x113   :  { %v1072_v39 = vadd.f32 %v1071_v33, %v1070_v25  ;;  %v1015_v40 = vpop.f32.mrf.mxu0  ;;  %v646_v53 = vmul.f32 %v1401_v38, %v1401_v38  ;;  %v626_v59 = vadd.f32 %v625_v52, %v1401_v38 }
 0x114   :  { %v1073_v41 = vpop.f32.mrf.mxu1 }
 0x115   :  { %v1406_v46 = vadd.f32 %v1072_v39, %v1014_v32  ;;  %v1016_v47 = vpop.f32.mrf.mxu0  ;;  %v659_v1 = vadd.f32 %v658_v57, %v646_v53  ;;  %v683_v39 = vshrl.u32 %v682_v36, 7 }
 0x116   :  { %v1017_v48 = vadd.f32 %v1016_v47, %v1015_v40  ;;  %v1074_v49 = vpop.f32.mrf.mxu1  ;;  %v675_v40 = vld [vmem:[%s1470_s2] sm:$0x1] }
 0x117   :  { %v1075_v54 = vadd.f32 %v1074_v49, %v1073_v41  ;;  %v1018_v55 = vpop.f32.mrf.mxu0  ;;  %v647_v60 = vmul.f32 %v1406_v46, %v1406_v46  ;;  %v627_v3 = vadd.f32 %v626_v59, %v1406_v46  ;;  %v684_v41 = vsub.s32 0, %v683_v39 }
 0x118   :  { %v1076_v56 = vpop.f32.mrf.mxu1 }
 0x119   :  { %v611_v61 = vadd.f32 %v1075_v54, %v1017_v48  ;;  %v1019_v62 = vpop.f32.mrf.mxu0  ;;  %v660_v6 = vadd.f32 %v659_v1, %v647_v60 }
 0x11a   :  { %v1020_v63 = vadd.f32 %v1019_v62, %v1018_v55  ;;  %v1077_v0 = vpop.f32.mrf.mxu1 }
 0x11b   :  { %v648_v4 = vmul.f32 %v611_v61, %v611_v61  ;;  %v1078_v5 = vadd.f32 %v1077_v0, %v1076_v56  ;;  %v628_v7 = vadd.f32 %v627_v3, %v611_v61 }
 0x11d   :  { %v614_v8 = vadd.f32 %v1078_v5, %v1020_v63  ;;  %v661_v9 = vadd.f32 %v660_v6, %v648_v4 }
 0x11f   :  { %v629_v10 = vadd.f32 %v628_v7, %v614_v8  ;;  %v649_v11 = vmul.f32 %v614_v8, %v614_v8 }
 0x121   :  { %v630_v13 = vrot.slane %v629_v10, 4  ;;  %v662_v14 = vadd.f32 %v661_v9, %v649_v11 }
 0x123   :  { %v631_v15 = vadd.f32 %v630_v13, %v629_v10  ;;  %v663_v16 = vrot.slane %v662_v14, 4 }
 0x125   :  { %v632_v17 = vrot.slane %v631_v15, 2  ;;  %v664_v18 = vadd.f32 %v663_v16, %v662_v14 }
 0x127   :  { %v633_v19 = vadd.f32 %v632_v17, %v631_v15  ;;  %v665_v21 = vrot.slane %v664_v18, 2 }
 0x129   :  { %v634_v22 = vrot.slane %v633_v19, 1  ;;  %v666_v23 = vadd.f32 %v665_v21, %v664_v18 }
 0x12b   :  { %v635_v24 = vadd.f32 %v634_v22, %v633_v19  ;;  %v667_v25 = vrot.slane %v666_v23, 1 }
 0x12d   :  { %v668_v26 = vadd.f32 %v667_v25, %v666_v23  ;;  %v670_v27 = vmul.f32 0.010204081, %v635_v24 }
 0x12f   :  { %v671_v29 = vmul.f32 0.010204081, %v668_v26  ;;  %v672_v30 = vmul.f32 %v670_v27, %v670_v27 }
 0x131   :  { %v673_v32 = vsub.f32 %v671_v29, %v672_v30 }
 0x133   :  { %v674_v33 = vmax.f32 %v673_v32, 0.0 }
 0x135   :  { %v676_v34 = vadd.f32 1e-05, %v674_v33 }
 0x137   :  { %1153 = vrsqrt.f32 %v676_v34 }
 0x144   :  { %v1154_v42 = vpop.eup %1153 }
 0x145   :  { %v678_v44 = vmul.f32 %v1154_v42, %v675_v40 }
 0x147   :  { %v680_v47 = vmul.f32 %v678_v44, %v670_v27  ;;  %v685_v48 = vrot.slane %v678_v44, %v684_v41 }
 0x149   :  { %v681_v49 = vsub.f32 %v679_v45, %v680_v47  ;;  %v686_v51 = vmul.f32 %v685_v48, %v1357_v35  ;;  %v687_v52 = vmul.f32 %v685_v48, %v1355_v31  ;;  %v688_v53 = vmul.f32 %v685_v48, %v1359_v37 }
 0x14a   :  { %v689_v54 = vmul.f32 %v685_v48, %v1363_v43  ;;  %v690_v55 = vmul.f32 %v685_v48, %v1369_v50  ;;  %v691_v56 = vmul.f32 %v685_v48, %v1375_v58  ;;  %v692_v57 = vmul.f32 %v685_v48, %v1380_v2 }
 0x14b   :  { %v693_v59 = vmul.f32 %v685_v48, %v1386_v12  ;;  %v694_v60 = vmul.f32 %v685_v48, %v1391_v20  ;;  %v695_v62 = vmul.f32 %v685_v48, %v1396_v28  ;;  %v703_v63 = vrot.slane %v681_v49, %v684_v41 }
 0x14c   :  { %v696_v35 = vmul.f32 %v685_v48, %v1401_v38  ;;  %v697_v31 = vmul.f32 %v685_v48, %v1406_v46  ;;  %v698_v37 = vmul.f32 %v685_v48, %v611_v61  ;;  %v699_v0 = vmul.f32 %v685_v48, %v614_v8 }
 0x14d   :  { %v704_v43 = vadd.f32 %v703_v63, %v686_v51  ;;  %v705_v1 = vadd.f32 %v703_v63, %v687_v52  ;;  %v706_v50 = vadd.f32 %v703_v63, %v688_v53  ;;  %v707_v3 = vadd.f32 %v703_v63, %v689_v54 }
 0x14e   :  { %v708_v58 = vadd.f32 %v703_v63, %v690_v55  ;;  %v709_v4 = vadd.f32 %v703_v63, %v691_v56  ;;  %v710_v2 = vadd.f32 %v703_v63, %v692_v57  ;;  %v711_v5 = vadd.f32 %v703_v63, %v693_v59 }
 0x14f   :  { %v712_v12 = vadd.f32 %v703_v63, %v694_v60  ;;  %v713_v6 = vadd.f32 %v703_v63, %v695_v62  ;;  %v714_v20 = vadd.f32 %v703_v63, %v696_v35  ;;  %v715_v7 = vadd.f32 %v703_v63, %v697_v31 }
 0x150   :  { %v716_v28 = vadd.f32 %v703_v63, %v698_v37  ;;  %v717_v9 = vadd.f32 %v703_v63, %v699_v0  ;;  %vm718_vm0 = vcmp.ge.f32.partialorder %v704_v43, 0.0  ;;  %vm719_vm1 = vcmp.ge.f32.partialorder %v705_v1, 0.0 }
 0x151   :  { %vm720_vm2 = vcmp.ge.f32.partialorder %v706_v50, 0.0  ;;  %vm721_vm3 = vcmp.ge.f32.partialorder %v707_v3, 0.0  ;;  %vm722_vm4 = vcmp.ge.f32.partialorder %v708_v58, 0.0  ;;  %vm723_vm5 = vcmp.ge.f32.partialorder %v709_v4, 0.0 }
 0x152   :  { %vm724_vm6 = vcmp.ge.f32.partialorder %v710_v2, 0.0  ;;  %vm725_vm7 = vcmp.ge.f32.partialorder %v711_v5, 0.0  ;;  %vm726_vm8 = vcmp.ge.f32.partialorder %v712_v12, 0.0  ;;  %vm727_vm9 = vcmp.ge.f32.partialorder %v713_v6, 0.0 }
 0x153   :  { %vm728_vm10 = vcmp.ge.f32.partialorder %v714_v20, 0.0  ;;  %vm729_vm11 = vcmp.ge.f32.partialorder %v715_v7, 0.0  ;;  %vm730_vm12 = vcmp.ge.f32.partialorder %v716_v28, 0.0  ;;  %vm731_vm13 = vcmp.ge.f32.partialorder %v717_v9, 0.0 }
 0x154   :  { %v732_v38 = vmul.f32 0.2, %v704_v43  ;;  %v733_v46 = vmul.f32 0.2, %v705_v1  ;;  %v734_v61 = vmul.f32 0.2, %v706_v50 }
 0x155   :  { %v735_v8 = vmul.f32 0.2, %v707_v3  ;;  %v736_v10 = vmul.f32 0.2, %v708_v58  ;;  %v737_v11 = vmul.f32 0.2, %v709_v4 }
 0x156   :  { %v738_v13 = vmul.f32 0.2, %v710_v2  ;;  %v739_v14 = vmul.f32 0.2, %v711_v5  ;;  %v740_v15 = vmul.f32 0.2, %v712_v12  ;;  %v746_v16 = vsel %vm718_vm0, %v704_v43, %v732_v38 }
 0x157   :  { %v741_v17 = vmul.f32 0.2, %v713_v6  ;;  %v742_v18 = vmul.f32 0.2, %v714_v20  ;;  %v743_v19 = vmul.f32 0.2, %v715_v7  ;;  %v747_v21 = vsel %vm719_vm1, %v705_v1, %v733_v46 }
 0x158   :  { %v744_v22 = vmul.f32 0.2, %v716_v28  ;;  %v745_v23 = vmul.f32 0.2, %v717_v9  ;;  %v748_v24 = vsel %vm720_vm2, %v706_v50, %v734_v61  ;;  %v749_v25 = vsel %vm721_vm3, %v707_v3, %v735_v8 }
 0x159   :  { %v750_v26 = vsel %vm722_vm4, %v708_v58, %v736_v10  ;;  %v751_v27 = vsel %vm723_vm5, %v709_v4, %v737_v11  ;;  %v752_v29 = vsel %vm724_vm6, %v710_v2, %v738_v13  ;;  %v753_v30 = vsel %vm725_vm7, %v711_v5, %v739_v14 }
 0x15a   :  { %v754_v32 = vsel %vm726_vm8, %v712_v12, %v740_v15  ;;  %v755_v33 = vsel %vm727_vm9, %v713_v6, %v741_v17  ;;  %v756_v34 = vsel %vm728_vm10, %v714_v20, %v742_v18  ;;  %v757_v36 = vsel %vm729_vm11, %v715_v7, %v743_v19 }
 0x15b   :  { %v758_v39 = vsel %vm730_vm12, %v716_v28, %v744_v22  ;;  %v759_v40 = vsel %vm731_vm13, %v717_v9, %v745_v23  ;;  %v925_v41 = vpack.c.bf16 %v747_v21, %v746_v16  ;;  %v930_v42 = vpack.c.bf16 %v749_v25, %v748_v24 }
 0x15c   :  { %v935_v44 = vpack.c.bf16 %v751_v27, %v750_v26  ;;  %v940_v45 = vpack.c.bf16 %v753_v30, %v752_v29  ;;  %v945_v47 = vpack.c.bf16 %v755_v33, %v754_v32  ;;  %v950_v48 = vpack.c.bf16 %v757_v36, %v756_v34 }
 0x15d   :  { %926 = vst [vmem:[%s1471_s3] sm:$0xff] %v925_v41   ;;  %957 = vst [vmem:[%s1471_s3 + $0x8] sm:$0xff] %v930_v42   ;;  %v955_v49 = vpack.c.bf16 %v759_v40, %v758_v39 }
 0x15e   :  { %958 = vst [vmem:[%s1471_s3 + $0x10] sm:$0xff] %v935_v44   ;;  %959 = vst [vmem:[%s1471_s3 + $0x18] sm:$0xff] %v940_v45  }
 0x15f   :  { %960 = vst [vmem:[%s1471_s3 + $0x20] sm:$0xff] %v945_v47   ;;  %961 = vst [vmem:[%s1471_s3 + $0x28] sm:$0xff] %v950_v48  }
 0x160   :  { %962 = vst [vmem:[%s1471_s3 + $0x30] sm:$0xff] %v955_v49  }

// kernel: discriminator_forward.7
= control target key start
LH: loop header
LB: loop body
LE: loop exit
PB: predicated region body
PF: predicated region fallthrough
CT: control target
= control target key end

     0   :  { %s1357_s1 = inlined_call_operand.vmem [shape: bf16[896,128], index: 1, kind: input, shape index: {}]   ;;  %s1358_s0 = inlined_call_operand.vmem [shape: bf16[32,896], index: 0, kind: input, shape index: {}]   ;;  %s1359_s2 = inlined_call_operand.vmem [shape: f32[8,128], index: 2, kind: input, shape index: {}]   ;;  %s1360_s3 = inlined_call_operand.vmem [shape: bf16[32,128], index: 3, kind: output, shape index: {}]  }
   0x1   :  { %v1037_v0 = vld [vmem:[%s1357_s1 + $0x78] sm:$0xff]   ;;  %v1041_v4 = vld [vmem:[%s1357_s1 + $0x70] sm:$0xff]   ;;  %v1045_v8 = vld [vmem:[%s1357_s1 + $0x68] sm:$0xff]  }
   0x2   :  { %v1038_v1 = vld [vmem:[%s1357_s1 + $0xf8] sm:$0xff]   ;;  %923 = vmatprep.subr.bf16.mxu0 %v1037_v0  ;;  %v1042_v5 = vld [vmem:[%s1357_s1 + $0xf0] sm:$0xff]   ;;  %v1046_v9 = vld [vmem:[%s1357_s1 + $0xe8] sm:$0xff]  }
   0x3   :  { %v1039_v2 = vld [vmem:[%s1357_s1 + $0x38] sm:$0xff]   ;;  %951 = vmatprep.subr.bf16.mxu1 %v1038_v1  ;;  %v1043_v6 = vld [vmem:[%s1357_s1 + $0x30] sm:$0xff]   ;;  %v1047_v10 = vld [vmem:[%s1357_s1 + $0x28] sm:$0xff]  }
   0x4   :  { %v1040_v3 = vld [vmem:[%s1357_s1 + $0xb8] sm:$0xff]   ;;  %924 = vmatpush3.bf16.msra.mxu0 %v1039_v2  ;;  %v1044_v7 = vld [vmem:[%s1357_s1 + $0xb0] sm:$0xff]   ;;  %v1048_v11 = vld [vmem:[%s1357_s1 + $0xa8] sm:$0xff]  }
   0x5   :  { %952 = vmatpush3.bf16.msra.mxu1 %v1040_v3  ;;  %925 = vmatprep.subr.bf16.mxu0 %v1041_v4  ;;  %v1049_v12 = vld [vmem:[%s1357_s1 + $0x60] sm:$0xff]   ;;  %v1053_v16 = vld [vmem:[%s1357_s1 + $0x58] sm:$0xff]   ;;  %v1057_v20 = vld [vmem:[%s1357_s1 + $0x50] sm:$0xff]  }
   0x6   :  { %953 = vmatprep.subr.bf16.mxu1 %v1042_v5  ;;  %v1050_v13 = vld [vmem:[%s1357_s1 + $0xe0] sm:$0xff]   ;;  %v1054_v17 = vld [vmem:[%s1357_s1 + $0xd8] sm:$0xff]   ;;  %v1058_v21 = vld [vmem:[%s1357_s1 + $0xd0] sm:$0xff]  }
   0x7   :  { %v1051_v14 = vld [vmem:[%s1357_s1 + $0x20] sm:$0xff]   ;;  %v1055_v18 = vld [vmem:[%s1357_s1 + $0x18] sm:$0xff]   ;;  %v1059_v22 = vld [vmem:[%s1357_s1 + $0x10] sm:$0xff]  }
   0x8   :  { %926 = vmatpush3.bf16.msra.mxu0 %v1043_v6  ;;  %v1052_v15 = vld [vmem:[%s1357_s1 + $0xa0] sm:$0xff]   ;;  %v1056_v19 = vld [vmem:[%s1357_s1 + $0x98] sm:$0xff]   ;;  %v1060_v23 = vld [vmem:[%s1357_s1 + $0x90] sm:$0xff]  }
   0x9   :  { %954 = vmatpush3.bf16.msra.mxu1 %v1044_v7  ;;  %927 = vmatprep.subr.bf16.mxu0 %v1045_v8  ;;  %v1061_v24 = vld [vmem:[%s1357_s1 + $0x48] sm:$0xff]   ;;  %v1065_v28 = vld [vmem:[%s1357_s1 + $0x40] sm:$0xff]   ;;  %v1075_v36 = vld [vmem:[%s1357_s1 + $0x178] sm:$0xff]  }
   0xa   :  { %955 = vmatprep.subr.bf16.mxu1 %v1046_v9  ;;  %v1062_v25 = vld [vmem:[%s1357_s1 + $0xc8] sm:$0xff]   ;;  %v1066_v29 = vld [vmem:[%s1357_s1 + $0xc0] sm:$0xff]   ;;  %v1076_v37 = vld [vmem:[%s1357_s1 + $0x138] sm:$0xff]  }
   0xb   :  { %v1063_v26 = vld [vmem:[%s1357_s1 + $0x8] sm:$0xff]   ;;  %v1067_v30 = vld [vmem:[%s1357_s1] sm:$0xff]   ;;  %v1077_v38 = vld [vmem:[%s1357_s1 + $0x1b8] sm:$0xff]  }
   0xc   :  { %928 = vmatpush3.bf16.msra.mxu0 %v1047_v10  ;;  %v1064_v27 = vld [vmem:[%s1357_s1 + $0x88] sm:$0xff]   ;;  %v1068_v31 = vld [vmem:[%s1357_s1 + $0x80] sm:$0xff]   ;;  %v1078_v39 = vld [vmem:[%s1357_s1 + $0x170] sm:$0xff]  }
   0xd   :  { %956 = vmatpush3.bf16.msra.mxu1 %v1048_v11  ;;  %929 = vmatprep.subr.bf16.mxu0 %v1049_v12  ;;  %v1069_v32 = vld [vmem:[%s1358_s0] ss:$28 sps:$4 sm:$0xff]   ;;  %v1072_v34 = vld [vmem:[%s1358_s0 + $0x8] ss:$28 sps:$4 sm:$0xff]   ;;  %v1079_v40 = vld [vmem:[%s1357_s1 + $0x130] sm:$0xff]  }
   0xe   :  { %957 = vmatprep.subr.bf16.mxu1 %v1050_v13  ;;  %v1071_v33 = vld [vmem:[%s1358_s0 + $0x4] ss:$28 sps:$4 sm:$0xff]   ;;  %v1074_v35 = vld [vmem:[%s1358_s0 + $0xc] ss:$28 sps:$4 sm:$0xff]   ;;  %v1080_v41 = vld [vmem:[%s1357_s1 + $0x1b0] sm:$0xff]  }
   0xf   :  { %583 = vmatprep.mubr.bf16.mxu0 %v1071_v33  ;;  %632 = vmatprep.mubr.bf16.mxu1 %v1074_v35  ;;  %v1081_v42 = vld [vmem:[%s1357_s1 + $0x168] sm:$0xff]   ;;  %v1084_v45 = vld [vmem:[%s1357_s1 + $0x160] sm:$0xff]   ;;  %v1087_v48 = vld [vmem:[%s1357_s1 + $0x158] sm:$0xff]  }
  0x10   :  { %930 = vmatpush3.bf16.msra.mxu0 %v1051_v14  ;;  %v1082_v43 = vld [vmem:[%s1357_s1 + $0x128] sm:$0xff]   ;;  %v1085_v46 = vld [vmem:[%s1357_s1 + $0x120] sm:$0xff]   ;;  %v1088_v49 = vld [vmem:[%s1358_s0 + $0x3c] ss:$28 sps:$4 sm:$0xff]  }
  0x11   :  { %958 = vmatpush3.bf16.msra.mxu1 %v1052_v15  ;;  %931 = vmatprep.subr.bf16.mxu0 %v1053_v16  ;;  %v1083_v44 = vld [vmem:[%s1357_s1 + $0x1a8] sm:$0xff]   ;;  %v1086_v47 = vld [vmem:[%s1357_s1 + $0x1a0] sm:$0xff]   ;;  %v1092_v51 = vld [vmem:[%s1357_s1 + $0x118] sm:$0xff]  }
  0x12   :  { %959 = vmatprep.subr.bf16.mxu1 %v1054_v17  ;;  %v1090_v50 = vld [vmem:[%s1358_s0 + $0x44] ss:$28 sps:$4 sm:$0xff]   ;;  %v1093_v52 = vld [vmem:[%s1358_s0 + $0x38] ss:$28 sps:$4 sm:$0xff]   ;;  %v1099_v58 = vld [vmem:[%s1357_s1 + $0x148] sm:$0xff]  }
  0x13   :  { %v1094_v53 = vld [vmem:[%s1358_s0 + $0x40] ss:$28 sps:$4 sm:$0xff]   ;;  %v1096_v55 = vld [vmem:[%s1357_s1 + $0x150] sm:$0xff]   ;;  %v1100_v59 = vld [vmem:[%s1357_s1 + $0x108] sm:$0xff]  }
  0x14   :  { %932 = vmatpush3.bf16.msra.mxu0 %v1055_v18  ;;  %v1095_v54 = vld [vmem:[%s1357_s1 + $0x198] sm:$0xff]   ;;  %v1097_v56 = vld [vmem:[%s1357_s1 + $0x110] sm:$0xff]   ;;  %v1101_v60 = vld [vmem:[%s1357_s1 + $0x188] sm:$0xff]  }
  0x15   :  { %960 = vmatpush3.bf16.msra.mxu1 %v1056_v19  ;;  %933 = vmatprep.subr.bf16.mxu0 %v1057_v20  ;;  %v1098_v57 = vld [vmem:[%s1357_s1 + $0x190] sm:$0xff]   ;;  %v1102_v61 = vld [vmem:[%s1357_s1 + $0x140] sm:$0xff]   ;;  %v1110_v3 = vld [vmem:[%s1358_s0 + $0x4c] ss:$28 sps:$4 sm:$0xff]  }
  0x16   :  { %961 = vmatprep.subr.bf16.mxu1 %v1058_v21  ;;  %v1104_v62 = vld [vmem:[%s1357_s1 + $0x180] sm:$0xff]   ;;  %v1107_v0 = vld [vmem:[%s1358_s0 + $0x14] ss:$28 sps:$4 sm:$0xff]  }
  0x17   :  { %v1103_v63 = vld [vmem:[%s1357_s1 + $0x100] sm:$0xff]   ;;  %v1108_v1 = vld [vmem:[%s1358_s0 + $0x18] ss:$28 sps:$4 sm:$0xff]   ;;  %v1105_v2 = vld [vmem:[%s1358_s0 + $0x10] ss:$28 sps:$4 sm:$0xff]  }
  0x18   :  { %934 = vmatpush3.bf16.msra.mxu0 %v1059_v22  ;;  %v1109_v4 = vld [vmem:[%s1358_s0 + $0x50] ss:$28 sps:$4 sm:$0xff]   ;;  %v1112_v5 = vld [vmem:[%s1358_s0 + $0x48] ss:$28 sps:$4 sm:$0xff]  }
  0x19   :  { %962 = vmatpush3.bf16.msra.mxu1 %v1060_v23  ;;  %935 = vmatprep.subr.bf16.mxu0 %v1061_v24 }
  0x1a   :  { %963 = vmatprep.subr.bf16.mxu1 %v1062_v25 }
  0x1c   :  { %936 = vmatpush3.bf16.msra.mxu0 %v1063_v26 }
  0x1d   :  { %964 = vmatpush3.bf16.msra.mxu1 %v1064_v27  ;;  %937 = vmatprep.subr.bf16.mxu0 %v1065_v28 }
  0x1e   :  { %965 = vmatprep.subr.bf16.mxu1 %v1066_v29 }
  0x20   :  { %938 = vmatpush3.bf16.msra.mxu0 %v1067_v30 }
  0x21   :  { %966 = vmatpush3.bf16.msra.mxu1 %v1068_v31  ;;  %979 = vmatprep.subr.bf16.mxu0 %v1075_v36 }
  0x22   :  { %1017 = vmatprep.subr.bf16.mxu1 %v1077_v38 }
  0x23   :  { %584 = vmatmul.mubr.bf16.vlgmr.msra.gmra.mxu0 %v1069_v32 }
  0x24   :  { %633 = vmatmul.mubr.bf16.vlgmr.msra.gmra.mxu1 %v1072_v34  ;;  %980 = vmatpush3.bf16.msra.mxu0 %v1076_v37 }
  0x25   :  { %1018 = vmatpush3.bf16.msra.mxu1 %v1077_v38  ;;  %981 = vmatprep.subr.bf16.mxu0 %v1078_v39 }
  0x26   :  { %1019 = vmatprep.subr.bf16.mxu1 %v1080_v41  ;;  %591 = vmatprep.mubr.bf16.mxu0 %v1088_v49 }
  0x27   :  { %640 = vmatprep.mubr.bf16.mxu1 %v1090_v50 }
  0x28   :  { %982 = vmatpush3.bf16.msra.mxu0 %v1079_v40 }
  0x29   :  { %983 = vmatprep.subr.bf16.mxu0 %v1081_v42  ;;  %1020 = vmatpush3.bf16.msra.mxu1 %v1080_v41 }
  0x2a   :  { %1021 = vmatprep.subr.bf16.mxu1 %v1083_v44 }
  0x2b   :  { %592 = vmatmul.mubr.bf16.gmra.mxu0 %v1093_v52 }
  0x2c   :  { %984 = vmatpush3.bf16.msra.mxu0 %v1082_v43  ;;  %641 = vmatmul.mubr.bf16.gmra.mxu1 %v1094_v53 }
  0x2d   :  { %985 = vmatprep.subr.bf16.mxu0 %v1084_v45  ;;  %1022 = vmatpush3.bf16.msra.mxu1 %v1083_v44 }
  0x2e   :  { %1023 = vmatprep.subr.bf16.mxu1 %v1086_v47  ;;  %681 = vmatprep.mubr.bf16.mxu0 %v1107_v0 }
  0x2f   :  { %1033 = vmatprep.mubr.bf16.mxu1 %v1108_v1 }
  0x30   :  { %986 = vmatpush3.bf16.msra.mxu0 %v1085_v46 }
  0x31   :  { %987 = vmatprep.subr.bf16.mxu0 %v1087_v48  ;;  %1024 = vmatpush3.bf16.msra.mxu1 %v1086_v47 }
  0x32   :  { %1025 = vmatprep.subr.bf16.mxu1 %v1095_v54 }
  0x34   :  { %988 = vmatpush3.bf16.msra.mxu0 %v1092_v51 }
  0x35   :  { %989 = vmatprep.subr.bf16.mxu0 %v1096_v55  ;;  %1026 = vmatpush3.bf16.msra.mxu1 %v1095_v54 }
  0x36   :  { %1027 = vmatprep.subr.bf16.mxu1 %v1098_v57 }
  0x38   :  { %990 = vmatpush3.bf16.msra.mxu0 %v1097_v56 }
  0x39   :  { %991 = vmatprep.subr.bf16.mxu0 %v1099_v58  ;;  %1028 = vmatpush3.bf16.msra.mxu1 %v1098_v57 }
  0x3a   :  { %1029 = vmatprep.subr.bf16.mxu1 %v1101_v60 }
  0x3c   :  { %992 = vmatpush3.bf16.msra.mxu0 %v1100_v59 }
  0x3d   :  { %993 = vmatprep.subr.bf16.mxu0 %v1102_v61  ;;  %1030 = vmatpush3.bf16.msra.mxu1 %v1101_v60 }
  0x3e   :  { %1031 = vmatprep.subr.bf16.mxu1 %v1104_v62 }
  0x40   :  { %994 = vmatpush3.bf16.msra.mxu0 %v1103_v63 }
  0x41   :  { %1032 = vmatpush3.bf16.msra.mxu1 %v1104_v62 }
  0x43   :  { %682 = vmatmul.mubr.bf16.vlgmr.msra.gmra.mxu0 %v1105_v2 }
  0x44   :  { %689 = vmatprep.mubr.bf16.mxu0 %v1110_v3  ;;  %1034 = vmatmul.mubr.bf16.vlgmr.msra.gmra.mxu1 %v1109_v4 }
  0x4b   :  { %690 = vmatmul.mubr.bf16.gmra.mxu0 %v1112_v5 }
  0xe3   :  { %v939_v6 = vpop.f32.mrf.mxu0 }
  0xe4   :  { %v967_v7 = vpop.f32.mrf.mxu1 }
  0xe5   :  { %v940_v8 = vpop.f32.mrf.mxu0 }
  0xe6   :  { %v968_v9 = vpop.f32.mrf.mxu1  ;;  %v941_v25 = vadd.f32 %v940_v8, %v939_v6 }
  0xe7   :  { %v942_v10 = vpop.f32.mrf.mxu0  ;;  %v969_v26 = vadd.f32 %v968_v9, %v967_v7 }
  0xe8   :  { %v970_v11 = vpop.f32.mrf.mxu1 }
  0xe9   :  { %v943_v12 = vpop.f32.mrf.mxu0  ;;  %v635_v36 = vadd.f32 %v969_v26, %v941_v25 }
  0xea   :  { %v971_v13 = vpop.f32.mrf.mxu1  ;;  %v944_v27 = vadd.f32 %v943_v12, %v942_v10 }
  0xeb   :  { %v945_v14 = vpop.f32.mrf.mxu0  ;;  %v972_v28 = vadd.f32 %v971_v13, %v970_v11 }
  0xec   :  { %v973_v15 = vpop.f32.mrf.mxu1 }
  0xed   :  { %v946_v16 = vpop.f32.mrf.mxu0  ;;  %v638_v37 = vadd.f32 %v972_v28, %v944_v27  ;;  %v779_v28 = vld [vmem:[%s1359_s2 + $0x1] sm:$0x1] }
  0xee   :  { %v974_v17 = vpop.f32.mrf.mxu1  ;;  %v947_v32 = vadd.f32 %v946_v16, %v945_v14 }
  0xef   :  { %v948_v18 = vpop.f32.mrf.mxu0  ;;  %v975_v33 = vadd.f32 %v974_v17, %v973_v15 }
  0xf0   :  { %v976_v19 = vpop.f32.mrf.mxu1 }
  0xf1   :  { %v949_v20 = vpop.f32.mrf.mxu0  ;;  %v643_v42 = vadd.f32 %v975_v33, %v947_v32 }
  0xf2   :  { %v977_v21 = vpop.f32.mrf.mxu1  ;;  %v950_v45 = vadd.f32 %v949_v20, %v948_v18 }
  0xf3   :  { %v978_v46 = vadd.f32 %v977_v21, %v976_v19 }
  0xf5   :  { %v646_v53 = vadd.f32 %v978_v46, %v950_v45 }
 0x103   :  { %v995_v22 = vpop.f32.mrf.mxu0 }
 0x104   :  { %v1035_v24 = vpop.f32.mrf.mxu1 }
 0x105   :  { %v996_v23 = vpop.f32.mrf.mxu0 }
 0x106   :  { %v732_v30 = vpop.f32.mrf.mxu1  ;;  %v997_v31 = vadd.f32 %v996_v23, %v995_v22  ;;  %v782_v22 = vlaneseq }
 0x107   :  { %v998_v29 = vpop.f32.mrf.mxu0 }
 0x108   :  { %v1036_v35 = vpop.f32.mrf.mxu1  ;;  %v684_v40 = vadd.f32 %v997_v31, %v635_v36  ;;  %v783_v23 = vshrl.u32 %v782_v22, 7 }
 0x109   :  { %v999_v34 = vpop.f32.mrf.mxu0 }
 0x10a   :  { %v1000_v38 = vadd.f32 %v999_v34, %v998_v29  ;;  %v735_v43 = vpop.f32.mrf.mxu1  ;;  %v733_v50 = vadd.f32 %v732_v30, %v684_v40  ;;  %v784_v25 = vsub.s32 0, %v783_v23 }
 0x10b   :  { %v1001_v39 = vpop.f32.mrf.mxu0 }
 0x10c   :  { %v687_v41 = vadd.f32 %v1000_v38, %v638_v37  ;;  %v756_v57 = vmul.f32 %v733_v50, %v733_v50 }
 0x10d   :  { %v1002_v44 = vpop.f32.mrf.mxu0 }
 0x10e   :  { %v736_v47 = vadd.f32 %v735_v43, %v687_v41  ;;  %v1003_v48 = vadd.f32 %v1002_v44, %v1001_v39 }
 0x10f   :  { %v1004_v49 = vpop.f32.mrf.mxu0 }
 0x110   :  { %v692_v51 = vadd.f32 %v1003_v48, %v643_v42  ;;  %v757_v54 = vmul.f32 %v736_v47, %v736_v47  ;;  %v747_v58 = vadd.f32 %v736_v47, %v733_v50 }
 0x111   :  { %v1005_v52 = vpop.f32.mrf.mxu0 }
 0x112   :  { %v741_v55 = vadd.f32 %v1035_v24, %v692_v51  ;;  %v1006_v56 = vadd.f32 %v1005_v52, %v1004_v49  ;;  %v760_v61 = vadd.f32 %v757_v54, %v756_v57  ;;  %v775_v24 = vld [vmem:[%s1359_s2] sm:$0x1] }
 0x114   :  { %v758_v59 = vmul.f32 %v741_v55, %v741_v55  ;;  %v695_v60 = vadd.f32 %v1006_v56, %v646_v53  ;;  %v748_v62 = vadd.f32 %v747_v58, %v741_v55 }
 0x116   :  { %v744_v63 = vadd.f32 %v1036_v35, %v695_v60  ;;  %v761_v0 = vadd.f32 %v760_v61, %v758_v59 }
 0x118   :  { %v749_v1 = vadd.f32 %v748_v62, %v744_v63  ;;  %v759_v2 = vmul.f32 %v744_v63, %v744_v63 }
 0x11a   :  { %v750_v3 = vrot.slane %v749_v1, 4  ;;  %v762_v4 = vadd.f32 %v761_v0, %v759_v2 }
 0x11c   :  { %v751_v5 = vadd.f32 %v750_v3, %v749_v1  ;;  %v763_v6 = vrot.slane %v762_v4, 4 }
 0x11e   :  { %v752_v7 = vrot.slane %v751_v5, 2  ;;  %v764_v8 = vadd.f32 %v763_v6, %v762_v4 }
 0x120   :  { %v753_v9 = vadd.f32 %v752_v7, %v751_v5  ;;  %v765_v10 = vrot.slane %v764_v8, 2 }
 0x122   :  { %v754_v11 = vrot.slane %v753_v9, 1  ;;  %v766_v12 = vadd.f32 %v765_v10, %v764_v8 }
 0x124   :  { %v755_v13 = vadd.f32 %v754_v11, %v753_v9  ;;  %v767_v14 = vrot.slane %v766_v12, 1 }
 0x126   :  { %v768_v15 = vadd.f32 %v767_v14, %v766_v12  ;;  %v770_v16 = vmul.f32 0.03125, %v755_v13 }
 0x128   :  { %v771_v17 = vmul.f32 0.03125, %v768_v15  ;;  %v772_v18 = vmul.f32 %v770_v16, %v770_v16 }
 0x12a   :  { %v773_v19 = vsub.f32 %v771_v17, %v772_v18 }
 0x12c   :  { %v774_v20 = vmax.f32 %v773_v19, 0.0 }
 0x12e   :  { %v776_v21 = vadd.f32 1e-05, %v774_v20 }
 0x130   :  { %1113 = vrsqrt.f32 %v776_v21 }
 0x13d   :  { %v1114_v26 = vpop.eup %1113 }
 0x13e   :  { %v778_v27 = vmul.f32 %v1114_v26, %v775_v24 }
 0x140   :  { %v780_v29 = vmul.f32 %v778_v27, %v770_v16  ;;  %v785_v30 = vrot.slane %v778_v27, %v784_v25 }
 0x142   :  { %v781_v31 = vsub.f32 %v779_v28, %v780_v29  ;;  %v786_v32 = vmul.f32 %v785_v30, %v733_v50  ;;  %v787_v33 = vmul.f32 %v785_v30, %v736_v47  ;;  %v788_v34 = vmul.f32 %v785_v30, %v741_v55 }
 0x143   :  { %v789_v35 = vmul.f32 %v785_v30, %v744_v63 }
 0x144   :  { %v793_v36 = vrot.slane %v781_v31, %v784_v25 }
 0x146   :  { %v794_v37 = vadd.f32 %v793_v36, %v786_v32  ;;  %v795_v38 = vadd.f32 %v793_v36, %v787_v33  ;;  %v796_v39 = vadd.f32 %v793_v36, %v788_v34  ;;  %v797_v40 = vadd.f32 %v793_v36, %v789_v35 }
 0x148   :  { %vm798_vm0 = vcmp.ge.f32.partialorder %v794_v37, 0.0  ;;  %vm799_vm1 = vcmp.ge.f32.partialorder %v795_v38, 0.0  ;;  %vm800_vm2 = vcmp.ge.f32.partialorder %v796_v39, 0.0  ;;  %vm801_vm3 = vcmp.ge.f32.partialorder %v797_v40, 0.0 }
 0x149   :  { %v802_v41 = vmul.f32 0.2, %v794_v37  ;;  %v803_v42 = vmul.f32 0.2, %v795_v38  ;;  %v804_v43 = vmul.f32 0.2, %v796_v39 }
 0x14a   :  { %v805_v44 = vmul.f32 0.2, %v797_v40 }
 0x14b   :  { %v806_v45 = vsel %vm798_vm0, %v794_v37, %v802_v41  ;;  %v807_v46 = vsel %vm799_vm1, %v795_v38, %v803_v42  ;;  %v808_v48 = vsel %vm800_vm2, %v796_v39, %v804_v43 }
 0x14c   :  { %v809_v49 = vsel %vm801_vm3, %v797_v40, %v805_v44  ;;  %v915_v47 = vpack.c.bf16 %v807_v46, %v806_v45 }
 0x14d   :  { %v920_v50 = vpack.c.bf16 %v809_v49, %v808_v48 }
 0x14e   :  { %916 = vst [vmem:[%s1360_s3] sm:$0xff] %v915_v47  }
 0x14f   :  { %922 = vst [vmem:[%s1360_s3 + $0x8] sm:$0xff] %v920_v50  }

// kernel: discriminator_forward.8
= control target key start
LH: loop header
LB: loop body
LE: loop exit
PB: predicated region body
PF: predicated region fallthrough
CT: control target
= control target key end

     0   :  { %vm1653_vm0 = vmmov 0   ;;  %s2031_s1 = inlined_call_operand.vmem [shape: bf16[1664,128], index: 1, kind: input, shape index: {}]   ;;  %s2032_s0 = inlined_call_operand.vmem [shape: bf16[16,1664], index: 0, kind: input, shape index: {}]   ;;  %s2033_s2 = inlined_call_operand.vmem [shape: f32[8,128], index: 2, kind: input, shape index: {}]   ;;  %s2034_s3 = inlined_call_operand.vmem [shape: bf16[16,128], index: 3, kind: output, shape index: {}]  }
   0x1   :  { %v1529_v0 = vld [vmem:[%s2031_s1 + $0x78] sm:$0xff]   ;;  %v1533_v4 = vld [vmem:[%s2031_s1 + $0x70] sm:$0xff]   ;;  %v1537_v8 = vld [vmem:[%s2031_s1 + $0x68] sm:$0xff]  }
   0x2   :  { %v1530_v1 = vld [vmem:[%s2031_s1 + $0x38] sm:$0xff]   ;;  %1366 = vmatprep.subr.bf16.mxu0 %v1529_v0  ;;  %v1534_v5 = vld [vmem:[%s2031_s1 + $0x30] sm:$0xff]   ;;  %v1538_v9 = vld [vmem:[%s2031_s1 + $0x28] sm:$0xff]  }
   0x3   :  { %v1531_v2 = vld [vmem:[%s2031_s1 + $0xf8] sm:$0xff]   ;;  %1367 = vmatpush3.bf16.msra.mxu0 %v1530_v1  ;;  %v1535_v6 = vld [vmem:[%s2031_s1 + $0xf0] sm:$0xff]   ;;  %v1539_v10 = vld [vmem:[%s2031_s1 + $0xe8] sm:$0xff]  }
   0x4   :  { %v1532_v3 = vld [vmem:[%s2031_s1 + $0xb8] sm:$0xff]   ;;  %1388 = vmatprep.subr.bf16.mxu1 %v1531_v2  ;;  %1368 = vmatprep.subr.bf16.mxu0 %v1533_v4  ;;  %v1536_v7 = vld [vmem:[%s2031_s1 + $0xb0] sm:$0xff]   ;;  %v1540_v11 = vld [vmem:[%s2031_s1 + $0xa8] sm:$0xff]  }
   0x5   :  { %1389 = vmatpush3.bf16.msra.mxu1 %v1532_v3  ;;  %v1541_v12 = vld [vmem:[%s2031_s1 + $0x60] sm:$0xff]   ;;  %v1545_v16 = vld [vmem:[%s2031_s1 + $0x58] sm:$0xff]   ;;  %v1549_v20 = vld [vmem:[%s2031_s1 + $0x50] sm:$0xff]  }
   0x6   :  { %1390 = vmatprep.subr.bf16.mxu1 %v1535_v6  ;;  %v1542_v13 = vld [vmem:[%s2031_s1 + $0x20] sm:$0xff]   ;;  %v1546_v17 = vld [vmem:[%s2031_s1 + $0x18] sm:$0xff]   ;;  %v1550_v21 = vld [vmem:[%s2031_s1 + $0x10] sm:$0xff]  }
   0x7   :  { %1369 = vmatpush3.bf16.msra.mxu0 %v1534_v5  ;;  %v1543_v14 = vld [vmem:[%s2031_s1 + $0xe0] sm:$0xff]   ;;  %v1547_v18 = vld [vmem:[%s2031_s1 + $0xd8] sm:$0xff]   ;;  %v1551_v22 = vld [vmem:[%s2031_s1 + $0xd0] sm:$0xff]  }
   0x8   :  { %1370 = vmatprep.subr.bf16.mxu0 %v1537_v8  ;;  %v1544_v15 = vld [vmem:[%s2031_s1 + $0xa0] sm:$0xff]   ;;  %v1548_v19 = vld [vmem:[%s2031_s1 + $0x98] sm:$0xff]   ;;  %v1552_v23 = vld [vmem:[%s2031_s1 + $0x90] sm:$0xff]  }
   0x9   :  { %1391 = vmatpush3.bf16.msra.mxu1 %v1536_v7  ;;  %v1553_v24 = vld [vmem:[%s2031_s1 + $0x48] sm:$0xff]   ;;  %v1557_v28 = vld [vmem:[%s2031_s1 + $0x40] sm:$0xff]   ;;  %v1564_v34 = vld [vmem:[%s2031_s1 + $0x178] sm:$0xff]  }
   0xa   :  { %1392 = vmatprep.subr.bf16.mxu1 %v1539_v10  ;;  %v1554_v25 = vld [vmem:[%s2031_s1 + $0x8] sm:$0xff]   ;;  %v1558_v29 = vld [vmem:[%s2031_s1] sm:$0xff]   ;;  %v1568_v37 = vld [vmem:[%s2031_s1 + $0x138] sm:$0xff]  }
   0xb   :  { %1371 = vmatpush3.bf16.msra.mxu0 %v1538_v9  ;;  %v1555_v26 = vld [vmem:[%s2031_s1 + $0xc8] sm:$0xff]   ;;  %v1559_v30 = vld [vmem:[%s2031_s1 + $0xc0] sm:$0xff]   ;;  %v1569_v38 = vld [vmem:[%s2031_s1 + $0x1f8] sm:$0xff]  }
   0xc   :  { %1372 = vmatprep.subr.bf16.mxu0 %v1541_v12  ;;  %v1556_v27 = vld [vmem:[%s2031_s1 + $0x88] sm:$0xff]   ;;  %v1560_v31 = vld [vmem:[%s2032_s0] ss:$52 sps:$4 sm:$0xff]   ;;  %v1562_v32 = vld [vmem:[%s2032_s0 + $0x4] ss:$52 sps:$4 sm:$0xff]  }
   0xd   :  { %1393 = vmatpush3.bf16.msra.mxu1 %v1540_v11  ;;  %v1563_v33 = vld [vmem:[%s2031_s1 + $0x80] sm:$0xff]   ;;  %964 = vmatprep.mubr.bf16.mxu0 %v1562_v32  ;;  %v1565_v35 = vld [vmem:[%s2032_s0 + $0x8] ss:$52 sps:$4 sm:$0xff]   ;;  %v1571_v40 = vld [vmem:[%s2031_s1 + $0x170] sm:$0xff]  }
   0xe   :  { %1394 = vmatprep.subr.bf16.mxu1 %v1543_v14  ;;  %v1567_v36 = vld [vmem:[%s2032_s0 + $0xc] ss:$52 sps:$4 sm:$0xff]   ;;  %v1570_v39 = vld [vmem:[%s2031_s1 + $0x1b8] sm:$0xff]   ;;  %v1572_v41 = vld [vmem:[%s2031_s1 + $0x130] sm:$0xff]  }
   0xf   :  { %1373 = vmatpush3.bf16.msra.mxu0 %v1542_v13  ;;  %1005 = vmatprep.mubr.bf16.mxu1 %v1567_v36  ;;  %v1573_v42 = vld [vmem:[%s2031_s1 + $0x1f0] sm:$0xff]   ;;  %v1575_v44 = vld [vmem:[%s2031_s1 + $0x168] sm:$0xff]   ;;  %v1579_v48 = vld [vmem:[%s2031_s1 + $0x160] sm:$0xff]  }
  0x10   :  { %1374 = vmatprep.subr.bf16.mxu0 %v1545_v16  ;;  %v1574_v43 = vld [vmem:[%s2031_s1 + $0x1b0] sm:$0xff]   ;;  %v1576_v45 = vld [vmem:[%s2031_s1 + $0x128] sm:$0xff]   ;;  %v1580_v49 = vld [vmem:[%s2031_s1 + $0x120] sm:$0xff]  }
  0x11   :  { %1395 = vmatpush3.bf16.msra.mxu1 %v1544_v15  ;;  %v1577_v46 = vld [vmem:[%s2031_s1 + $0x1e8] sm:$0xff]   ;;  %v1581_v50 = vld [vmem:[%s2031_s1 + $0x1e0] sm:$0xff]   ;;  %v1583_v52 = vld [vmem:[%s2031_s1 + $0x158] sm:$0xff]  }
  0x12   :  { %1396 = vmatprep.subr.bf16.mxu1 %v1547_v18  ;;  %v1578_v47 = vld [vmem:[%s2031_s1 + $0x1a8] sm:$0xff]   ;;  %v1582_v51 = vld [vmem:[%s2031_s1 + $0x1a0] sm:$0xff]   ;;  %v1584_v53 = vld [vmem:[%s2031_s1 + $0x118] sm:$0xff]  }
  0x13   :  { %1375 = vmatpush3.bf16.msra.mxu0 %v1546_v17  ;;  %v1585_v54 = vld [vmem:[%s2031_s1 + $0x1d8] sm:$0xff]   ;;  %v1587_v56 = vld [vmem:[%s2031_s1 + $0x150] sm:$0xff]   ;;  %v1591_v60 = vld [vmem:[%s2031_s1 + $0x148] sm:$0xff]  }
  0x14   :  { %1376 = vmatprep.subr.bf16.mxu0 %v1549_v20  ;;  %v1586_v55 = vld [vmem:[%s2031_s1 + $0x198] sm:$0xff]   ;;  %v1588_v57 = vld [vmem:[%s2031_s1 + $0x110] sm:$0xff]   ;;  %v1592_v61 = vld [vmem:[%s2031_s1 + $0x108] sm:$0xff]  }
  0x15   :  { %1397 = vmatpush3.bf16.msra.mxu1 %v1548_v19  ;;  %v1589_v58 = vld [vmem:[%s2031_s1 + $0x1d0] sm:$0xff]   ;;  %v1593_v62 = vld [vmem:[%s2031_s1 + $0x1c8] sm:$0xff]   ;;  %v1595_v0 = vld [vmem:[%s2031_s1 + $0x140] sm:$0xff]  }
  0x16   :  { %1398 = vmatprep.subr.bf16.mxu1 %v1551_v22  ;;  %v1590_v59 = vld [vmem:[%s2031_s1 + $0x190] sm:$0xff]   ;;  %v1594_v63 = vld [vmem:[%s2031_s1 + $0x188] sm:$0xff]   ;;  %v1596_v1 = vld [vmem:[%s2031_s1 + $0x100] sm:$0xff]  }
  0x17   :  { %1377 = vmatpush3.bf16.msra.mxu0 %v1550_v21  ;;  %v1597_v2 = vld [vmem:[%s2031_s1 + $0x1c0] sm:$0xff]   ;;  %v1600_v4 = vld [vmem:[%s2032_s0 + $0x14] ss:$52 sps:$4 sm:$0xff]   ;;  %v1602_v6 = vld [vmem:[%s2031_s1 + $0x278] sm:$0xff]  }
  0x18   :  { %1378 = vmatprep.subr.bf16.mxu0 %v1553_v24  ;;  %v1598_v3 = vld [vmem:[%s2032_s0 + $0x10] ss:$52 sps:$4 sm:$0xff]   ;;  %v1603_v7 = vld [vmem:[%s2032_s0 + $0x18] ss:$52 sps:$4 sm:$0xff]  }
  0x19   :  { %1399 = vmatpush3.bf16.msra.mxu1 %v1552_v23  ;;  %v1601_v5 = vld [vmem:[%s2031_s1 + $0x180] sm:$0xff]   ;;  %v1605_v8 = vld [vmem:[%s2032_s0 + $0x1c] ss:$52 sps:$4 sm:$0xff]   ;;  %v1613_v16 = vld [vmem:[%s2031_s1 + $0x268] sm:$0xff]  }
  0x1a   :  { %1400 = vmatprep.subr.bf16.mxu1 %v1555_v26  ;;  %v1606_v9 = vld [vmem:[%s2031_s1 + $0x238] sm:$0xff]   ;;  %v1609_v12 = vld [vmem:[%s2031_s1 + $0x270] sm:$0xff]   ;;  %v1614_v17 = vld [vmem:[%s2031_s1 + $0x228] sm:$0xff]  }
  0x1b   :  { %1379 = vmatpush3.bf16.msra.mxu0 %v1554_v25  ;;  %v1607_v10 = vld [vmem:[%s2031_s1 + $0x2f8] sm:$0xff]   ;;  %v1610_v13 = vld [vmem:[%s2031_s1 + $0x230] sm:$0xff]   ;;  %v1615_v18 = vld [vmem:[%s2031_s1 + $0x2e8] sm:$0xff]  }
  0x1c   :  { %1380 = vmatprep.subr.bf16.mxu0 %v1557_v28  ;;  %v1608_v11 = vld [vmem:[%s2031_s1 + $0x2b8] sm:$0xff]   ;;  %v1611_v14 = vld [vmem:[%s2031_s1 + $0x2f0] sm:$0xff]   ;;  %v1616_v19 = vld [vmem:[%s2031_s1 + $0x2a8] sm:$0xff]  }
  0x1d   :  { %1401 = vmatpush3.bf16.msra.mxu1 %v1556_v27  ;;  %v1612_v15 = vld [vmem:[%s2031_s1 + $0x2b0] sm:$0xff]   ;;  %v1617_v20 = vld [vmem:[%s2031_s1 + $0x260] sm:$0xff]   ;;  %v1621_v24 = vld [vmem:[%s2031_s1 + $0x258] sm:$0xff]  }
  0x1e   :  { %1402 = vmatprep.subr.bf16.mxu1 %v1559_v30  ;;  %v1618_v21 = vld [vmem:[%s2031_s1 + $0x220] sm:$0xff]   ;;  %v1622_v25 = vld [vmem:[%s2031_s1 + $0x218] sm:$0xff]   ;;  %v1625_v28 = vld [vmem:[%s2031_s1 + $0x250] sm:$0xff]  }
  0x1f   :  { %1381 = vmatpush3.bf16.msra.mxu0 %v1558_v29  ;;  %v1619_v22 = vld [vmem:[%s2031_s1 + $0x2e0] sm:$0xff]   ;;  %v1623_v26 = vld [vmem:[%s2031_s1 + $0x2d8] sm:$0xff]   ;;  %v1626_v29 = vld [vmem:[%s2031_s1 + $0x210] sm:$0xff]  }
  0x20   :  { %1410 = vmatprep.subr.bf16.mxu0 %v1564_v34  ;;  %v1620_v23 = vld [vmem:[%s2031_s1 + $0x2a0] sm:$0xff]   ;;  %v1624_v27 = vld [vmem:[%s2031_s1 + $0x298] sm:$0xff]   ;;  %v1627_v30 = vld [vmem:[%s2031_s1 + $0x2d0] sm:$0xff]  }
  0x21   :  { %1403 = vmatpush3.bf16.msra.mxu1 %v1563_v33  ;;  %v1629_v32 = vld [vmem:[%s2031_s1 + $0x248] sm:$0xff]   ;;  %v1633_v36 = vld [vmem:[%s2031_s1 + $0x240] sm:$0xff]  }
  0x22   :  { %965 = vmatmul.mubr.bf16.vlgmr.msra.gmra.mxu0 %v1560_v31  ;;  %1432 = vmatprep.subr.bf16.mxu1 %v1569_v38  ;;  %v1628_v31 = vld [vmem:[%s2031_s1 + $0x290] sm:$0xff]   ;;  %v1630_v33 = vld [vmem:[%s2031_s1 + $0x208] sm:$0xff]   ;;  %v1635_v38 = vld [vmem:[%s2031_s1 + $0x2c0] sm:$0xff]  }
  0x23   :  { %1411 = vmatpush3.bf16.msra.mxu0 %v1568_v37  ;;  %1046 = vmatprep.mubr.bf16.mxu0 %v1600_v4  ;;  %v1631_v34 = vld [vmem:[%s2031_s1 + $0x2c8] sm:$0xff]   ;;  %v1634_v37 = vld [vmem:[%s2031_s1 + $0x200] sm:$0xff]  }
  0x24   :  { %1006 = vmatmul.mubr.bf16.vlgmr.msra.gmra.mxu1 %v1565_v35  ;;  %1412 = vmatprep.subr.bf16.mxu0 %v1571_v40  ;;  %v1632_v35 = vld [vmem:[%s2031_s1 + $0x288] sm:$0xff]   ;;  %v1638_v40 = vld [vmem:[%s2032_s0 + $0x24] ss:$52 sps:$4 sm:$0xff]  }
  0x25   :  { %1433 = vmatpush3.bf16.msra.mxu1 %v1570_v39  ;;  %1087 = vmatprep.mubr.bf16.mxu1 %v1605_v8  ;;  %v1636_v39 = vld [vmem:[%s2032_s0 + $0x20] ss:$52 sps:$4 sm:$0xff]  }
  0x26   :  { %1434 = vmatprep.subr.bf16.mxu1 %v1573_v42  ;;  %v1652_v42 = vmov 0.0  }
  0x27   :  { %1413 = vmatpush3.bf16.msra.mxu0 %v1572_v41  ;;  %v1639_v41 = vld [vmem:[%s2031_s1 + $0x280] sm:$0xff]  }
  0x28   :  { %1414 = vmatprep.subr.bf16.mxu0 %v1575_v44  ;;  %v1642_v44 = vld [vmem:[%s2032_s0 + $0x2c] ss:$52 sps:$4 sm:$0xff]  }
  0x29   :  { %1435 = vmatpush3.bf16.msra.mxu1 %v1574_v43  ;;  %v1640_v43 = vld [vmem:[%s2032_s0 + $0x28] ss:$52 sps:$4 sm:$0xff]  }
  0x2a   :  { %1436 = vmatprep.subr.bf16.mxu1 %v1577_v46  ;;  %v1644_v46 = vld [vmem:[%s2031_s1 + $0x330] sm:$0xff]  }
  0x2b   :  { %1415 = vmatpush3.bf16.msra.mxu0 %v1576_v45  ;;  %v1643_v45 = vld [vmem:[%s2031_s1 + $0x338] sm:$0xff]  }
  0x2c   :  { %1416 = vmatprep.subr.bf16.mxu0 %v1579_v48  ;;  %v1646_v48 = vld [vmem:[%s2031_s1 + $0x320] sm:$0xff]  }
  0x2d   :  { %1437 = vmatpush3.bf16.msra.mxu1 %v1578_v47  ;;  %v1645_v47 = vld [vmem:[%s2031_s1 + $0x328] sm:$0xff]  }
  0x2e   :  { %1438 = vmatprep.subr.bf16.mxu1 %v1581_v50  ;;  %v1648_v50 = vld [vmem:[%s2031_s1 + $0x310] sm:$0xff]  }
  0x2f   :  { %1417 = vmatpush3.bf16.msra.mxu0 %v1580_v49  ;;  %v1647_v49 = vld [vmem:[%s2031_s1 + $0x318] sm:$0xff]  }
  0x30   :  { %1418 = vmatprep.subr.bf16.mxu0 %v1583_v52  ;;  %v1650_v52 = vld [vmem:[%s2031_s1 + $0x300] sm:$0xff]  }
  0x31   :  { %1439 = vmatpush3.bf16.msra.mxu1 %v1582_v51  ;;  %v1649_v51 = vld [vmem:[%s2031_s1 + $0x308] sm:$0xff]  }
  0x32   :  { %1440 = vmatprep.subr.bf16.mxu1 %v1585_v54 }
  0x33   :  { %1419 = vmatpush3.bf16.msra.mxu0 %v1584_v53  ;;  %v1651_v53 = vld [vmem:[%s2032_s0 + $0x30] ss:$52 sps:$4 sm:$0xff]  }
  0x34   :  { %1420 = vmatprep.subr.bf16.mxu0 %v1587_v56 }
  0x35   :  { %1441 = vmatpush3.bf16.msra.mxu1 %v1586_v55 }
  0x36   :  { %1442 = vmatprep.subr.bf16.mxu1 %v1589_v58 }
  0x37   :  { %1421 = vmatpush3.bf16.msra.mxu0 %v1588_v57 }
  0x38   :  { %1422 = vmatprep.subr.bf16.mxu0 %v1591_v60 }
  0x39   :  { %1443 = vmatpush3.bf16.msra.mxu1 %v1590_v59 }
  0x3a   :  { %1444 = vmatprep.subr.bf16.mxu1 %v1593_v62 }
  0x3b   :  { %1423 = vmatpush3.bf16.msra.mxu0 %v1592_v61 }
  0x3c   :  { %1424 = vmatprep.subr.bf16.mxu0 %v1595_v0 }
  0x3d   :  { %1445 = vmatpush3.bf16.msra.mxu1 %v1594_v63 }
  0x3e   :  { %1446 = vmatprep.subr.bf16.mxu1 %v1597_v2 }
  0x3f   :  { %1425 = vmatpush3.bf16.msra.mxu0 %v1596_v1 }
  0x40   :  { %1454 = vmatprep.subr.bf16.mxu0 %v1602_v6  ;;  %v1239_v6 = vld [vmem:[%s2033_s2] ss:$0 sm:$0xff] }
  0x41   :  { %1447 = vmatpush3.bf16.msra.mxu1 %v1601_v5 }
  0x42   :  { %1047 = vmatmul.mubr.bf16.vlgmr.msra.gmra.mxu0 %v1598_v3  ;;  %1476 = vmatprep.subr.bf16.mxu1 %v1607_v10 }
  0x43   :  { %1455 = vmatpush3.bf16.msra.mxu0 %v1606_v9  ;;  %1128 = vmatprep.mubr.bf16.mxu0 %v1638_v40 }
  0x44   :  { %1088 = vmatmul.mubr.bf16.vlgmr.msra.gmra.mxu1 %v1603_v7  ;;  %1456 = vmatprep.subr.bf16.mxu0 %v1609_v12 }
  0x45   :  { %1477 = vmatpush3.bf16.msra.mxu1 %v1608_v11  ;;  %1169 = vmatprep.mubr.bf16.mxu1 %v1642_v44 }
  0x46   :  { %1478 = vmatprep.subr.bf16.mxu1 %v1611_v14 }
  0x47   :  { %1457 = vmatpush3.bf16.msra.mxu0 %v1610_v13 }
  0x48   :  { %1458 = vmatprep.subr.bf16.mxu0 %v1613_v16 }
  0x49   :  { %1479 = vmatpush3.bf16.msra.mxu1 %v1612_v15 }
  0x4a   :  { %1480 = vmatprep.subr.bf16.mxu1 %v1615_v18 }
  0x4b   :  { %1459 = vmatpush3.bf16.msra.mxu0 %v1614_v17 }
  0x4c   :  { %1460 = vmatprep.subr.bf16.mxu0 %v1617_v20 }
  0x4d   :  { %1481 = vmatpush3.bf16.msra.mxu1 %v1616_v19 }
  0x4e   :  { %1482 = vmatprep.subr.bf16.mxu1 %v1619_v22 }
  0x4f   :  { %1461 = vmatpush3.bf16.msra.mxu0 %v1618_v21 }
  0x50   :  { %1462 = vmatprep.subr.bf16.mxu0 %v1621_v24 }
  0x51   :  { %1483 = vmatpush3.bf16.msra.mxu1 %v1620_v23 }
  0x52   :  { %1484 = vmatprep.subr.bf16.mxu1 %v1623_v26 }
  0x53   :  { %1463 = vmatpush3.bf16.msra.mxu0 %v1622_v25 }
  0x54   :  { %1464 = vmatprep.subr.bf16.mxu0 %v1625_v28 }
  0x55   :  { %1485 = vmatpush3.bf16.msra.mxu1 %v1624_v27 }
  0x56   :  { %1486 = vmatprep.subr.bf16.mxu1 %v1627_v30 }
  0x57   :  { %1465 = vmatpush3.bf16.msra.mxu0 %v1626_v29 }
  0x58   :  { %1466 = vmatprep.subr.bf16.mxu0 %v1629_v32 }
  0x59   :  { %1487 = vmatpush3.bf16.msra.mxu1 %v1628_v31 }
  0x5a   :  { %1488 = vmatprep.subr.bf16.mxu1 %v1631_v34 }
  0x5b   :  { %1467 = vmatpush3.bf16.msra.mxu0 %v1630_v33 }
  0x5c   :  { %1468 = vmatprep.subr.bf16.mxu0 %v1633_v36 }
  0x5d   :  { %1489 = vmatpush3.bf16.msra.mxu1 %v1632_v35 }
  0x5e   :  { %1490 = vmatprep.subr.bf16.mxu1 %v1635_v38 }
  0x5f   :  { %1469 = vmatpush3.bf16.msra.mxu0 %v1634_v37 }
  0x60   :  { %1507 = vmatprep.subr.bf16.mxu0 %v1652_v42 }
  0x61   :  { %1491 = vmatpush3.bf16.msra.mxu1 %v1639_v41 }
  0x62   :  { %1129 = vmatmul.mubr.bf16.vlgmr.msra.gmra.mxu0 %v1636_v39 }
  0x63   :  { %1523 = vmatprep.mubr.msk.bf16.mxu0 %vm1653_vm0, %v1652_v42  ;;  %1508 = vmatpush3.bf16.msra.mxu0 %v1643_v45 }
  0x64   :  { %1170 = vmatmul.mubr.bf16.vlgmr.msra.gmra.mxu1 %v1640_v43  ;;  %1509 = vmatprep.subr.bf16.mxu0 %v1652_v42 }
  0x67   :  { %1510 = vmatpush3.bf16.msra.mxu0 %v1644_v46 }
  0x68   :  { %1511 = vmatprep.subr.bf16.mxu0 %v1652_v42 }
  0x6b   :  { %1512 = vmatpush3.bf16.msra.mxu0 %v1645_v47 }
  0x6c   :  { %1513 = vmatprep.subr.bf16.mxu0 %v1652_v42 }
  0x6f   :  { %1514 = vmatpush3.bf16.msra.mxu0 %v1646_v48 }
  0x70   :  { %1515 = vmatprep.subr.bf16.mxu0 %v1652_v42 }
  0x73   :  { %1516 = vmatpush3.bf16.msra.mxu0 %v1647_v49 }
  0x74   :  { %1517 = vmatprep.subr.bf16.mxu0 %v1652_v42 }
  0x77   :  { %1518 = vmatpush3.bf16.msra.mxu0 %v1648_v50 }
  0x78   :  { %1519 = vmatprep.subr.bf16.mxu0 %v1652_v42 }
  0x7b   :  { %1520 = vmatpush3.bf16.msra.mxu0 %v1649_v51 }
  0x7c   :  { %1521 = vmatprep.subr.bf16.mxu0 %v1652_v42 }
  0x7f   :  { %1522 = vmatpush3.bf16.msra.mxu0 %v1650_v52 }
  0x82   :  { %1524 = vmatmul.mubr.bf16.vlgmr.msra.gmra.mxu0 %v1651_v53 }
  0xe2   :  { %v1382_v54 = vpop.f32.mrf.mxu0 }
  0xe4   :  { %v1383_v55 = vpop.f32.mrf.mxu0  ;;  %v1404_v56 = vpop.f32.mrf.mxu1 }
  0xe5   :  { %v1384_v5 = vadd.f32 %v1383_v55, %v1382_v54 }
  0xe6   :  { %v1385_v57 = vpop.f32.mrf.mxu0  ;;  %v1405_v58 = vpop.f32.mrf.mxu1 }
  0xe7   :  { %v967_v9 = vadd.f32 %v1384_v5, %v1239_v6  ;;  %v1406_v10 = vadd.f32 %v1405_v58, %v1404_v56 }
  0xe8   :  { %v1386_v59 = vpop.f32.mrf.mxu0  ;;  %v1407_v60 = vpop.f32.mrf.mxu1 }
  0xe9   :  { %v1387_v11 = vadd.f32 %v1386_v59, %v1385_v57  ;;  %v1008_v15 = vadd.f32 %v1406_v10, %v967_v9 }
  0xea   :  { %v1408_v62 = vpop.f32.mrf.mxu1 }
  0xeb   :  { %v970_v16 = vadd.f32 %v1387_v11, %v1239_v6  ;;  %v1409_v17 = vadd.f32 %v1408_v62, %v1407_v60 }
  0xed   :  { %v1011_v23 = vadd.f32 %v1409_v17, %v970_v16 }
 0x102   :  { %v1426_v61 = vpop.f32.mrf.mxu0 }
 0x104   :  { %v1427_v63 = vpop.f32.mrf.mxu0  ;;  %v1448_v0 = vpop.f32.mrf.mxu1 }
 0x105   :  { %v1428_v14 = vadd.f32 %v1427_v63, %v1426_v61 }
 0x106   :  { %v1429_v1 = vpop.f32.mrf.mxu0  ;;  %v1449_v2 = vpop.f32.mrf.mxu1 }
 0x107   :  { %v1049_v20 = vadd.f32 %v1428_v14, %v1008_v15  ;;  %v1450_v21 = vadd.f32 %v1449_v2, %v1448_v0 }
 0x108   :  { %v1430_v3 = vpop.f32.mrf.mxu0  ;;  %v1451_v4 = vpop.f32.mrf.mxu1 }
 0x109   :  { %v1431_v22 = vadd.f32 %v1430_v3, %v1429_v1  ;;  %v1090_v27 = vadd.f32 %v1450_v21, %v1049_v20 }
 0x10a   :  { %v1452_v8 = vpop.f32.mrf.mxu1 }
 0x10b   :  { %v1052_v28 = vadd.f32 %v1431_v22, %v1011_v23  ;;  %v1453_v29 = vadd.f32 %v1452_v8, %v1451_v4 }
 0x10d   :  { %v1093_v34 = vadd.f32 %v1453_v29, %v1052_v28 }
 0x122   :  { %v1470_v7 = vpop.f32.mrf.mxu0 }
 0x124   :  { %v1471_v12 = vpop.f32.mrf.mxu0  ;;  %v1492_v13 = vpop.f32.mrf.mxu1 }
 0x125   :  { %v1472_v24 = vadd.f32 %v1471_v12, %v1470_v7 }
 0x126   :  { %v1473_v18 = vpop.f32.mrf.mxu0  ;;  %v1493_v19 = vpop.f32.mrf.mxu1 }
 0x127   :  { %v1131_v30 = vadd.f32 %v1472_v24, %v1090_v27  ;;  %v1494_v31 = vadd.f32 %v1493_v19, %v1492_v13 }
 0x128   :  { %v1474_v25 = vpop.f32.mrf.mxu0  ;;  %v1495_v26 = vpop.f32.mrf.mxu1 }
 0x129   :  { %v1475_v32 = vadd.f32 %v1474_v25, %v1473_v18  ;;  %v1172_v37 = vadd.f32 %v1494_v31, %v1131_v30 }
 0x12a   :  { %v1496_v33 = vpop.f32.mrf.mxu1 }
 0x12b   :  { %v1134_v35 = vadd.f32 %v1475_v32, %v1093_v34  ;;  %v1497_v36 = vadd.f32 %v1496_v33, %v1495_v26 }
 0x12d   :  { %v1175_v41 = vadd.f32 %v1497_v36, %v1134_v35 }
 0x142   :  { %v1212_v38 = vpop.f32.mrf.mxu0 }
 0x143   :  { %v1213_v39 = vadd.f32 %v1212_v38, %v1172_v37 }
 0x144   :  { %v1525_v40 = vpop.f32.mrf.mxu0 }
 0x145   :  { %v1221_v43 = vmul.f32 0.2, %v1213_v39  ;;  %vm1219_vm1 = vcmp.ge.f32.partialorder %v1213_v39, 0.0 }
 0x146   :  { %v1215_v42 = vpop.f32.mrf.mxu0 }
 0x147   :  { %v1216_v44 = vadd.f32 %v1215_v42, %v1175_v41  ;;  %v1223_v47 = vsel %vm1219_vm1, %v1213_v39, %v1221_v43 }
 0x148   :  { %v1526_v45 = vpop.f32.mrf.mxu0 }
 0x149   :  { %vm1220_vm2 = vcmp.ge.f32.partialorder %v1216_v44, 0.0  ;;  %v1222_v46 = vmul.f32 0.2, %v1216_v44 }
 0x14b   :  { %v1224_v48 = vsel %vm1220_vm2, %v1216_v44, %v1222_v46 }
 0x14c   :  { %v1364_v49 = vpack.c.bf16 %v1224_v48, %v1223_v47 }
 0x14e   :  { %1365 = vst [vmem:[%s2034_s3] sm:$0xff] %v1364_v49  }

// kernel: discriminator_forward.9
= control target key start
LH: loop header
LB: loop body
LE: loop exit
PB: predicated region body
PF: predicated region fallthrough
CT: control target
= control target key end

     0   :  { %s666_s1 = inlined_call_operand.vmem [shape: bf16[512,128], index: 1, kind: input, shape index: {}]   ;;  %s667_s0 = inlined_call_operand.vmem [shape: bf16[16,512], index: 0, kind: input, shape index: {}]   ;;  %s668_s2 = inlined_call_operand.vmem [shape: f32[8,128], index: 2, kind: input, shape index: {}]   ;;  %s669_s3 = inlined_call_operand.vmem [shape: f32[16,128], index: 3, kind: output, shape index: {}]  }
   0x1   :  { %v483_v0 = vld [vmem:[%s666_s1 + $0x78] sm:$0xff]   ;;  %v487_v4 = vld [vmem:[%s666_s1 + $0x70] sm:$0xff]   ;;  %v491_v8 = vld [vmem:[%s666_s1 + $0x68] sm:$0xff]  }
   0x2   :  { %v484_v1 = vld [vmem:[%s666_s1 + $0xf8] sm:$0xff]   ;;  %439 = vmatprep.subr.bf16.mxu0 %v483_v0  ;;  %v488_v5 = vld [vmem:[%s666_s1 + $0xf0] sm:$0xff]   ;;  %v492_v9 = vld [vmem:[%s666_s1 + $0xe8] sm:$0xff]  }
   0x3   :  { %v485_v2 = vld [vmem:[%s666_s1 + $0x38] sm:$0xff]   ;;  %461 = vmatprep.subr.bf16.mxu1 %v484_v1  ;;  %v489_v6 = vld [vmem:[%s666_s1 + $0x30] sm:$0xff]   ;;  %v493_v10 = vld [vmem:[%s666_s1 + $0x28] sm:$0xff]  }
   0x4   :  { %v486_v3 = vld [vmem:[%s666_s1 + $0xb8] sm:$0xff]   ;;  %440 = vmatpush3.bf16.msra.mxu0 %v485_v2  ;;  %v490_v7 = vld [vmem:[%s666_s1 + $0xb0] sm:$0xff]   ;;  %v494_v11 = vld [vmem:[%s666_s1 + $0xa8] sm:$0xff]  }
   0x5   :  { %462 = vmatpush3.bf16.msra.mxu1 %v486_v3  ;;  %441 = vmatprep.subr.bf16.mxu0 %v487_v4  ;;  %v495_v12 = vld [vmem:[%s666_s1 + $0x60] sm:$0xff]   ;;  %v499_v16 = vld [vmem:[%s666_s1 + $0x58] sm:$0xff]   ;;  %v503_v20 = vld [vmem:[%s666_s1 + $0x50] sm:$0xff]  }
   0x6   :  { %463 = vmatprep.subr.bf16.mxu1 %v488_v5  ;;  %v496_v13 = vld [vmem:[%s666_s1 + $0xe0] sm:$0xff]   ;;  %v500_v17 = vld [vmem:[%s666_s1 + $0xd8] sm:$0xff]   ;;  %v504_v21 = vld [vmem:[%s666_s1 + $0xd0] sm:$0xff]  }
   0x7   :  { %v497_v14 = vld [vmem:[%s666_s1 + $0x20] sm:$0xff]   ;;  %v501_v18 = vld [vmem:[%s666_s1 + $0x18] sm:$0xff]   ;;  %v505_v22 = vld [vmem:[%s666_s1 + $0x10] sm:$0xff]  }
   0x8   :  { %442 = vmatpush3.bf16.msra.mxu0 %v489_v6  ;;  %v498_v15 = vld [vmem:[%s666_s1 + $0xa0] sm:$0xff]   ;;  %v502_v19 = vld [vmem:[%s666_s1 + $0x98] sm:$0xff]   ;;  %v506_v23 = vld [vmem:[%s666_s1 + $0x90] sm:$0xff]  }
   0x9   :  { %464 = vmatpush3.bf16.msra.mxu1 %v490_v7  ;;  %443 = vmatprep.subr.bf16.mxu0 %v491_v8  ;;  %v507_v24 = vld [vmem:[%s666_s1 + $0x48] sm:$0xff]   ;;  %v511_v28 = vld [vmem:[%s666_s1 + $0x40] sm:$0xff]  }
   0xa   :  { %465 = vmatprep.subr.bf16.mxu1 %v492_v9  ;;  %v508_v25 = vld [vmem:[%s666_s1 + $0xc8] sm:$0xff]   ;;  %v512_v29 = vld [vmem:[%s666_s1 + $0xc0] sm:$0xff]  }
   0xb   :  { %v509_v26 = vld [vmem:[%s666_s1 + $0x8] sm:$0xff]   ;;  %v513_v30 = vld [vmem:[%s666_s1] sm:$0xff]  }
   0xc   :  { %444 = vmatpush3.bf16.msra.mxu0 %v493_v10  ;;  %v510_v27 = vld [vmem:[%s666_s1 + $0x88] sm:$0xff]   ;;  %v514_v31 = vld [vmem:[%s666_s1 + $0x80] sm:$0xff]  }
   0xd   :  { %466 = vmatpush3.bf16.msra.mxu1 %v494_v11  ;;  %445 = vmatprep.subr.bf16.mxu0 %v495_v12  ;;  %v515_v32 = vld [vmem:[%s667_s0] ss:$16 sps:$4 sm:$0xff]   ;;  %v517_v33 = vld [vmem:[%s667_s0 + $0x4] ss:$16 sps:$4 sm:$0xff]   ;;  %v518_v34 = vld [vmem:[%s667_s0 + $0x8] ss:$16 sps:$4 sm:$0xff]  }
   0xe   :  { %467 = vmatprep.subr.bf16.mxu1 %v496_v13  ;;  %v520_v35 = vld [vmem:[%s667_s0 + $0xc] ss:$16 sps:$4 sm:$0xff]   ;;  %332 = vmatprep.mubr.bf16.mxu0 %v517_v33  ;;  %v400_v38 = vld [vmem:[%s668_s2] ss:$0 sm:$0xff] }
   0xf   :  { %373 = vmatprep.mubr.bf16.mxu1 %v520_v35 }
  0x10   :  { %446 = vmatpush3.bf16.msra.mxu0 %v497_v14 }
  0x11   :  { %468 = vmatpush3.bf16.msra.mxu1 %v498_v15  ;;  %447 = vmatprep.subr.bf16.mxu0 %v499_v16 }
  0x12   :  { %469 = vmatprep.subr.bf16.mxu1 %v500_v17 }
  0x14   :  { %448 = vmatpush3.bf16.msra.mxu0 %v501_v18 }
  0x15   :  { %470 = vmatpush3.bf16.msra.mxu1 %v502_v19  ;;  %449 = vmatprep.subr.bf16.mxu0 %v503_v20 }
  0x16   :  { %471 = vmatprep.subr.bf16.mxu1 %v504_v21 }
  0x18   :  { %450 = vmatpush3.bf16.msra.mxu0 %v505_v22 }
  0x19   :  { %472 = vmatpush3.bf16.msra.mxu1 %v506_v23  ;;  %451 = vmatprep.subr.bf16.mxu0 %v507_v24 }
  0x1a   :  { %473 = vmatprep.subr.bf16.mxu1 %v508_v25 }
  0x1c   :  { %452 = vmatpush3.bf16.msra.mxu0 %v509_v26 }
  0x1d   :  { %474 = vmatpush3.bf16.msra.mxu1 %v510_v27  ;;  %453 = vmatprep.subr.bf16.mxu0 %v511_v28 }
  0x1e   :  { %475 = vmatprep.subr.bf16.mxu1 %v512_v29 }
  0x20   :  { %454 = vmatpush3.bf16.msra.mxu0 %v513_v30 }
  0x21   :  { %476 = vmatpush3.bf16.msra.mxu1 %v514_v31 }
  0x23   :  { %333 = vmatmul.mubr.bf16.vlgmr.msra.gmra.mxu0 %v515_v32 }
  0x24   :  { %374 = vmatmul.mubr.bf16.vlgmr.msra.gmra.mxu1 %v518_v34 }
  0xe3   :  { %v455_v36 = vpop.f32.mrf.mxu0 }
  0xe4   :  { %v477_v37 = vpop.f32.mrf.mxu1 }
  0xe5   :  { %v456_v39 = vpop.f32.mrf.mxu0 }
  0xe6   :  { %v457_v40 = vadd.f32 %v456_v39, %v455_v36  ;;  %v478_v41 = vpop.f32.mrf.mxu1 }
  0xe7   :  { %v458_v42 = vpop.f32.mrf.mxu0  ;;  %v479_v44 = vadd.f32 %v478_v41, %v477_v37 }
  0xe8   :  { %v335_v43 = vadd.f32 %v457_v40, %v400_v38  ;;  %v480_v45 = vpop.f32.mrf.mxu1 }
  0xe9   :  { %v459_v46 = vpop.f32.mrf.mxu0 }
  0xea   :  { %v376_v47 = vadd.f32 %v479_v44, %v335_v43  ;;  %v460_v48 = vadd.f32 %v459_v46, %v458_v42  ;;  %v481_v49 = vpop.f32.mrf.mxu1 }
  0xeb   :  { %v482_v52 = vadd.f32 %v481_v49, %v480_v45 }
  0xec   :  { %v437_v50 = vmul.f32 -1.442695, %v376_v47  ;;  %v338_v51 = vadd.f32 %v460_v48, %v400_v38 }
  0xee   :  { %521 = vpow2.f32 %v437_v50  ;;  %v379_v53 = vadd.f32 %v482_v52, %v338_v51 }
  0xf0   :  { %v438_v54 = vmul.f32 -1.442695, %v379_v53 }
  0xf2   :  { %523 = vpow2.f32 %v438_v54 }
  0xfb   :  { %v522_v55 = vpop.eup %521 }
  0xfc   :  { %v388_v56 = vadd.f32 1.0, %v522_v55 }
  0xfe   :  { %525 = vrcp.f32 %v388_v56 }
  0xff   :  { %v524_v57 = vpop.eup %523 }
 0x100   :  { %v389_v58 = vadd.f32 1.0, %v524_v57 }
 0x102   :  { %527 = vrcp.f32 %v389_v58 }
 0x10b   :  { %v526_v59 = vpop.eup %525 }
 0x10c   :  { %394 = vst [vmem:[%s669_s3] sm:$0xff] %v526_v59 }
 0x10f   :  { %v528_v60 = vpop.eup %527 }
 0x110   :  { %395 = vst [vmem:[%s669_s3 + $0x8] sm:$0xff] %v528_v60 }

</bundles_post_ra>
